<compile_context>
chip_gen: v5e
topology: v5e:2x2
jax: 0.10.0
libtpu: 0.0.40
codegen_flags: <defaults>
</compile_context>

<pallas_src>
import functools

import jax
import jax.numpy as jnp
from jax.experimental import pallas as pl
from jax.experimental.pallas import tpu as pltpu

_LANE = 128
_SUBLANE = 8


def _round_up(v, m):
    return -(-v // m) * m


def _num_tensorcores():
    """Best-effort TensorCore count; megacore batch split only if >= 2."""
    try:
        info = pltpu.get_tpu_info()
        for name in ("num_cores", "core_count", "num_tensorcores",
                     "tensorcore_count"):
            v = getattr(info, name, None)
            if isinstance(v, int) and v >= 1:
                return v
    except Exception:
        pass
    return 1


def _vmem_capacity_bytes():
    """Best-effort per-core VMEM capacity; conservative 64 MiB fallback."""
    try:
        v = getattr(pltpu.get_tpu_info(), "vmem_capacity_bytes", None)
        if isinstance(v, int) and v > 0:
            return int(v)
    except Exception:
        pass
    return 64 * 1024 * 1024


def _reorder_and_pad_gates(w, H, Hp):
    """PyTorch gate order [i, f, g, o] -> [i, f, o, g]; pad each gate H->Hp."""
    wi, wf, wg, wo = jnp.split(w, 4, axis=-1)
    pad = [(0, 0)] * (w.ndim - 1) + [(0, Hp - H)]
    return jnp.concatenate(
        [jnp.pad(wi, pad), jnp.pad(wf, pad), jnp.pad(wo, pad), jnp.pad(wg, pad)],
        axis=-1)


def _lstm_kernel(x_ref, wih_ref, whh_ref, bias_ref, h0_ref, c0_ref,
                 out_ref, hN_ref, cN_ref,
                 gx_sc, h_sc, c_sc, *,
                 t_block, batch_block, hidden_pad, last_block, last_step):
    """One (batch-tile, time-block) grid step of the LSTM recurrence."""
    t_idx = pl.program_id(1)
    Hp = hidden_pad
    Bb = batch_block

    # (Re)load the recurrent state at the start of each batch tile.
    @pl.when(t_idx == 0)
    def _():
        h_sc[...] = h0_ref[...].astype(jnp.float32)
        c_sc[...] = c0_ref[...].astype(jnp.float32)

    # Non-recurrent input projection for the whole time block: one big MXU
    # matmul (M = Tb*Bb) with the bias folded in.  Off the serial per-step path.
    gx_sc[...] = (
        jnp.dot(x_ref[...], wih_ref[...], preferred_element_type=jnp.float32)
        + bias_ref[...])

    whh = whh_ref[...]          # (Hp, 4Hp) bf16, reused across the whole block
    h = h_sc[...]               # (Bb, Hp) f32
    c = c_sc[...]               # (Bb, Hp) f32

    # Unrolled loop over the Tb timesteps of this block (static, sublane-
    # aligned row offsets -> dense unmasked loads/stores).
    for i in range(t_block):
        row = i * Bb
        gates = gx_sc[pl.ds(row, Bb), :] + jnp.dot(
            h.astype(jnp.bfloat16), whh, preferred_element_type=jnp.float32)

        # sigmoid(x) = 0.5*tanh(x/2) + 0.5 -> one EUP op for [i | f | o].
        sig = 0.5 * jnp.tanh(0.5 * gates[:, :3 * Hp]) + 0.5
        g_g = jnp.tanh(gates[:, 3 * Hp:])
        i_g = sig[:, :Hp]
        f_g = sig[:, Hp:2 * Hp]
        o_g = sig[:, 2 * Hp:]

        c = f_g * c + i_g * g_g
        h = o_g * jnp.tanh(c)

        out_ref[pl.ds(row, Bb), :] = h.astype(out_ref.dtype)

        if i == last_step:      # static: the true last timestep of the sequence
            @pl.when(t_idx == last_block)
            def _(h=h, c=c):
                hN_ref[...] = h.astype(hN_ref.dtype)
                cN_ref[...] = c.astype(cN_ref.dtype)

    h_sc[...] = h
    c_sc[...] = c


def lstm_forward(x_btI, w_ih, w_hh, b_ih, b_hh, h0=None, c0=None):
    """Single-layer unidirectional LSTM, batch_first semantics.

    Args:
      x_btI: (B, T, I) input sequence (batch_first, like the PyTorch module).
      w_ih:  (4H, I)  PyTorch weight_ih_l0 (gate order [i, f, g, o]).
      w_hh:  (4H, H)  PyTorch weight_hh_l0.
      b_ih:  (4H,)    PyTorch bias_ih_l0.
      b_hh:  (4H,)    PyTorch bias_hh_l0.
      h0, c0: optional (1, B, H) initial state.

    Returns:
      (output_sequence (B, T, H), (h_n (1, B, H), c_n (1, B, H)))
    """
    B, T, I = x_btI.shape
    H = w_hh.shape[1]
    dtype = x_btI.dtype

    if h0 is None:
        h0 = jnp.zeros((1, B, H), dtype)
    if c0 is None:
        c0 = jnp.zeros((1, B, H), dtype)

    # ---- TPU-friendly padded shapes --------------------------------------
    Hp = max(_LANE, _round_up(H, _LANE))          # lane-dense gates / output
    Ip = _round_up(I, _SUBLANE)
    Bp = _round_up(B, _SUBLANE)                   # full sublanes

    # Megacore batch split only when the chip actually has >=2 TensorCores
    # (on single-TC chips the "parallel" axis is just a serial outer loop).
    n_cores = _num_tensorcores()
    n_b = 2 if (n_cores >= 2 and Bp >= 16 and Bp % 16 == 0) else 1
    Bb = Bp // n_b

    out_isz = jnp.dtype(dtype).itemsize

    def vmem_need(tb):
        return (
            2 * tb * Bb * Ip * 2              # x blocks (bf16, double-buffered)
            + 2 * tb * Bb * Hp * out_isz      # out-seq blocks
            + tb * Bb * 4 * Hp * 4            # per-block gates scratch (f32)
            + Hp * 4 * Hp * 2                 # W_hh^T (bf16, single-buffered)
            + Ip * 4 * Hp * 2                 # W_ih^T (bf16, single-buffered)
            + 4 * Hp * 4                      # bias
            + 2 * Bb * Hp * 4                 # h0 / c0 (f32, single-buffered)
            + 2 * 2 * Bb * Hp * out_isz       # h_n / c_n blocks
            + 2 * Bb * Hp * 4                 # h / c state scratch (f32)
        )

    # ---- budget-driven time-block size and VMEM limit ----------------------
    vmem_cap = _vmem_capacity_bytes()
    vmem_budget = (vmem_cap * 3) // 4             # headroom for compiler scratch
    tb_cap = next((tb for tb in (64, 32, 16, 8) if vmem_need(tb) <= vmem_budget), 8)
    Tb = min(tb_cap, _round_up(T, _SUBLANE))      # don't over-pad short sequences
    Tp = _round_up(T, Tb)
    n_t = Tp // Tb
    last_block, last_step = (T - 1) // Tb, (T - 1) % Tb

    need = vmem_need(Tb)
    vmem_limit = min(max(need + (4 << 20), 32 << 20), vmem_budget)
    vmem_limit = int(max(vmem_limit, need + (1 << 20)))

    # ---- weight prep: reorder gates to [i,f,o,g], pad, transpose, bf16 -----
    wih_T = _reorder_and_pad_gates(jnp.transpose(w_ih), H, Hp)         # (I, 4Hp)
    wih_T = jnp.pad(wih_T, ((0, Ip - I), (0, 0))).astype(jnp.bfloat16)  # (Ip,4Hp)
    whh_T = _reorder_and_pad_gates(jnp.transpose(w_hh), H, Hp)         # (H, 4Hp)
    whh_T = jnp.pad(whh_T, ((0, Hp - H), (0, 0))).astype(jnp.bfloat16)  # (Hp,4Hp)
    bias2d = _reorder_and_pad_gates(
        (b_ih + b_hh).astype(jnp.float32), H, Hp).reshape(1, 4 * Hp)

    # ---- inputs: pad, time-major flat rows (n_b, Tp, Bb), bf16 MXU operand --
    x_p = jnp.pad(x_btI, ((0, Bp - B), (0, Tp - T), (0, Ip - I)))
    x_tm = (x_p.astype(jnp.bfloat16)
            .reshape(n_b, Bb, Tp, Ip)
            .transpose(0, 2, 1, 3)
            .reshape(n_b * Tp * Bb, Ip))
    h0_p = jnp.pad(h0[0].astype(jnp.float32), ((0, Bp - B), (0, Hp - H)))
    c0_p = jnp.pad(c0[0].astype(jnp.float32), ((0, Bp - B), (0, Hp - H)))

    kernel = functools.partial(
        _lstm_kernel, t_block=Tb, batch_block=Bb, hidden_pad=Hp,
        last_block=last_block, last_step=last_step)

    def call(single_buffer):
        # Grid-invariant operands: no point double-buffering them.
        sb = {"pipeline_mode": pl.Buffered(1)} if single_buffer else {}
        grid_spec = pltpu.PrefetchScalarGridSpec(
            num_scalar_prefetch=0,
            grid=(n_b, n_t),
            in_specs=[
                pl.BlockSpec((Tb * Bb, Ip), lambda b, t: (b * n_t + t, 0)),  # x
                pl.BlockSpec((Ip, 4 * Hp), lambda b, t: (0, 0), **sb),       # W_ih^T
                pl.BlockSpec((Hp, 4 * Hp), lambda b, t: (0, 0), **sb),       # W_hh^T
                pl.BlockSpec((1, 4 * Hp), lambda b, t: (0, 0), **sb),        # bias
                pl.BlockSpec((Bb, Hp), lambda b, t: (b, 0), **sb),           # h0
                pl.BlockSpec((Bb, Hp), lambda b, t: (b, 0), **sb),           # c0
            ],
            out_specs=[
                pl.BlockSpec((Tb * Bb, Hp), lambda b, t: (b * n_t + t, 0)),  # out
                pl.BlockSpec((Bb, Hp), lambda b, t: (b, 0)),                 # h_n
                pl.BlockSpec((Bb, Hp), lambda b, t: (b, 0)),                 # c_n
            ],
            scratch_shapes=[
                pltpu.VMEM((Tb * Bb, 4 * Hp), jnp.float32),   # block gates_x
                pltpu.VMEM((Bb, Hp), jnp.float32),            # h state
                pltpu.VMEM((Bb, Hp), jnp.float32),            # c state
            ],
        )
        return pl.pallas_call(
            kernel,
            out_shape=(
                jax.ShapeDtypeStruct((n_b * Tp * Bb, Hp), dtype),  # out sequence
                jax.ShapeDtypeStruct((Bp, Hp), dtype),             # h_n
                jax.ShapeDtypeStruct((Bp, Hp), dtype),             # c_n
            ),
            grid_spec=grid_spec,
            compiler_params=pltpu.CompilerParams(
                dimension_semantics=("parallel", "arbitrary"),
                vmem_limit_bytes=vmem_limit,
            ),
        )(x_tm, wih_T, whh_T, bias2d, h0_p, c0_p)

    try:
        out_p, hN_p, cN_p = call(True)
    except Exception:
        # Fallback if this Pallas build rejects single-buffering (Buffered(1)).
        out_p, hN_p, cN_p = call(False)

    output_sequence = (out_p.reshape(n_b, Tp, Bb, Hp)
                       .transpose(0, 2, 1, 3)
                       .reshape(Bp, Tp, Hp)[:B, :T, :H])
    h_n = hN_p[:B, :H][None]
    c_n = cN_p[:B, :H][None]
    return output_sequence, (h_n, c_n)


def _lstm_reference(x_btI, w_ih, w_hh, b_ih, b_hh, h0, c0):
    """Pure-JAX f32 reference (matches PyTorch nn.LSTM math)."""
    H = w_hh.shape[1]
    x = x_btI.astype(jnp.float32)
    wih_T = w_ih.T.astype(jnp.float32)
    whh_T = w_hh.T.astype(jnp.float32)
    b = (b_ih + b_hh).astype(jnp.float32)

    def step(carry, x_t):
        h, c = carry
        gates = x_t @ wih_T + h @ whh_T + b
        i = jax.nn.sigmoid(gates[:, 0 * H:1 * H])
        f = jax.nn.sigmoid(gates[:, 1 * H:2 * H])
        g = jnp.tanh(gates[:, 2 * H:3 * H])
        o = jax.nn.sigmoid(gates[:, 3 * H:4 * H])
        c = f * c + i * g
        h = o * jnp.tanh(c)
        return (h, c), h

    (hN, cN), ys = jax.lax.scan(step, (h0[0].astype(jnp.float32),
                                       c0[0].astype(jnp.float32)),
                                jnp.transpose(x, (1, 0, 2)))
    return jnp.transpose(ys, (1, 0, 2)), (hN[None], cN[None])


if __name__ == "__main__":
    # Small shapes consistent with the module: batch=2, seq=8,
    # input_size=16, hidden_size=32, num_layers=1, unidirectional.
    B, T, I, H = 2, 8, 16, 32
    key = jax.random.PRNGKey(0)
    k_x, k_wih, k_whh, k_bih, k_bhh = jax.random.split(key, 5)

    bound = 1.0 / jnp.sqrt(jnp.float32(H))
    x = jax.random.normal(k_x, (B, T, I), jnp.float32)
    w_ih = jax.random.uniform(k_wih, (4 * H, I), jnp.float32, -bound, bound)
    w_hh = jax.random.uniform(k_whh, (4 * H, H), jnp.float32, -bound, bound)
    b_ih = jax.random.uniform(k_bih, (4 * H,), jnp.float32, -bound, bound)
    b_hh = jax.random.uniform(k_bhh, (4 * H,), jnp.float32, -bound, bound)

    h0 = jnp.zeros((1, B, H), jnp.float32)
    c0 = jnp.zeros((1, B, H), jnp.float32)

    out_seq, (h_n, c_n) = lstm_forward(x, w_ih, w_hh, b_ih, b_hh, h0, c0)
    jax.block_until_ready((out_seq, h_n, c_n))

    # Sanity check against the pure-JAX f32 reference.  The kernel feeds bf16
    # operands to the MXU (f32 accumulation), so tolerance reflects bf16.
    ref_seq, (ref_h, ref_c) = _lstm_reference(x, w_ih, w_hh, b_ih, b_hh, h0, c0)
    assert out_seq.shape == (B, T, H)
    assert h_n.shape == (1, B, H) and c_n.shape == (1, B, H)
    assert jnp.allclose(out_seq, ref_seq, atol=2e-2, rtol=2e-2)
    assert jnp.allclose(h_n, ref_h, atol=2e-2, rtol=2e-2)
    assert jnp.allclose(c_n, ref_c, atol=2e-2, rtol=2e-2)

    print("KERNEL_OK")
</pallas_src>

<mosaic_0001>
module attributes {stable_mosaic.version = 11 : i64} {
  func.func @_lstm_kernel(%arg0: i32, %arg1: i32, %arg2: memref<64x16xbf16, #tpu.memory_space<vmem>>, %arg3: memref<16x512xbf16, #tpu.memory_space<vmem>>, %arg4: memref<128x512xbf16, #tpu.memory_space<vmem>>, %arg5: memref<1x512xf32, #tpu.memory_space<vmem>>, %arg6: memref<8x128xf32, #tpu.memory_space<vmem>>, %arg7: memref<8x128xf32, #tpu.memory_space<vmem>>, %arg8: memref<64x128xf32, #tpu.memory_space<vmem>>, %arg9: memref<8x128xf32, #tpu.memory_space<vmem>>, %arg10: memref<8x128xf32, #tpu.memory_space<vmem>>, %arg11: memref<64x512xf32, #tpu.memory_space<vmem>>, %arg12: memref<8x128xf32, #tpu.memory_space<vmem>>, %arg13: memref<8x128xf32, #tpu.memory_space<vmem>>) attributes {dimension_semantics = [#tpu.dimension_semantics<parallel>, #tpu.dimension_semantics<arbitrary>], iteration_bounds = array<i64: 1, 1>, scalar_prefetch = 0 : i64, scratch_operands = 3 : i64, tpu.core_type = #tpu.core_type<tc>, window_params = [{transform_indices = @transform_0, window_bounds = array<i64: 64, 16>}, {pipeline_mode = #tpu.pipeline_mode<synchronous>, transform_indices = @transform_1, window_bounds = array<i64: 16, 512>}, {pipeline_mode = #tpu.pipeline_mode<synchronous>, transform_indices = @transform_2, window_bounds = array<i64: 128, 512>}, {pipeline_mode = #tpu.pipeline_mode<synchronous>, transform_indices = @transform_3, window_bounds = array<i64: 1, 512>}, {pipeline_mode = #tpu.pipeline_mode<synchronous>, transform_indices = @transform_4, window_bounds = array<i64: 8, 128>}, {pipeline_mode = #tpu.pipeline_mode<synchronous>, transform_indices = @transform_5, window_bounds = array<i64: 8, 128>}, {transform_indices = @transform_6, window_bounds = array<i64: 64, 128>}, {transform_indices = @transform_7, window_bounds = array<i64: 8, 128>}, {transform_indices = @transform_8, window_bounds = array<i64: 8, 128>}]} {
    %c0_i32 = arith.constant 0 : i32
    %0 = arith.cmpi eq, %arg1, %c0_i32 : i32
    %1 = arith.extui %0 : i1 to i32
    %c0_i32_0 = arith.constant 0 : i32
    %2 = arith.cmpi ne, %1, %c0_i32_0 : i32
    scf.if %2 {
      %c0_77 = arith.constant 0 : index
      %c0_78 = arith.constant 0 : index
      %202 = vector.load %arg6[%c0_77, %c0_78] : memref<8x128xf32, #tpu.memory_space<vmem>>, vector<8x128xf32>
      %c0_79 = arith.constant 0 : index
      %c0_80 = arith.constant 0 : index
      %203 = vector.load %arg12[%c0_79, %c0_80] : memref<8x128xf32, #tpu.memory_space<vmem>>, vector<8x128xf32>
      tpu.vector_store %arg12[%c0_79, %c0_80], %202 {strides = array<i32>} : memref<8x128xf32, #tpu.memory_space<vmem>>, vector<8x128xf32>,
      %c0_81 = arith.constant 0 : index
      %c0_82 = arith.constant 0 : index
      %204 = vector.load %arg7[%c0_81, %c0_82] : memref<8x128xf32, #tpu.memory_space<vmem>>, vector<8x128xf32>
      %c0_83 = arith.constant 0 : index
      %c0_84 = arith.constant 0 : index
      %205 = vector.load %arg13[%c0_83, %c0_84] : memref<8x128xf32, #tpu.memory_space<vmem>>, vector<8x128xf32>
      tpu.vector_store %arg13[%c0_83, %c0_84], %204 {strides = array<i32>} : memref<8x128xf32, #tpu.memory_space<vmem>>, vector<8x128xf32>,
    } else {
    }
    %c0 = arith.constant 0 : index
    %c0_1 = arith.constant 0 : index
    %3 = vector.load %arg2[%c0, %c0_1] : memref<64x16xbf16, #tpu.memory_space<vmem>>, vector<64x16xbf16>
    %c0_2 = arith.constant 0 : index
    %c0_3 = arith.constant 0 : index
    %4 = vector.load %arg3[%c0_2, %c0_3] : memref<16x512xbf16, #tpu.memory_space<vmem>>, vector<16x512xbf16>
    %cst = arith.constant dense<0.000000e+00> : vector<64x512xf32>
    %5 = tpu.matmul %3, %4, %cst {dimension_numbers = #tpu.dot_dimension_numbers<[1], [0], [0], [1], [0, 0, 1, 1], [], []>} : vector<64x16xbf16>, vector<16x512xbf16>, vector<64x512xf32> -> vector<64x512xf32>
    %c0_4 = arith.constant 0 : index
    %c0_5 = arith.constant 0 : index
    %6 = vector.load %arg5[%c0_4, %c0_5] : memref<1x512xf32, #tpu.memory_space<vmem>>, vector<1x512xf32>
    %7 = vector.broadcast %6 : vector<1x512xf32> to vector<64x512xf32>
    %8 = arith.addf %5, %7 : vector<64x512xf32>
    %c0_6 = arith.constant 0 : index
    %c0_7 = arith.constant 0 : index
    %9 = vector.load %arg11[%c0_6, %c0_7] : memref<64x512xf32, #tpu.memory_space<vmem>>, vector<64x512xf32>
    tpu.vector_store %arg11[%c0_6, %c0_7], %8 {strides = array<i32>} : memref<64x512xf32, #tpu.memory_space<vmem>>, vector<64x512xf32>,
    %c0_8 = arith.constant 0 : index
    %c0_9 = arith.constant 0 : index
    %10 = vector.load %arg4[%c0_8, %c0_9] : memref<128x512xbf16, #tpu.memory_space<vmem>>, vector<128x512xbf16>
    %c0_10 = arith.constant 0 : index
    %c0_11 = arith.constant 0 : index
    %11 = vector.load %arg12[%c0_10, %c0_11] : memref<8x128xf32, #tpu.memory_space<vmem>>, vector<8x128xf32>
    %c0_12 = arith.constant 0 : index
    %c0_13 = arith.constant 0 : index
    %12 = vector.load %arg13[%c0_12, %c0_13] : memref<8x128xf32, #tpu.memory_space<vmem>>, vector<8x128xf32>
    %c0_14 = arith.constant 0 : index
    %c0_15 = arith.constant 0 : index
    %13 = vector.load %arg11[%c0_14, %c0_15] : memref<64x512xf32, #tpu.memory_space<vmem>>, vector<8x512xf32>
    %14 = arith.truncf %11 : vector<8x128xf32> to vector<8x128xbf16>
    %cst_16 = arith.constant dense<0.000000e+00> : vector<8x512xf32>
    %15 = tpu.matmul %14, %10, %cst_16 {dimension_numbers = #tpu.dot_dimension_numbers<[1], [0], [0], [1], [0, 0, 1, 1], [], []>} : vector<8x128xbf16>, vector<128x512xbf16>, vector<8x512xf32> -> vector<8x512xf32>
    %16 = arith.addf %13, %15 : vector<8x512xf32>
    %17 = vector.extract_strided_slice %16 {offsets = [0, 0], sizes = [8, 384], strides = [1, 1]} : vector<8x512xf32> to vector<8x384xf32>
    %cst_17 = arith.constant 5.000000e-01 : f32
    %18 = vector.broadcast %cst_17 : f32 to vector<8x384xf32>
    %19 = arith.mulf %18, %17 : vector<8x384xf32>
    %20 = math.tanh %19 : vector<8x384xf32>
    %cst_18 = arith.constant 5.000000e-01 : f32
    %21 = vector.broadcast %cst_18 : f32 to vector<8x384xf32>
    %22 = arith.mulf %21, %20 : vector<8x384xf32>
    %cst_19 = arith.constant 5.000000e-01 : f32
    %23 = vector.broadcast %cst_19 : f32 to vector<8x384xf32>
    %24 = arith.addf %22, %23 : vector<8x384xf32>
    %25 = vector.extract_strided_slice %16 {offsets = [0, 384], sizes = [8, 128], strides = [1, 1]} : vector<8x512xf32> to vector<8x128xf32>
    %26 = math.tanh %25 : vector<8x128xf32>
    %27 = vector.extract_strided_slice %24 {offsets = [0, 0], sizes = [8, 128], strides = [1, 1]} : vector<8x384xf32> to vector<8x128xf32>
    %28 = vector.extract_strided_slice %24 {offsets = [0, 128], sizes = [8, 128], strides = [1, 1]} : vector<8x384xf32> to vector<8x128xf32>
    %29 = vector.extract_strided_slice %24 {offsets = [0, 256], sizes = [8, 128], strides = [1, 1]} : vector<8x384xf32> to vector<8x128xf32>
    %30 = arith.mulf %28, %12 : vector<8x128xf32>
    %31 = arith.mulf %27, %26 : vector<8x128xf32>
    %32 = arith.addf %30, %31 : vector<8x128xf32>
    %33 = math.tanh %32 : vector<8x128xf32>
    %34 = arith.mulf %29, %33 : vector<8x128xf32>
    %c0_20 = arith.constant 0 : index
    %c0_21 = arith.constant 0 : index
    %35 = vector.load %arg8[%c0_20, %c0_21] : memref<64x128xf32, #tpu.memory_space<vmem>>, vector<8x128xf32>
    tpu.vector_store %arg8[%c0_20, %c0_21], %34 {strides = array<i32>} : memref<64x128xf32, #tpu.memory_space<vmem>>, vector<8x128xf32>,
    %c8 = arith.constant 8 : index
    %c0_22 = arith.constant 0 : index
    %36 = vector.load %arg11[%c8, %c0_22] : memref<64x512xf32, #tpu.memory_space<vmem>>, vector<8x512xf32>
    %37 = arith.truncf %34 : vector<8x128xf32> to vector<8x128xbf16>
    %cst_23 = arith.constant dense<0.000000e+00> : vector<8x512xf32>
    %38 = tpu.matmul %37, %10, %cst_23 {dimension_numbers = #tpu.dot_dimension_numbers<[1], [0], [0], [1], [0, 0, 1, 1], [], []>} : vector<8x128xbf16>, vector<128x512xbf16>, vector<8x512xf32> -> vector<8x512xf32>
    %39 = arith.addf %36, %38 : vector<8x512xf32>
    %40 = vector.extract_strided_slice %39 {offsets = [0, 0], sizes = [8, 384], strides = [1, 1]} : vector<8x512xf32> to vector<8x384xf32>
    %cst_24 = arith.constant 5.000000e-01 : f32
    %41 = vector.broadcast %cst_24 : f32 to vector<8x384xf32>
    %42 = arith.mulf %41, %40 : vector<8x384xf32>
    %43 = math.tanh %42 : vector<8x384xf32>
    %cst_25 = arith.constant 5.000000e-01 : f32
    %44 = vector.broadcast %cst_25 : f32 to vector<8x384xf32>
    %45 = arith.mulf %44, %43 : vector<8x384xf32>
    %cst_26 = arith.constant 5.000000e-01 : f32
    %46 = vector.broadcast %cst_26 : f32 to vector<8x384xf32>
    %47 = arith.addf %45, %46 : vector<8x384xf32>
    %48 = vector.extract_strided_slice %39 {offsets = [0, 384], sizes = [8, 128], strides = [1, 1]} : vector<8x512xf32> to vector<8x128xf32>
    %49 = math.tanh %48 : vector<8x128xf32>
    %50 = vector.extract_strided_slice %47 {offsets = [0, 0], sizes = [8, 128], strides = [1, 1]} : vector<8x384xf32> to vector<8x128xf32>
    %51 = vector.extract_strided_slice %47 {offsets = [0, 128], sizes = [8, 128], strides = [1, 1]} : vector<8x384xf32> to vector<8x128xf32>
    %52 = vector.extract_strided_slice %47 {offsets = [0, 256], sizes = [8, 128], strides = [1, 1]} : vector<8x384xf32> to vector<8x128xf32>
    %53 = arith.mulf %51, %32 : vector<8x128xf32>
    %54 = arith.mulf %50, %49 : vector<8x128xf32>
    %55 = arith.addf %53, %54 : vector<8x128xf32>
    %56 = math.tanh %55 : vector<8x128xf32>
    %57 = arith.mulf %52, %56 : vector<8x128xf32>
    %c8_27 = arith.constant 8 : index
    %c0_28 = arith.constant 0 : index
    %58 = vector.load %arg8[%c8_27, %c0_28] : memref<64x128xf32, #tpu.memory_space<vmem>>, vector<8x128xf32>
    tpu.vector_store %arg8[%c8_27, %c0_28], %57 {strides = array<i32>} : memref<64x128xf32, #tpu.memory_space<vmem>>, vector<8x128xf32>,
    %c16 = arith.constant 16 : index
    %c0_29 = arith.constant 0 : index
    %59 = vector.load %arg11[%c16, %c0_29] : memref<64x512xf32, #tpu.memory_space<vmem>>, vector<8x512xf32>
    %60 = arith.truncf %57 : vector<8x128xf32> to vector<8x128xbf16>
    %cst_30 = arith.constant dense<0.000000e+00> : vector<8x512xf32>
    %61 = tpu.matmul %60, %10, %cst_30 {dimension_numbers = #tpu.dot_dimension_numbers<[1], [0], [0], [1], [0, 0, 1, 1], [], []>} : vector<8x128xbf16>, vector<128x512xbf16>, vector<8x512xf32> -> vector<8x512xf32>
    %62 = arith.addf %59, %61 : vector<8x512xf32>
    %63 = vector.extract_strided_slice %62 {offsets = [0, 0], sizes = [8, 384], strides = [1, 1]} : vector<8x512xf32> to vector<8x384xf32>
    %cst_31 = arith.constant 5.000000e-01 : f32
    %64 = vector.broadcast %cst_31 : f32 to vector<8x384xf32>
    %65 = arith.mulf %64, %63 : vector<8x384xf32>
    %66 = math.tanh %65 : vector<8x384xf32>
    %cst_32 = arith.constant 5.000000e-01 : f32
    %67 = vector.broadcast %cst_32 : f32 to vector<8x384xf32>
    %68 = arith.mulf %67, %66 : vector<8x384xf32>
    %cst_33 = arith.constant 5.000000e-01 : f32
    %69 = vector.broadcast %cst_33 : f32 to vector<8x384xf32>
    %70 = arith.addf %68, %69 : vector<8x384xf32>
    %71 = vector.extract_strided_slice %62 {offsets = [0, 384], sizes = [8, 128], strides = [1, 1]} : vector<8x512xf32> to vector<8x128xf32>
    %72 = math.tanh %71 : vector<8x128xf32>
    %73 = vector.extract_strided_slice %70 {offsets = [0, 0], sizes = [8, 128], strides = [1, 1]} : vector<8x384xf32> to vector<8x128xf32>
    %74 = vector.extract_strided_slice %70 {offsets = [0, 128], sizes = [8, 128], strides = [1, 1]} : vector<8x384xf32> to vector<8x128xf32>
    %75 = vector.extract_strided_slice %70 {offsets = [0, 256], sizes = [8, 128], strides = [1, 1]} : vector<8x384xf32> to vector<8x128xf32>
    %76 = arith.mulf %74, %55 : vector<8x128xf32>
    %77 = arith.mulf %73, %72 : vector<8x128xf32>
    %78 = arith.addf %76, %77 : vector<8x128xf32>
    %79 = math.tanh %78 : vector<8x128xf32>
    %80 = arith.mulf %75, %79 : vector<8x128xf32>
    %c16_34 = arith.constant 16 : index
    %c0_35 = arith.constant 0 : index
    %81 = vector.load %arg8[%c16_34, %c0_35] : memref<64x128xf32, #tpu.memory_space<vmem>>, vector<8x128xf32>
    tpu.vector_store %arg8[%c16_34, %c0_35], %80 {strides = array<i32>} : memref<64x128xf32, #tpu.memory_space<vmem>>, vector<8x128xf32>,
    %c24 = arith.constant 24 : index
    %c0_36 = arith.constant 0 : index
    %82 = vector.load %arg11[%c24, %c0_36] : memref<64x512xf32, #tpu.memory_space<vmem>>, vector<8x512xf32>
    %83 = arith.truncf %80 : vector<8x128xf32> to vector<8x128xbf16>
    %cst_37 = arith.constant dense<0.000000e+00> : vector<8x512xf32>
    %84 = tpu.matmul %83, %10, %cst_37 {dimension_numbers = #tpu.dot_dimension_numbers<[1], [0], [0], [1], [0, 0, 1, 1], [], []>} : vector<8x128xbf16>, vector<128x512xbf16>, vector<8x512xf32> -> vector<8x512xf32>
    %85 = arith.addf %82, %84 : vector<8x512xf32>
    %86 = vector.extract_strided_slice %85 {offsets = [0, 0], sizes = [8, 384], strides = [1, 1]} : vector<8x512xf32> to vector<8x384xf32>
    %cst_38 = arith.constant 5.000000e-01 : f32
    %87 = vector.broadcast %cst_38 : f32 to vector<8x384xf32>
    %88 = arith.mulf %87, %86 : vector<8x384xf32>
    %89 = math.tanh %88 : vector<8x384xf32>
    %cst_39 = arith.constant 5.000000e-01 : f32
    %90 = vector.broadcast %cst_39 : f32 to vector<8x384xf32>
    %91 = arith.mulf %90, %89 : vector<8x384xf32>
    %cst_40 = arith.constant 5.000000e-01 : f32
    %92 = vector.broadcast %cst_40 : f32 to vector<8x384xf32>
    %93 = arith.addf %91, %92 : vector<8x384xf32>
    %94 = vector.extract_strided_slice %85 {offsets = [0, 384], sizes = [8, 128], strides = [1, 1]} : vector<8x512xf32> to vector<8x128xf32>
    %95 = math.tanh %94 : vector<8x128xf32>
    %96 = vector.extract_strided_slice %93 {offsets = [0, 0], sizes = [8, 128], strides = [1, 1]} : vector<8x384xf32> to vector<8x128xf32>
    %97 = vector.extract_strided_slice %93 {offsets = [0, 128], sizes = [8, 128], strides = [1, 1]} : vector<8x384xf32> to vector<8x128xf32>
    %98 = vector.extract_strided_slice %93 {offsets = [0, 256], sizes = [8, 128], strides = [1, 1]} : vector<8x384xf32> to vector<8x128xf32>
    %99 = arith.mulf %97, %78 : vector<8x128xf32>
    %100 = arith.mulf %96, %95 : vector<8x128xf32>
    %101 = arith.addf %99, %100 : vector<8x128xf32>
    %102 = math.tanh %101 : vector<8x128xf32>
    %103 = arith.mulf %98, %102 : vector<8x128xf32>
    %c24_41 = arith.constant 24 : index
    %c0_42 = arith.constant 0 : index
    %104 = vector.load %arg8[%c24_41, %c0_42] : memref<64x128xf32, #tpu.memory_space<vmem>>, vector<8x128xf32>
    tpu.vector_store %arg8[%c24_41, %c0_42], %103 {strides = array<i32>} : memref<64x128xf32, #tpu.memory_space<vmem>>, vector<8x128xf32>,
    %c32 = arith.constant 32 : index
    %c0_43 = arith.constant 0 : index
    %105 = vector.load %arg11[%c32, %c0_43] : memref<64x512xf32, #tpu.memory_space<vmem>>, vector<8x512xf32>
    %106 = arith.truncf %103 : vector<8x128xf32> to vector<8x128xbf16>
    %cst_44 = arith.constant dense<0.000000e+00> : vector<8x512xf32>
    %107 = tpu.matmul %106, %10, %cst_44 {dimension_numbers = #tpu.dot_dimension_numbers<[1], [0], [0], [1], [0, 0, 1, 1], [], []>} : vector<8x128xbf16>, vector<128x512xbf16>, vector<8x512xf32> -> vector<8x512xf32>
    %108 = arith.addf %105, %107 : vector<8x512xf32>
    %109 = vector.extract_strided_slice %108 {offsets = [0, 0], sizes = [8, 384], strides = [1, 1]} : vector<8x512xf32> to vector<8x384xf32>
    %cst_45 = arith.constant 5.000000e-01 : f32
    %110 = vector.broadcast %cst_45 : f32 to vector<8x384xf32>
    %111 = arith.mulf %110, %109 : vector<8x384xf32>
    %112 = math.tanh %111 : vector<8x384xf32>
    %cst_46 = arith.constant 5.000000e-01 : f32
    %113 = vector.broadcast %cst_46 : f32 to vector<8x384xf32>
    %114 = arith.mulf %113, %112 : vector<8x384xf32>
    %cst_47 = arith.constant 5.000000e-01 : f32
    %115 = vector.broadcast %cst_47 : f32 to vector<8x384xf32>
    %116 = arith.addf %114, %115 : vector<8x384xf32>
    %117 = vector.extract_strided_slice %108 {offsets = [0, 384], sizes = [8, 128], strides = [1, 1]} : vector<8x512xf32> to vector<8x128xf32>
    %118 = math.tanh %117 : vector<8x128xf32>
    %119 = vector.extract_strided_slice %116 {offsets = [0, 0], sizes = [8, 128], strides = [1, 1]} : vector<8x384xf32> to vector<8x128xf32>
    %120 = vector.extract_strided_slice %116 {offsets = [0, 128], sizes = [8, 128], strides = [1, 1]} : vector<8x384xf32> to vector<8x128xf32>
    %121 = vector.extract_strided_slice %116 {offsets = [0, 256], sizes = [8, 128], strides = [1, 1]} : vector<8x384xf32> to vector<8x128xf32>
    %122 = arith.mulf %120, %101 : vector<8x128xf32>
    %123 = arith.mulf %119, %118 : vector<8x128xf32>
    %124 = arith.addf %122, %123 : vector<8x128xf32>
    %125 = math.tanh %124 : vector<8x128xf32>
    %126 = arith.mulf %121, %125 : vector<8x128xf32>
    %c32_48 = arith.constant 32 : index
    %c0_49 = arith.constant 0 : index
    %127 = vector.load %arg8[%c32_48, %c0_49] : memref<64x128xf32, #tpu.memory_space<vmem>>, vector<8x128xf32>
    tpu.vector_store %arg8[%c32_48, %c0_49], %126 {strides = array<i32>} : memref<64x128xf32, #tpu.memory_space<vmem>>, vector<8x128xf32>,
    %c40 = arith.constant 40 : index
    %c0_50 = arith.constant 0 : index
    %128 = vector.load %arg11[%c40, %c0_50] : memref<64x512xf32, #tpu.memory_space<vmem>>, vector<8x512xf32>
    %129 = arith.truncf %126 : vector<8x128xf32> to vector<8x128xbf16>
    %cst_51 = arith.constant dense<0.000000e+00> : vector<8x512xf32>
    %130 = tpu.matmul %129, %10, %cst_51 {dimension_numbers = #tpu.dot_dimension_numbers<[1], [0], [0], [1], [0, 0, 1, 1], [], []>} : vector<8x128xbf16>, vector<128x512xbf16>, vector<8x512xf32> -> vector<8x512xf32>
    %131 = arith.addf %128, %130 : vector<8x512xf32>
    %132 = vector.extract_strided_slice %131 {offsets = [0, 0], sizes = [8, 384], strides = [1, 1]} : vector<8x512xf32> to vector<8x384xf32>
    %cst_52 = arith.constant 5.000000e-01 : f32
    %133 = vector.broadcast %cst_52 : f32 to vector<8x384xf32>
    %134 = arith.mulf %133, %132 : vector<8x384xf32>
    %135 = math.tanh %134 : vector<8x384xf32>
    %cst_53 = arith.constant 5.000000e-01 : f32
    %136 = vector.broadcast %cst_53 : f32 to vector<8x384xf32>
    %137 = arith.mulf %136, %135 : vector<8x384xf32>
    %cst_54 = arith.constant 5.000000e-01 : f32
    %138 = vector.broadcast %cst_54 : f32 to vector<8x384xf32>
    %139 = arith.addf %137, %138 : vector<8x384xf32>
    %140 = vector.extract_strided_slice %131 {offsets = [0, 384], sizes = [8, 128], strides = [1, 1]} : vector<8x512xf32> to vector<8x128xf32>
    %141 = math.tanh %140 : vector<8x128xf32>
    %142 = vector.extract_strided_slice %139 {offsets = [0, 0], sizes = [8, 128], strides = [1, 1]} : vector<8x384xf32> to vector<8x128xf32>
    %143 = vector.extract_strided_slice %139 {offsets = [0, 128], sizes = [8, 128], strides = [1, 1]} : vector<8x384xf32> to vector<8x128xf32>
    %144 = vector.extract_strided_slice %139 {offsets = [0, 256], sizes = [8, 128], strides = [1, 1]} : vector<8x384xf32> to vector<8x128xf32>
    %145 = arith.mulf %143, %124 : vector<8x128xf32>
    %146 = arith.mulf %142, %141 : vector<8x128xf32>
    %147 = arith.addf %145, %146 : vector<8x128xf32>
    %148 = math.tanh %147 : vector<8x128xf32>
    %149 = arith.mulf %144, %148 : vector<8x128xf32>
    %c40_55 = arith.constant 40 : index
    %c0_56 = arith.constant 0 : index
    %150 = vector.load %arg8[%c40_55, %c0_56] : memref<64x128xf32, #tpu.memory_space<vmem>>, vector<8x128xf32>
    tpu.vector_store %arg8[%c40_55, %c0_56], %149 {strides = array<i32>} : memref<64x128xf32, #tpu.memory_space<vmem>>, vector<8x128xf32>,
    %c48 = arith.constant 48 : index
    %c0_57 = arith.constant 0 : index
    %151 = vector.load %arg11[%c48, %c0_57] : memref<64x512xf32, #tpu.memory_space<vmem>>, vector<8x512xf32>
    %152 = arith.truncf %149 : vector<8x128xf32> to vector<8x128xbf16>
    %cst_58 = arith.constant dense<0.000000e+00> : vector<8x512xf32>
    %153 = tpu.matmul %152, %10, %cst_58 {dimension_numbers = #tpu.dot_dimension_numbers<[1], [0], [0], [1], [0, 0, 1, 1], [], []>} : vector<8x128xbf16>, vector<128x512xbf16>, vector<8x512xf32> -> vector<8x512xf32>
    %154 = arith.addf %151, %153 : vector<8x512xf32>
    %155 = vector.extract_strided_slice %154 {offsets = [0, 0], sizes = [8, 384], strides = [1, 1]} : vector<8x512xf32> to vector<8x384xf32>
    %cst_59 = arith.constant 5.000000e-01 : f32
    %156 = vector.broadcast %cst_59 : f32 to vector<8x384xf32>
    %157 = arith.mulf %156, %155 : vector<8x384xf32>
    %158 = math.tanh %157 : vector<8x384xf32>
    %cst_60 = arith.constant 5.000000e-01 : f32
    %159 = vector.broadcast %cst_60 : f32 to vector<8x384xf32>
    %160 = arith.mulf %159, %158 : vector<8x384xf32>
    %cst_61 = arith.constant 5.000000e-01 : f32
    %161 = vector.broadcast %cst_61 : f32 to vector<8x384xf32>
    %162 = arith.addf %160, %161 : vector<8x384xf32>
    %163 = vector.extract_strided_slice %154 {offsets = [0, 384], sizes = [8, 128], strides = [1, 1]} : vector<8x512xf32> to vector<8x128xf32>
    %164 = math.tanh %163 : vector<8x128xf32>
    %165 = vector.extract_strided_slice %162 {offsets = [0, 0], sizes = [8, 128], strides = [1, 1]} : vector<8x384xf32> to vector<8x128xf32>
    %166 = vector.extract_strided_slice %162 {offsets = [0, 128], sizes = [8, 128], strides = [1, 1]} : vector<8x384xf32> to vector<8x128xf32>
    %167 = vector.extract_strided_slice %162 {offsets = [0, 256], sizes = [8, 128], strides = [1, 1]} : vector<8x384xf32> to vector<8x128xf32>
    %168 = arith.mulf %166, %147 : vector<8x128xf32>
    %169 = arith.mulf %165, %164 : vector<8x128xf32>
    %170 = arith.addf %168, %169 : vector<8x128xf32>
    %171 = math.tanh %170 : vector<8x128xf32>
    %172 = arith.mulf %167, %171 : vector<8x128xf32>
    %c48_62 = arith.constant 48 : index
    %c0_63 = arith.constant 0 : index
    %173 = vector.load %arg8[%c48_62, %c0_63] : memref<64x128xf32, #tpu.memory_space<vmem>>, vector<8x128xf32>
    tpu.vector_store %arg8[%c48_62, %c0_63], %172 {strides = array<i32>} : memref<64x128xf32, #tpu.memory_space<vmem>>, vector<8x128xf32>,
    %c56 = arith.constant 56 : index
    %c0_64 = arith.constant 0 : index
    %174 = vector.load %arg11[%c56, %c0_64] : memref<64x512xf32, #tpu.memory_space<vmem>>, vector<8x512xf32>
    %175 = arith.truncf %172 : vector<8x128xf32> to vector<8x128xbf16>
    %cst_65 = arith.constant dense<0.000000e+00> : vector<8x512xf32>
    %176 = tpu.matmul %175, %10, %cst_65 {dimension_numbers = #tpu.dot_dimension_numbers<[1], [0], [0], [1], [0, 0, 1, 1], [], []>} : vector<8x128xbf16>, vector<128x512xbf16>, vector<8x512xf32> -> vector<8x512xf32>
    %177 = arith.addf %174, %176 : vector<8x512xf32>
    %178 = vector.extract_strided_slice %177 {offsets = [0, 0], sizes = [8, 384], strides = [1, 1]} : vector<8x512xf32> to vector<8x384xf32>
    %cst_66 = arith.constant 5.000000e-01 : f32
    %179 = vector.broadcast %cst_66 : f32 to vector<8x384xf32>
    %180 = arith.mulf %179, %178 : vector<8x384xf32>
    %181 = math.tanh %180 : vector<8x384xf32>
    %cst_67 = arith.constant 5.000000e-01 : f32
    %182 = vector.broadcast %cst_67 : f32 to vector<8x384xf32>
    %183 = arith.mulf %182, %181 : vector<8x384xf32>
    %cst_68 = arith.constant 5.000000e-01 : f32
    %184 = vector.broadcast %cst_68 : f32 to vector<8x384xf32>
    %185 = arith.addf %183, %184 : vector<8x384xf32>
    %186 = vector.extract_strided_slice %177 {offsets = [0, 384], sizes = [8, 128], strides = [1, 1]} : vector<8x512xf32> to vector<8x128xf32>
    %187 = math.tanh %186 : vector<8x128xf32>
    %188 = vector.extract_strided_slice %185 {offsets = [0, 0], sizes = [8, 128], strides = [1, 1]} : vector<8x384xf32> to vector<8x128xf32>
    %189 = vector.extract_strided_slice %185 {offsets = [0, 128], sizes = [8, 128], strides = [1, 1]} : vector<8x384xf32> to vector<8x128xf32>
    %190 = vector.extract_strided_slice %185 {offsets = [0, 256], sizes = [8, 128], strides = [1, 1]} : vector<8x384xf32> to vector<8x128xf32>
    %191 = arith.mulf %189, %170 : vector<8x128xf32>
    %192 = arith.mulf %188, %187 : vector<8x128xf32>
    %193 = arith.addf %191, %192 : vector<8x128xf32>
    %194 = math.tanh %193 : vector<8x128xf32>
    %195 = arith.mulf %190, %194 : vector<8x128xf32>
    %c56_69 = arith.constant 56 : index
    %c0_70 = arith.constant 0 : index
    %196 = vector.load %arg8[%c56_69, %c0_70] : memref<64x128xf32, #tpu.memory_space<vmem>>, vector<8x128xf32>
    tpu.vector_store %arg8[%c56_69, %c0_70], %195 {strides = array<i32>} : memref<64x128xf32, #tpu.memory_space<vmem>>, vector<8x128xf32>,
    %c0_i32_71 = arith.constant 0 : i32
    %197 = arith.cmpi eq, %arg1, %c0_i32_71 : i32
    %198 = arith.extui %197 : i1 to i32
    %c0_i32_72 = arith.constant 0 : i32
    %199 = arith.cmpi ne, %198, %c0_i32_72 : i32
    scf.if %199 {
      %c0_77 = arith.constant 0 : index
      %c0_78 = arith.constant 0 : index
      %202 = vector.load %arg9[%c0_77, %c0_78] : memref<8x128xf32, #tpu.memory_space<vmem>>, vector<8x128xf32>
      tpu.vector_store %arg9[%c0_77, %c0_78], %195 {strides = array<i32>} : memref<8x128xf32, #tpu.memory_space<vmem>>, vector<8x128xf32>,
      %c0_79 = arith.constant 0 : index
      %c0_80 = arith.constant 0 : index
      %203 = vector.load %arg10[%c0_79, %c0_80] : memref<8x128xf32, #tpu.memory_space<vmem>>, vector<8x128xf32>
      tpu.vector_store %arg10[%c0_79, %c0_80], %193 {strides = array<i32>} : memref<8x128xf32, #tpu.memory_space<vmem>>, vector<8x128xf32>,
    } else {
    }
    %c0_73 = arith.constant 0 : index
    %c0_74 = arith.constant 0 : index
    %200 = vector.load %arg12[%c0_73, %c0_74] : memref<8x128xf32, #tpu.memory_space<vmem>>, vector<8x128xf32>
    tpu.vector_store %arg12[%c0_73, %c0_74], %195 {strides = array<i32>} : memref<8x128xf32, #tpu.memory_space<vmem>>, vector<8x128xf32>,
    %c0_75 = arith.constant 0 : index
    %c0_76 = arith.constant 0 : index
    %201 = vector.load %arg13[%c0_75, %c0_76] : memref<8x128xf32, #tpu.memory_space<vmem>>, vector<8x128xf32>
    tpu.vector_store %arg13[%c0_75, %c0_76], %193 {strides = array<i32>} : memref<8x128xf32, #tpu.memory_space<vmem>>, vector<8x128xf32>,
    return
  }
  func.func @transform_0(%arg0: i32, %arg1: i32) -> (i32, i32) {
    %c1_i32 = arith.constant 1 : i32
    %0 = arith.muli %arg0, %c1_i32 : i32
    %1 = arith.addi %0, %arg1 : i32
    %c0_i32 = arith.constant 0 : i32
    %c0_i32_0 = arith.constant 0 : i32
    return %1, %c0_i32 : i32, i32
  }
  func.func @transform_1(%arg0: i32, %arg1: i32) -> (i32, i32) {
    %c0_i32 = arith.constant 0 : i32
    %c0_i32_0 = arith.constant 0 : i32
    %c0_i32_1 = arith.constant 0 : i32
    return %c0_i32, %c0_i32_0 : i32, i32
  }
  func.func @transform_2(%arg0: i32, %arg1: i32) -> (i32, i32) {
    %c0_i32 = arith.constant 0 : i32
    %c0_i32_0 = arith.constant 0 : i32
    %c0_i32_1 = arith.constant 0 : i32
    return %c0_i32, %c0_i32_0 : i32, i32
  }
  func.func @transform_3(%arg0: i32, %arg1: i32) -> (i32, i32) {
    %c0_i32 = arith.constant 0 : i32
    %c0_i32_0 = arith.constant 0 : i32
    %c0_i32_1 = arith.constant 0 : i32
    return %c0_i32, %c0_i32_0 : i32, i32
  }
  func.func @transform_4(%arg0: i32, %arg1: i32) -> (i32, i32) {
    %c0_i32 = arith.constant 0 : i32
    %c0_i32_0 = arith.constant 0 : i32
    return %arg0, %c0_i32 : i32, i32
  }
  func.func @transform_5(%arg0: i32, %arg1: i32) -> (i32, i32) {
    %c0_i32 = arith.constant 0 : i32
    %c0_i32_0 = arith.constant 0 : i32
    return %arg0, %c0_i32 : i32, i32
  }
  func.func @transform_6(%arg0: i32, %arg1: i32) -> (i32, i32) {
    %c1_i32 = arith.constant 1 : i32
    %0 = arith.muli %arg0, %c1_i32 : i32
    %1 = arith.addi %0, %arg1 : i32
    %c0_i32 = arith.constant 0 : i32
    %c0_i32_0 = arith.constant 0 : i32
    return %1, %c0_i32 : i32, i32
  }
  func.func @transform_7(%arg0: i32, %arg1: i32) -> (i32, i32) {
    %c0_i32 = arith.constant 0 : i32
    %c0_i32_0 = arith.constant 0 : i32
    return %arg0, %c0_i32 : i32, i32
  }
  func.func @transform_8(%arg0: i32, %arg1: i32) -> (i32, i32) {
    %c0_i32 = arith.constant 0 : i32
    %c0_i32_0 = arith.constant 0 : i32
    return %arg0, %c0_i32 : i32, i32
  }
}

module attributes {stable_mosaic.version = 11 : i64} {
  func.func @_lstm_kernel(%arg0: i32, %arg1: i32, %arg2: memref<64x16xbf16, #tpu.memory_space<vmem>>, %arg3: memref<16x512xbf16, #tpu.memory_space<vmem>>, %arg4: memref<128x512xbf16, #tpu.memory_space<vmem>>, %arg5: memref<1x512xf32, #tpu.memory_space<vmem>>, %arg6: memref<8x128xf32, #tpu.memory_space<vmem>>, %arg7: memref<8x128xf32, #tpu.memory_space<vmem>>, %arg8: memref<64x128xf32, #tpu.memory_space<vmem>>, %arg9: memref<8x128xf32, #tpu.memory_space<vmem>>, %arg10: memref<8x128xf32, #tpu.memory_space<vmem>>, %arg11: memref<64x512xf32, #tpu.memory_space<vmem>>, %arg12: memref<8x128xf32, #tpu.memory_space<vmem>>, %arg13: memref<8x128xf32, #tpu.memory_space<vmem>>) attributes {dimension_semantics = [#tpu.dimension_semantics<parallel>, #tpu.dimension_semantics<arbitrary>], iteration_bounds = array<i64: 1, 1>, scalar_prefetch = 0 : i64, scratch_operands = 3 : i64, tpu.core_type = #tpu.core_type<tc>, window_params = [{transform_indices = @transform_0, window_bounds = array<i64: 64, 16>}, {pipeline_mode = #tpu.pipeline_mode<synchronous>, transform_indices = @transform_1, window_bounds = array<i64: 16, 512>}, {pipeline_mode = #tpu.pipeline_mode<synchronous>, transform_indices = @transform_2, window_bounds = array<i64: 128, 512>}, {pipeline_mode = #tpu.pipeline_mode<synchronous>, transform_indices = @transform_3, window_bounds = array<i64: 1, 512>}, {transform_indices = @transform_4, window_bounds = array<i64: 8, 128>}, {transform_indices = @transform_5, window_bounds = array<i64: 8, 128>}, {transform_indices = @transform_6, window_bounds = array<i64: 64, 128>}, {transform_indices = @transform_7, window_bounds = array<i64: 8, 128>}, {transform_indices = @transform_8, window_bounds = array<i64: 8, 128>}]} {
    %c0_i32 = arith.constant 0 : i32
    %0 = arith.cmpi eq, %arg1, %c0_i32 : i32
    %1 = arith.extui %0 : i1 to i32
    %c0_i32_0 = arith.constant 0 : i32
    %2 = arith.cmpi ne, %1, %c0_i32_0 : i32
    scf.if %2 {
      %c0_77 = arith.constant 0 : index
      %c0_78 = arith.constant 0 : index
      %202 = vector.load %arg6[%c0_77, %c0_78] : memref<8x128xf32, #tpu.memory_space<vmem>>, vector<8x128xf32>
      %c0_79 = arith.constant 0 : index
      %c0_80 = arith.constant 0 : index
      %203 = vector.load %arg12[%c0_79, %c0_80] : memref<8x128xf32, #tpu.memory_space<vmem>>, vector<8x128xf32>
      tpu.vector_store %arg12[%c0_79, %c0_80], %202 {strides = array<i32>} : memref<8x128xf32, #tpu.memory_space<vmem>>, vector<8x128xf32>,
      %c0_81 = arith.constant 0 : index
      %c0_82 = arith.constant 0 : index
      %204 = vector.load %arg7[%c0_81, %c0_82] : memref<8x128xf32, #tpu.memory_space<vmem>>, vector<8x128xf32>
      %c0_83 = arith.constant 0 : index
      %c0_84 = arith.constant 0 : index
      %205 = vector.load %arg13[%c0_83, %c0_84] : memref<8x128xf32, #tpu.memory_space<vmem>>, vector<8x128xf32>
      tpu.vector_store %arg13[%c0_83, %c0_84], %204 {strides = array<i32>} : memref<8x128xf32, #tpu.memory_space<vmem>>, vector<8x128xf32>,
    } else {
    }
    %c0 = arith.constant 0 : index
    %c0_1 = arith.constant 0 : index
    %3 = vector.load %arg2[%c0, %c0_1] : memref<64x16xbf16, #tpu.memory_space<vmem>>, vector<64x16xbf16>
    %c0_2 = arith.constant 0 : index
    %c0_3 = arith.constant 0 : index
    %4 = vector.load %arg3[%c0_2, %c0_3] : memref<16x512xbf16, #tpu.memory_space<vmem>>, vector<16x512xbf16>
    %cst = arith.constant dense<0.000000e+00> : vector<64x512xf32>
    %5 = tpu.matmul %3, %4, %cst {dimension_numbers = #tpu.dot_dimension_numbers<[1], [0], [0], [1], [0, 0, 1, 1], [], []>} : vector<64x16xbf16>, vector<16x512xbf16>, vector<64x512xf32> -> vector<64x512xf32>
    %c0_4 = arith.constant 0 : index
    %c0_5 = arith.constant 0 : index
    %6 = vector.load %arg5[%c0_4, %c0_5] : memref<1x512xf32, #tpu.memory_space<vmem>>, vector<1x512xf32>
    %7 = vector.broadcast %6 : vector<1x512xf32> to vector<64x512xf32>
    %8 = arith.addf %5, %7 : vector<64x512xf32>
    %c0_6 = arith.constant 0 : index
    %c0_7 = arith.constant 0 : index
    %9 = vector.load %arg11[%c0_6, %c0_7] : memref<64x512xf32, #tpu.memory_space<vmem>>, vector<64x512xf32>
    tpu.vector_store %arg11[%c0_6, %c0_7], %8 {strides = array<i32>} : memref<64x512xf32, #tpu.memory_space<vmem>>, vector<64x512xf32>,
    %c0_8 = arith.constant 0 : index
    %c0_9 = arith.constant 0 : index
    %10 = vector.load %arg4[%c0_8, %c0_9] : memref<128x512xbf16, #tpu.memory_space<vmem>>, vector<128x512xbf16>
    %c0_10 = arith.constant 0 : index
    %c0_11 = arith.constant 0 : index
    %11 = vector.load %arg12[%c0_10, %c0_11] : memref<8x128xf32, #tpu.memory_space<vmem>>, vector<8x128xf32>
    %c0_12 = arith.constant 0 : index
    %c0_13 = arith.constant 0 : index
    %12 = vector.load %arg13[%c0_12, %c0_13] : memref<8x128xf32, #tpu.memory_space<vmem>>, vector<8x128xf32>
    %c0_14 = arith.constant 0 : index
    %c0_15 = arith.constant 0 : index
    %13 = vector.load %arg11[%c0_14, %c0_15] : memref<64x512xf32, #tpu.memory_space<vmem>>, vector<8x512xf32>
    %14 = arith.truncf %11 : vector<8x128xf32> to vector<8x128xbf16>
    %cst_16 = arith.constant dense<0.000000e+00> : vector<8x512xf32>
    %15 = tpu.matmul %14, %10, %cst_16 {dimension_numbers = #tpu.dot_dimension_numbers<[1], [0], [0], [1], [0, 0, 1, 1], [], []>} : vector<8x128xbf16>, vector<128x512xbf16>, vector<8x512xf32> -> vector<8x512xf32>
    %16 = arith.addf %13, %15 : vector<8x512xf32>
    %17 = vector.extract_strided_slice %16 {offsets = [0, 0], sizes = [8, 384], strides = [1, 1]} : vector<8x512xf32> to vector<8x384xf32>
    %cst_17 = arith.constant 5.000000e-01 : f32
    %18 = vector.broadcast %cst_17 : f32 to vector<8x384xf32>
    %19 = arith.mulf %18, %17 : vector<8x384xf32>
    %20 = math.tanh %19 : vector<8x384xf32>
    %cst_18 = arith.constant 5.000000e-01 : f32
    %21 = vector.broadcast %cst_18 : f32 to vector<8x384xf32>
    %22 = arith.mulf %21, %20 : vector<8x384xf32>
    %cst_19 = arith.constant 5.000000e-01 : f32
    %23 = vector.broadcast %cst_19 : f32 to vector<8x384xf32>
    %24 = arith.addf %22, %23 : vector<8x384xf32>
    %25 = vector.extract_strided_slice %16 {offsets = [0, 384], sizes = [8, 128], strides = [1, 1]} : vector<8x512xf32> to vector<8x128xf32>
    %26 = math.tanh %25 : vector<8x128xf32>
    %27 = vector.extract_strided_slice %24 {offsets = [0, 0], sizes = [8, 128], strides = [1, 1]} : vector<8x384xf32> to vector<8x128xf32>
    %28 = vector.extract_strided_slice %24 {offsets = [0, 128], sizes = [8, 128], strides = [1, 1]} : vector<8x384xf32> to vector<8x128xf32>
    %29 = vector.extract_strided_slice %24 {offsets = [0, 256], sizes = [8, 128], strides = [1, 1]} : vector<8x384xf32> to vector<8x128xf32>
    %30 = arith.mulf %28, %12 : vector<8x128xf32>
    %31 = arith.mulf %27, %26 : vector<8x128xf32>
    %32 = arith.addf %30, %31 : vector<8x128xf32>
    %33 = math.tanh %32 : vector<8x128xf32>
    %34 = arith.mulf %29, %33 : vector<8x128xf32>
    %c0_20 = arith.constant 0 : index
    %c0_21 = arith.constant 0 : index
    %35 = vector.load %arg8[%c0_20, %c0_21] : memref<64x128xf32, #tpu.memory_space<vmem>>, vector<8x128xf32>
    tpu.vector_store %arg8[%c0_20, %c0_21], %34 {strides = array<i32>} : memref<64x128xf32, #tpu.memory_space<vmem>>, vector<8x128xf32>,
    %c8 = arith.constant 8 : index
    %c0_22 = arith.constant 0 : index
    %36 = vector.load %arg11[%c8, %c0_22] : memref<64x512xf32, #tpu.memory_space<vmem>>, vector<8x512xf32>
    %37 = arith.truncf %34 : vector<8x128xf32> to vector<8x128xbf16>
    %cst_23 = arith.constant dense<0.000000e+00> : vector<8x512xf32>
    %38 = tpu.matmul %37, %10, %cst_23 {dimension_numbers = #tpu.dot_dimension_numbers<[1], [0], [0], [1], [0, 0, 1, 1], [], []>} : vector<8x128xbf16>, vector<128x512xbf16>, vector<8x512xf32> -> vector<8x512xf32>
    %39 = arith.addf %36, %38 : vector<8x512xf32>
    %40 = vector.extract_strided_slice %39 {offsets = [0, 0], sizes = [8, 384], strides = [1, 1]} : vector<8x512xf32> to vector<8x384xf32>
    %cst_24 = arith.constant 5.000000e-01 : f32
    %41 = vector.broadcast %cst_24 : f32 to vector<8x384xf32>
    %42 = arith.mulf %41, %40 : vector<8x384xf32>
    %43 = math.tanh %42 : vector<8x384xf32>
    %cst_25 = arith.constant 5.000000e-01 : f32
    %44 = vector.broadcast %cst_25 : f32 to vector<8x384xf32>
    %45 = arith.mulf %44, %43 : vector<8x384xf32>
    %cst_26 = arith.constant 5.000000e-01 : f32
    %46 = vector.broadcast %cst_26 : f32 to vector<8x384xf32>
    %47 = arith.addf %45, %46 : vector<8x384xf32>
    %48 = vector.extract_strided_slice %39 {offsets = [0, 384], sizes = [8, 128], strides = [1, 1]} : vector<8x512xf32> to vector<8x128xf32>
    %49 = math.tanh %48 : vector<8x128xf32>
    %50 = vector.extract_strided_slice %47 {offsets = [0, 0], sizes = [8, 128], strides = [1, 1]} : vector<8x384xf32> to vector<8x128xf32>
    %51 = vector.extract_strided_slice %47 {offsets = [0, 128], sizes = [8, 128], strides = [1, 1]} : vector<8x384xf32> to vector<8x128xf32>
    %52 = vector.extract_strided_slice %47 {offsets = [0, 256], sizes = [8, 128], strides = [1, 1]} : vector<8x384xf32> to vector<8x128xf32>
    %53 = arith.mulf %51, %32 : vector<8x128xf32>
    %54 = arith.mulf %50, %49 : vector<8x128xf32>
    %55 = arith.addf %53, %54 : vector<8x128xf32>
    %56 = math.tanh %55 : vector<8x128xf32>
    %57 = arith.mulf %52, %56 : vector<8x128xf32>
    %c8_27 = arith.constant 8 : index
    %c0_28 = arith.constant 0 : index
    %58 = vector.load %arg8[%c8_27, %c0_28] : memref<64x128xf32, #tpu.memory_space<vmem>>, vector<8x128xf32>
    tpu.vector_store %arg8[%c8_27, %c0_28], %57 {strides = array<i32>} : memref<64x128xf32, #tpu.memory_space<vmem>>, vector<8x128xf32>,
    %c16 = arith.constant 16 : index
    %c0_29 = arith.constant 0 : index
    %59 = vector.load %arg11[%c16, %c0_29] : memref<64x512xf32, #tpu.memory_space<vmem>>, vector<8x512xf32>
    %60 = arith.truncf %57 : vector<8x128xf32> to vector<8x128xbf16>
    %cst_30 = arith.constant dense<0.000000e+00> : vector<8x512xf32>
    %61 = tpu.matmul %60, %10, %cst_30 {dimension_numbers = #tpu.dot_dimension_numbers<[1], [0], [0], [1], [0, 0, 1, 1], [], []>} : vector<8x128xbf16>, vector<128x512xbf16>, vector<8x512xf32> -> vector<8x512xf32>
    %62 = arith.addf %59, %61 : vector<8x512xf32>
    %63 = vector.extract_strided_slice %62 {offsets = [0, 0], sizes = [8, 384], strides = [1, 1]} : vector<8x512xf32> to vector<8x384xf32>
    %cst_31 = arith.constant 5.000000e-01 : f32
    %64 = vector.broadcast %cst_31 : f32 to vector<8x384xf32>
    %65 = arith.mulf %64, %63 : vector<8x384xf32>
    %66 = math.tanh %65 : vector<8x384xf32>
    %cst_32 = arith.constant 5.000000e-01 : f32
    %67 = vector.broadcast %cst_32 : f32 to vector<8x384xf32>
    %68 = arith.mulf %67, %66 : vector<8x384xf32>
    %cst_33 = arith.constant 5.000000e-01 : f32
    %69 = vector.broadcast %cst_33 : f32 to vector<8x384xf32>
    %70 = arith.addf %68, %69 : vector<8x384xf32>
    %71 = vector.extract_strided_slice %62 {offsets = [0, 384], sizes = [8, 128], strides = [1, 1]} : vector<8x512xf32> to vector<8x128xf32>
    %72 = math.tanh %71 : vector<8x128xf32>
    %73 = vector.extract_strided_slice %70 {offsets = [0, 0], sizes = [8, 128], strides = [1, 1]} : vector<8x384xf32> to vector<8x128xf32>
    %74 = vector.extract_strided_slice %70 {offsets = [0, 128], sizes = [8, 128], strides = [1, 1]} : vector<8x384xf32> to vector<8x128xf32>
    %75 = vector.extract_strided_slice %70 {offsets = [0, 256], sizes = [8, 128], strides = [1, 1]} : vector<8x384xf32> to vector<8x128xf32>
    %76 = arith.mulf %74, %55 : vector<8x128xf32>
    %77 = arith.mulf %73, %72 : vector<8x128xf32>
    %78 = arith.addf %76, %77 : vector<8x128xf32>
    %79 = math.tanh %78 : vector<8x128xf32>
    %80 = arith.mulf %75, %79 : vector<8x128xf32>
    %c16_34 = arith.constant 16 : index
    %c0_35 = arith.constant 0 : index
    %81 = vector.load %arg8[%c16_34, %c0_35] : memref<64x128xf32, #tpu.memory_space<vmem>>, vector<8x128xf32>
    tpu.vector_store %arg8[%c16_34, %c0_35], %80 {strides = array<i32>} : memref<64x128xf32, #tpu.memory_space<vmem>>, vector<8x128xf32>,
    %c24 = arith.constant 24 : index
    %c0_36 = arith.constant 0 : index
    %82 = vector.load %arg11[%c24, %c0_36] : memref<64x512xf32, #tpu.memory_space<vmem>>, vector<8x512xf32>
    %83 = arith.truncf %80 : vector<8x128xf32> to vector<8x128xbf16>
    %cst_37 = arith.constant dense<0.000000e+00> : vector<8x512xf32>
    %84 = tpu.matmul %83, %10, %cst_37 {dimension_numbers = #tpu.dot_dimension_numbers<[1], [0], [0], [1], [0, 0, 1, 1], [], []>} : vector<8x128xbf16>, vector<128x512xbf16>, vector<8x512xf32> -> vector<8x512xf32>
    %85 = arith.addf %82, %84 : vector<8x512xf32>
    %86 = vector.extract_strided_slice %85 {offsets = [0, 0], sizes = [8, 384], strides = [1, 1]} : vector<8x512xf32> to vector<8x384xf32>
    %cst_38 = arith.constant 5.000000e-01 : f32
    %87 = vector.broadcast %cst_38 : f32 to vector<8x384xf32>
    %88 = arith.mulf %87, %86 : vector<8x384xf32>
    %89 = math.tanh %88 : vector<8x384xf32>
    %cst_39 = arith.constant 5.000000e-01 : f32
    %90 = vector.broadcast %cst_39 : f32 to vector<8x384xf32>
    %91 = arith.mulf %90, %89 : vector<8x384xf32>
    %cst_40 = arith.constant 5.000000e-01 : f32
    %92 = vector.broadcast %cst_40 : f32 to vector<8x384xf32>
    %93 = arith.addf %91, %92 : vector<8x384xf32>
    %94 = vector.extract_strided_slice %85 {offsets = [0, 384], sizes = [8, 128], strides = [1, 1]} : vector<8x512xf32> to vector<8x128xf32>
    %95 = math.tanh %94 : vector<8x128xf32>
    %96 = vector.extract_strided_slice %93 {offsets = [0, 0], sizes = [8, 128], strides = [1, 1]} : vector<8x384xf32> to vector<8x128xf32>
    %97 = vector.extract_strided_slice %93 {offsets = [0, 128], sizes = [8, 128], strides = [1, 1]} : vector<8x384xf32> to vector<8x128xf32>
    %98 = vector.extract_strided_slice %93 {offsets = [0, 256], sizes = [8, 128], strides = [1, 1]} : vector<8x384xf32> to vector<8x128xf32>
    %99 = arith.mulf %97, %78 : vector<8x128xf32>
    %100 = arith.mulf %96, %95 : vector<8x128xf32>
    %101 = arith.addf %99, %100 : vector<8x128xf32>
    %102 = math.tanh %101 : vector<8x128xf32>
    %103 = arith.mulf %98, %102 : vector<8x128xf32>
    %c24_41 = arith.constant 24 : index
    %c0_42 = arith.constant 0 : index
    %104 = vector.load %arg8[%c24_41, %c0_42] : memref<64x128xf32, #tpu.memory_space<vmem>>, vector<8x128xf32>
    tpu.vector_store %arg8[%c24_41, %c0_42], %103 {strides = array<i32>} : memref<64x128xf32, #tpu.memory_space<vmem>>, vector<8x128xf32>,
    %c32 = arith.constant 32 : index
    %c0_43 = arith.constant 0 : index
    %105 = vector.load %arg11[%c32, %c0_43] : memref<64x512xf32, #tpu.memory_space<vmem>>, vector<8x512xf32>
    %106 = arith.truncf %103 : vector<8x128xf32> to vector<8x128xbf16>
    %cst_44 = arith.constant dense<0.000000e+00> : vector<8x512xf32>
    %107 = tpu.matmul %106, %10, %cst_44 {dimension_numbers = #tpu.dot_dimension_numbers<[1], [0], [0], [1], [0, 0, 1, 1], [], []>} : vector<8x128xbf16>, vector<128x512xbf16>, vector<8x512xf32> -> vector<8x512xf32>
    %108 = arith.addf %105, %107 : vector<8x512xf32>
    %109 = vector.extract_strided_slice %108 {offsets = [0, 0], sizes = [8, 384], strides = [1, 1]} : vector<8x512xf32> to vector<8x384xf32>
    %cst_45 = arith.constant 5.000000e-01 : f32
    %110 = vector.broadcast %cst_45 : f32 to vector<8x384xf32>
    %111 = arith.mulf %110, %109 : vector<8x384xf32>
    %112 = math.tanh %111 : vector<8x384xf32>
    %cst_46 = arith.constant 5.000000e-01 : f32
    %113 = vector.broadcast %cst_46 : f32 to vector<8x384xf32>
    %114 = arith.mulf %113, %112 : vector<8x384xf32>
    %cst_47 = arith.constant 5.000000e-01 : f32
    %115 = vector.broadcast %cst_47 : f32 to vector<8x384xf32>
    %116 = arith.addf %114, %115 : vector<8x384xf32>
    %117 = vector.extract_strided_slice %108 {offsets = [0, 384], sizes = [8, 128], strides = [1, 1]} : vector<8x512xf32> to vector<8x128xf32>
    %118 = math.tanh %117 : vector<8x128xf32>
    %119 = vector.extract_strided_slice %116 {offsets = [0, 0], sizes = [8, 128], strides = [1, 1]} : vector<8x384xf32> to vector<8x128xf32>
    %120 = vector.extract_strided_slice %116 {offsets = [0, 128], sizes = [8, 128], strides = [1, 1]} : vector<8x384xf32> to vector<8x128xf32>
    %121 = vector.extract_strided_slice %116 {offsets = [0, 256], sizes = [8, 128], strides = [1, 1]} : vector<8x384xf32> to vector<8x128xf32>
    %122 = arith.mulf %120, %101 : vector<8x128xf32>
    %123 = arith.mulf %119, %118 : vector<8x128xf32>
    %124 = arith.addf %122, %123 : vector<8x128xf32>
    %125 = math.tanh %124 : vector<8x128xf32>
    %126 = arith.mulf %121, %125 : vector<8x128xf32>
    %c32_48 = arith.constant 32 : index
    %c0_49 = arith.constant 0 : index
    %127 = vector.load %arg8[%c32_48, %c0_49] : memref<64x128xf32, #tpu.memory_space<vmem>>, vector<8x128xf32>
    tpu.vector_store %arg8[%c32_48, %c0_49], %126 {strides = array<i32>} : memref<64x128xf32, #tpu.memory_space<vmem>>, vector<8x128xf32>,
    %c40 = arith.constant 40 : index
    %c0_50 = arith.constant 0 : index
    %128 = vector.load %arg11[%c40, %c0_50] : memref<64x512xf32, #tpu.memory_space<vmem>>, vector<8x512xf32>
    %129 = arith.truncf %126 : vector<8x128xf32> to vector<8x128xbf16>
    %cst_51 = arith.constant dense<0.000000e+00> : vector<8x512xf32>
    %130 = tpu.matmul %129, %10, %cst_51 {dimension_numbers = #tpu.dot_dimension_numbers<[1], [0], [0], [1], [0, 0, 1, 1], [], []>} : vector<8x128xbf16>, vector<128x512xbf16>, vector<8x512xf32> -> vector<8x512xf32>
    %131 = arith.addf %128, %130 : vector<8x512xf32>
    %132 = vector.extract_strided_slice %131 {offsets = [0, 0], sizes = [8, 384], strides = [1, 1]} : vector<8x512xf32> to vector<8x384xf32>
    %cst_52 = arith.constant 5.000000e-01 : f32
    %133 = vector.broadcast %cst_52 : f32 to vector<8x384xf32>
    %134 = arith.mulf %133, %132 : vector<8x384xf32>
    %135 = math.tanh %134 : vector<8x384xf32>
    %cst_53 = arith.constant 5.000000e-01 : f32
    %136 = vector.broadcast %cst_53 : f32 to vector<8x384xf32>
    %137 = arith.mulf %136, %135 : vector<8x384xf32>
    %cst_54 = arith.constant 5.000000e-01 : f32
    %138 = vector.broadcast %cst_54 : f32 to vector<8x384xf32>
    %139 = arith.addf %137, %138 : vector<8x384xf32>
    %140 = vector.extract_strided_slice %131 {offsets = [0, 384], sizes = [8, 128], strides = [1, 1]} : vector<8x512xf32> to vector<8x128xf32>
    %141 = math.tanh %140 : vector<8x128xf32>
    %142 = vector.extract_strided_slice %139 {offsets = [0, 0], sizes = [8, 128], strides = [1, 1]} : vector<8x384xf32> to vector<8x128xf32>
    %143 = vector.extract_strided_slice %139 {offsets = [0, 128], sizes = [8, 128], strides = [1, 1]} : vector<8x384xf32> to vector<8x128xf32>
    %144 = vector.extract_strided_slice %139 {offsets = [0, 256], sizes = [8, 128], strides = [1, 1]} : vector<8x384xf32> to vector<8x128xf32>
    %145 = arith.mulf %143, %124 : vector<8x128xf32>
    %146 = arith.mulf %142, %141 : vector<8x128xf32>
    %147 = arith.addf %145, %146 : vector<8x128xf32>
    %148 = math.tanh %147 : vector<8x128xf32>
    %149 = arith.mulf %144, %148 : vector<8x128xf32>
    %c40_55 = arith.constant 40 : index
    %c0_56 = arith.constant 0 : index
    %150 = vector.load %arg8[%c40_55, %c0_56] : memref<64x128xf32, #tpu.memory_space<vmem>>, vector<8x128xf32>
    tpu.vector_store %arg8[%c40_55, %c0_56], %149 {strides = array<i32>} : memref<64x128xf32, #tpu.memory_space<vmem>>, vector<8x128xf32>,
    %c48 = arith.constant 48 : index
    %c0_57 = arith.constant 0 : index
    %151 = vector.load %arg11[%c48, %c0_57] : memref<64x512xf32, #tpu.memory_space<vmem>>, vector<8x512xf32>
    %152 = arith.truncf %149 : vector<8x128xf32> to vector<8x128xbf16>
    %cst_58 = arith.constant dense<0.000000e+00> : vector<8x512xf32>
    %153 = tpu.matmul %152, %10, %cst_58 {dimension_numbers = #tpu.dot_dimension_numbers<[1], [0], [0], [1], [0, 0, 1, 1], [], []>} : vector<8x128xbf16>, vector<128x512xbf16>, vector<8x512xf32> -> vector<8x512xf32>
    %154 = arith.addf %151, %153 : vector<8x512xf32>
    %155 = vector.extract_strided_slice %154 {offsets = [0, 0], sizes = [8, 384], strides = [1, 1]} : vector<8x512xf32> to vector<8x384xf32>
    %cst_59 = arith.constant 5.000000e-01 : f32
    %156 = vector.broadcast %cst_59 : f32 to vector<8x384xf32>
    %157 = arith.mulf %156, %155 : vector<8x384xf32>
    %158 = math.tanh %157 : vector<8x384xf32>
    %cst_60 = arith.constant 5.000000e-01 : f32
    %159 = vector.broadcast %cst_60 : f32 to vector<8x384xf32>
    %160 = arith.mulf %159, %158 : vector<8x384xf32>
    %cst_61 = arith.constant 5.000000e-01 : f32
    %161 = vector.broadcast %cst_61 : f32 to vector<8x384xf32>
    %162 = arith.addf %160, %161 : vector<8x384xf32>
    %163 = vector.extract_strided_slice %154 {offsets = [0, 384], sizes = [8, 128], strides = [1, 1]} : vector<8x512xf32> to vector<8x128xf32>
    %164 = math.tanh %163 : vector<8x128xf32>
    %165 = vector.extract_strided_slice %162 {offsets = [0, 0], sizes = [8, 128], strides = [1, 1]} : vector<8x384xf32> to vector<8x128xf32>
    %166 = vector.extract_strided_slice %162 {offsets = [0, 128], sizes = [8, 128], strides = [1, 1]} : vector<8x384xf32> to vector<8x128xf32>
    %167 = vector.extract_strided_slice %162 {offsets = [0, 256], sizes = [8, 128], strides = [1, 1]} : vector<8x384xf32> to vector<8x128xf32>
    %168 = arith.mulf %166, %147 : vector<8x128xf32>
    %169 = arith.mulf %165, %164 : vector<8x128xf32>
    %170 = arith.addf %168, %169 : vector<8x128xf32>
    %171 = math.tanh %170 : vector<8x128xf32>
    %172 = arith.mulf %167, %171 : vector<8x128xf32>
    %c48_62 = arith.constant 48 : index
    %c0_63 = arith.constant 0 : index
    %173 = vector.load %arg8[%c48_62, %c0_63] : memref<64x128xf32, #tpu.memory_space<vmem>>, vector<8x128xf32>
    tpu.vector_store %arg8[%c48_62, %c0_63], %172 {strides = array<i32>} : memref<64x128xf32, #tpu.memory_space<vmem>>, vector<8x128xf32>,
    %c56 = arith.constant 56 : index
    %c0_64 = arith.constant 0 : index
    %174 = vector.load %arg11[%c56, %c0_64] : memref<64x512xf32, #tpu.memory_space<vmem>>, vector<8x512xf32>
    %175 = arith.truncf %172 : vector<8x128xf32> to vector<8x128xbf16>
    %cst_65 = arith.constant dense<0.000000e+00> : vector<8x512xf32>
    %176 = tpu.matmul %175, %10, %cst_65 {dimension_numbers = #tpu.dot_dimension_numbers<[1], [0], [0], [1], [0, 0, 1, 1], [], []>} : vector<8x128xbf16>, vector<128x512xbf16>, vector<8x512xf32> -> vector<8x512xf32>
    %177 = arith.addf %174, %176 : vector<8x512xf32>
    %178 = vector.extract_strided_slice %177 {offsets = [0, 0], sizes = [8, 384], strides = [1, 1]} : vector<8x512xf32> to vector<8x384xf32>
    %cst_66 = arith.constant 5.000000e-01 : f32
    %179 = vector.broadcast %cst_66 : f32 to vector<8x384xf32>
    %180 = arith.mulf %179, %178 : vector<8x384xf32>
    %181 = math.tanh %180 : vector<8x384xf32>
    %cst_67 = arith.constant 5.000000e-01 : f32
    %182 = vector.broadcast %cst_67 : f32 to vector<8x384xf32>
    %183 = arith.mulf %182, %181 : vector<8x384xf32>
    %cst_68 = arith.constant 5.000000e-01 : f32
    %184 = vector.broadcast %cst_68 : f32 to vector<8x384xf32>
    %185 = arith.addf %183, %184 : vector<8x384xf32>
    %186 = vector.extract_strided_slice %177 {offsets = [0, 384], sizes = [8, 128], strides = [1, 1]} : vector<8x512xf32> to vector<8x128xf32>
    %187 = math.tanh %186 : vector<8x128xf32>
    %188 = vector.extract_strided_slice %185 {offsets = [0, 0], sizes = [8, 128], strides = [1, 1]} : vector<8x384xf32> to vector<8x128xf32>
    %189 = vector.extract_strided_slice %185 {offsets = [0, 128], sizes = [8, 128], strides = [1, 1]} : vector<8x384xf32> to vector<8x128xf32>
    %190 = vector.extract_strided_slice %185 {offsets = [0, 256], sizes = [8, 128], strides = [1, 1]} : vector<8x384xf32> to vector<8x128xf32>
    %191 = arith.mulf %189, %170 : vector<8x128xf32>
    %192 = arith.mulf %188, %187 : vector<8x128xf32>
    %193 = arith.addf %191, %192 : vector<8x128xf32>
    %194 = math.tanh %193 : vector<8x128xf32>
    %195 = arith.mulf %190, %194 : vector<8x128xf32>
    %c56_69 = arith.constant 56 : index
    %c0_70 = arith.constant 0 : index
    %196 = vector.load %arg8[%c56_69, %c0_70] : memref<64x128xf32, #tpu.memory_space<vmem>>, vector<8x128xf32>
    tpu.vector_store %arg8[%c56_69, %c0_70], %195 {strides = array<i32>} : memref<64x128xf32, #tpu.memory_space<vmem>>, vector<8x128xf32>,
    %c0_i32_71 = arith.constant 0 : i32
    %197 = arith.cmpi eq, %arg1, %c0_i32_71 : i32
    %198 = arith.extui %197 : i1 to i32
    %c0_i32_72 = arith.constant 0 : i32
    %199 = arith.cmpi ne, %198, %c0_i32_72 : i32
    scf.if %199 {
      %c0_77 = arith.constant 0 : index
      %c0_78 = arith.constant 0 : index
      %202 = vector.load %arg9[%c0_77, %c0_78] : memref<8x128xf32, #tpu.memory_space<vmem>>, vector<8x128xf32>
      tpu.vector_store %arg9[%c0_77, %c0_78], %195 {strides = array<i32>} : memref<8x128xf32, #tpu.memory_space<vmem>>, vector<8x128xf32>,
      %c0_79 = arith.constant 0 : index
      %c0_80 = arith.constant 0 : index
      %203 = vector.load %arg10[%c0_79, %c0_80] : memref<8x128xf32, #tpu.memory_space<vmem>>, vector<8x128xf32>
      tpu.vector_store %arg10[%c0_79, %c0_80], %193 {strides = array<i32>} : memref<8x128xf32, #tpu.memory_space<vmem>>, vector<8x128xf32>,
    } else {
    }
    %c0_73 = arith.constant 0 : index
    %c0_74 = arith.constant 0 : index
    %200 = vector.load %arg12[%c0_73, %c0_74] : memref<8x128xf32, #tpu.memory_space<vmem>>, vector<8x128xf32>
    tpu.vector_store %arg12[%c0_73, %c0_74], %195 {strides = array<i32>} : memref<8x128xf32, #tpu.memory_space<vmem>>, vector<8x128xf32>,
    %c0_75 = arith.constant 0 : index
    %c0_76 = arith.constant 0 : index
    %201 = vector.load %arg13[%c0_75, %c0_76] : memref<8x128xf32, #tpu.memory_space<vmem>>, vector<8x128xf32>
    tpu.vector_store %arg13[%c0_75, %c0_76], %193 {strides = array<i32>} : memref<8x128xf32, #tpu.memory_space<vmem>>, vector<8x128xf32>,
    return
  }
  func.func @transform_0(%arg0: i32, %arg1: i32) -> (i32, i32) {
    %c1_i32 = arith.constant 1 : i32
    %0 = arith.muli %arg0, %c1_i32 : i32
    %1 = arith.addi %0, %arg1 : i32
    %c0_i32 = arith.constant 0 : i32
    %c0_i32_0 = arith.constant 0 : i32
    return %1, %c0_i32 : i32, i32
  }
  func.func @transform_1(%arg0: i32, %arg1: i32) -> (i32, i32) {
    %c0_i32 = arith.constant 0 : i32
    %c0_i32_0 = arith.constant 0 : i32
    %c0_i32_1 = arith.constant 0 : i32
    return %c0_i32, %c0_i32_0 : i32, i32
  }
  func.func @transform_2(%arg0: i32, %arg1: i32) -> (i32, i32) {
    %c0_i32 = arith.constant 0 : i32
    %c0_i32_0 = arith.constant 0 : i32
    %c0_i32_1 = arith.constant 0 : i32
    return %c0_i32, %c0_i32_0 : i32, i32
  }
  func.func @transform_3(%arg0: i32, %arg1: i32) -> (i32, i32) {
    %c0_i32 = arith.constant 0 : i32
    %c0_i32_0 = arith.constant 0 : i32
    %c0_i32_1 = arith.constant 0 : i32
    return %c0_i32, %c0_i32_0 : i32, i32
  }
  func.func @transform_4(%arg0: i32, %arg1: i32) -> (i32, i32) {
    %c0_i32 = arith.constant 0 : i32
    %c0_i32_0 = arith.constant 0 : i32
    return %arg0, %c0_i32 : i32, i32
  }
  func.func @transform_5(%arg0: i32, %arg1: i32) -> (i32, i32) {
    %c0_i32 = arith.constant 0 : i32
    %c0_i32_0 = arith.constant 0 : i32
    return %arg0, %c0_i32 : i32, i32
  }
  func.func @transform_6(%arg0: i32, %arg1: i32) -> (i32, i32) {
    %c1_i32 = arith.constant 1 : i32
    %0 = arith.muli %arg0, %c1_i32 : i32
    %1 = arith.addi %0, %arg1 : i32
    %c0_i32 = arith.constant 0 : i32
    %c0_i32_0 = arith.constant 0 : i32
    return %1, %c0_i32 : i32, i32
  }
  func.func @transform_7(%arg0: i32, %arg1: i32) -> (i32, i32) {
    %c0_i32 = arith.constant 0 : i32
    %c0_i32_0 = arith.constant 0 : i32
    return %arg0, %c0_i32 : i32, i32
  }
  func.func @transform_8(%arg0: i32, %arg1: i32) -> (i32, i32) {
    %c0_i32 = arith.constant 0 : i32
    %c0_i32_0 = arith.constant 0 : i32
    return %arg0, %c0_i32 : i32, i32
  }
}

</mosaic_0001>

<bundles_post_ra>
// kernel: tpu_custom_call.1
= control target key start
LH: loop header
LB: loop body
LE: loop exit
PB: predicated region body
PF: predicated region fallthrough
CT: control target
= control target key end

     0   :  { %14 = vsyncpa [#allocation6], 0  ;;  %s2265_s0 = inlined_call_operand.vmem [shape: bf16[64,16], index: 0, kind: input, shape index: {}]   ;;  %s2266_s1 = inlined_call_operand.vmem [shape: bf16[16,512], index: 1, kind: input, shape index: {}]   ;;  %s2267_s2 = inlined_call_operand.hbm [shape: bf16[128,512], index: 2, kind: input, shape index: {}]   ;;  %s2268_s3 = inlined_call_operand.hbm [shape: f32[1,512], index: 3, kind: input, shape index: {}]   ;;  %s2269_s4 = inlined_call_operand.vmem [shape: f32[8,128], index: 4, kind: input, shape index: {}]   ;;  %s2270_s5 = inlined_call_operand.hbm [shape: f32[8,128], index: 5, kind: input, shape index: {}]   ;;  %s2271_s6 = inlined_call_operand.hbm [shape: f32[64,128], index: 6, kind: output, shape index: {0}]   ;;  %s2272_s7 = inlined_call_operand.hbm [shape: f32[8,128], index: 7, kind: output, shape index: {1}]   ;;  %s2273_s8 = inlined_call_operand.hbm [shape: f32[8,128], index: 8, kind: output, shape index: {2}]  }
   0x1   :  { %15 = vsyncpa [#allocation9], 0 }
   0x2   :  { %16 = vsyncpa [#allocation7], 0  ;;  %s48_s29 = sshll.u32 %s2268_s3, 4  ;;  %s49_s29 = int_to_ptr.hbm [resolvable:$true] %s48_s29 }
   0x3   :  { %17 = vsyncpa [#allocation13], 0  ;;  %s1687_s30 = smov [#allocation8]   ;;  %s34_s12 = sshll.u32 %s2267_s2, 4  ;;  %s35_s12 = int_to_ptr.hbm [resolvable:$true] %s34_s12 }
   0x4   :  { %s50_s9 = sshll.u32 %s1687_s30, 4  ;;  %s1688_s13 = smov [#allocation5]   ;;  %s51_s9 = int_to_ptr.vmem [resolvable:$true] %s50_s9 }
   0x5   :  { %53 = dma.hbm_to_vmem [thread:$0]  %s49_s29, 64, %s51_s9, [#allocation9]  }
   0x6   :  { %s36_s14 = sshll.u32 %s1688_s13, 4  ;;  %s1689_s15 = smov 256   ;;  %s37_s14 = int_to_ptr.vmem [resolvable:$true] %s36_s14 }
   0x7   :  { %s1690_s16 = smov 16   ;;  %s61_s3 = sshll.u32 %s2270_s5, 4  ;;  %s62_s3 = int_to_ptr.hbm [resolvable:$true] %s61_s3 }
   0x8   :  { %42 = dma.hbm_to_vmem [thread:$0]  %s35_s12, 4096, %s37_s14, [#allocation6], %s1689_s15, %s1689_s15, %s1690_s16  }
   0x9   :  { %s1691_s19 = smov [#allocation10]  }
   0xa   :  { %s63_s20 = sshll.u32 %s1691_s19, 4  ;;  %s64_s20 = int_to_ptr.vmem [resolvable:$true] %s63_s20 }
   0xb   :  { %66 = dma.hbm_to_vmem [thread:$0]  %s62_s3, 128, %s64_s20, [#allocation9]  }
   0xc   :  { %1679 = dma.done.wait [#allocation6], 4096  }
   0xd   :  { %1680 = vsyncadd [#allocation6], 4294963200 }
   0xe   :  { %1681 = dma.done.wait [#allocation9], 192  }
   0xf   :  { %1682 = vsyncadd [#allocation9], 4294967104  ;;  %v1247_v0 = vld [vmem:[%s2266_s1] sm:$0xf]  ;;  %v1411_v1 = vld [vmem:[%s2266_s1 + $0xc] sm:$0xf0] }
  0x10   :  { %v1409_v2 = vld [vmem:[%s2266_s1 + $0x4] sm:$0xf]  ;;  %v1248_v3 = vor.u32 %v1411_v1, %v1247_v0  ;;  %v1249_v4 = vld [vmem:[%s2266_s1 + $0x10] sm:$0xf0]  ;;  %v1255_v5 = vld [vmem:[%s2266_s1 + $0x8] sm:$0xf] }
  0x11   :  { %v1412_v6 = vld [vmem:[%s2266_s1 + $0x14] sm:$0xf0]  ;;  %v1252_v7 = vor.u32 %v1409_v2, %v1249_v4  ;;  %v1410_v9 = vld [vmem:[%s2266_s1 + $0xc] sm:$0xf]  ;;  %v1257_v10 = vld [vmem:[%s2266_s1 + $0x18] sm:$0xf0] }
  0x12   :  { %v1256_v8 = vor.u32 %v1412_v6, %v1255_v5  ;;  %v1405_v11 = vld [vmem:[%s2265_s0] sm:$0xff]  ;;  %vm166_vm0 = vcmask 130048   ;;  %186 = vmatpush.bf16.msra.mxu0 %v1248_v3  ;;  %v1260_v12 = vor.u32 %v1410_v9, %v1257_v10  ;;  %v1443_v14 = vld [vmem:[#allocation5 + $0xec] sm:$0xf0]  ;;  %v1393_v17 = vld [vmem:[#allocation5 + $0xf0] sm:$0xf0] }
  0x13   :  { %v1391_v13 = vld [vmem:[#allocation5 + $0xe0] sm:$0xf]  ;;  %v1441_v15 = vld [vmem:[#allocation5 + $0xe4] sm:$0xf]  ;;  %215 = vmatpush.bf16.msra.mxu1 %v1252_v7  ;;  %v1442_v18 = vld [vmem:[#allocation5 + $0xec] sm:$0xf] }
  0x14   :  { %244 = vmatpush.bf16.msra.mxu2 %v1256_v8  ;;  %v1778_v16 = vor.u32 %v1443_v14, %v1391_v13  ;;  %v1401_v19 = vld [vmem:[#allocation5 + $0xf8] sm:$0xf0]  ;;  %273 = vmatpush.bf16.msra.mxu3 %v1260_v12  ;;  %v1780_v20 = vor.u32 %v1441_v15, %v1393_v17  ;;  %v1399_v22 = vld [vmem:[#allocation5 + $0xe8] sm:$0xf]  ;;  %v1444_v23 = vld [vmem:[#allocation5 + $0xf4] sm:$0xf0] }
  0x15   :  { %v1782_v21 = vor.u32 %v1442_v18, %v1401_v19  ;;  %v1375_v24 = vld [vmem:[#allocation5 + $0xc0] sm:$0xf]  ;;  %1261 = vmatmul.msk.bf16.vlgmr.msra.gmra.mxu0 %vm166_vm0, %v1405_v11  ;;  %v1785_v25 = vor.u32 %v1444_v23, %v1399_v22  ;;  %v1439_v26 = vld [vmem:[#allocation5 + $0xcc] sm:$0xf0]  ;;  %v1437_v27 = vld [vmem:[#allocation5 + $0xc4] sm:$0xf] }
  0x16   :  { %v1377_v28 = vld [vmem:[#allocation5 + $0xd0] sm:$0xf0]  ;;  %1265 = vmatmul.msk.bf16.vlgmr.msra.gmra.mxu1 %vm166_vm0, %v1405_v11  ;;  %v1438_v29 = vld [vmem:[#allocation5 + $0xcc] sm:$0xf]  ;;  %v1385_v30 = vld [vmem:[#allocation5 + $0xd8] sm:$0xf0]  ;;  %526 = vmatpush.bf16.msrb.mxu0 %v1778_v16  ;;  %v1791_v32 = vor.u32 %v1439_v26, %v1375_v24 }
  0x17   :  { %1269 = vmatmul.msk.bf16.vlgmr.msra.gmra.mxu2 %vm166_vm0, %v1405_v11  ;;  %v1383_v31 = vld [vmem:[#allocation5 + $0xc8] sm:$0xf]  ;;  %1273 = vmatmul.msk.bf16.vlgmr.msra.gmra.mxu3 %vm166_vm0, %v1405_v11  ;;  %v1440_v33 = vld [vmem:[#allocation5 + $0xd4] sm:$0xf0]  ;;  %v1795_v34 = vor.u32 %v1437_v27, %v1377_v28  ;;  %v1797_v35 = vor.u32 %v1438_v29, %v1385_v30  ;;  %v1359_v36 = vld [vmem:[#allocation5 + $0xa0] sm:$0xf] }
  0x18   :  { %539 = vmatpush.bf16.msrb.mxu1 %v1780_v20  ;;  %565 = vmatpush.bf16.msrb.mxu3 %v1782_v21  ;;  %v1435_v37 = vld [vmem:[#allocation5 + $0xac] sm:$0xf0]  ;;  %v1433_v38 = vld [vmem:[#allocation5 + $0xa4] sm:$0xf]  ;;  %v1800_v39 = vor.u32 %v1440_v33, %v1383_v31  ;;  %v1361_v40 = vld [vmem:[#allocation5 + $0xb0] sm:$0xf0] }
  0x19   :  { %552 = vmatpush.bf16.msrb.mxu2 %v1785_v25  ;;  %v1434_v41 = vld [vmem:[#allocation5 + $0xac] sm:$0xf]  ;;  %v1369_v42 = vld [vmem:[#allocation5 + $0xb8] sm:$0xf0]  ;;  %v1367_v43 = vld [vmem:[#allocation5 + $0xa8] sm:$0xf]  ;;  %v1803_v45 = vor.u32 %v1435_v37, %v1359_v36  ;;  %v1807_v46 = vor.u32 %v1433_v38, %v1361_v40 }
  0x1a   :  { %v1436_v44 = vld [vmem:[#allocation5 + $0xb4] sm:$0xf0]  ;;  %527 = vmatpush.bf16.msrb.mxu0 %v1791_v32  ;;  %v1809_v47 = vor.u32 %v1434_v41, %v1369_v42  ;;  %v1343_v48 = vld [vmem:[#allocation5 + $0x80] sm:$0xf]  ;;  %v1431_v49 = vld [vmem:[#allocation5 + $0x8c] sm:$0xf0] }
  0x1b   :  { %v1429_v50 = vld [vmem:[#allocation5 + $0x84] sm:$0xf]  ;;  %v1812_v51 = vor.u32 %v1436_v44, %v1367_v43  ;;  %v1345_v52 = vld [vmem:[#allocation5 + $0x90] sm:$0xf0]  ;;  %v1430_v53 = vld [vmem:[#allocation5 + $0x8c] sm:$0xf]  ;;  %v1818_v58 = vor.u32 %v1431_v49, %v1343_v48 }
  0x1c   :  { %540 = vmatpush.bf16.msrb.mxu1 %v1795_v34  ;;  %566 = vmatpush.bf16.msrb.mxu3 %v1797_v35  ;;  %v1353_v54 = vld [vmem:[#allocation5 + $0x98] sm:$0xf0]  ;;  %v1351_v55 = vld [vmem:[#allocation5 + $0x88] sm:$0xf]  ;;  %v1432_v56 = vld [vmem:[#allocation5 + $0x94] sm:$0xf0]  ;;  %v1822_v59 = vor.u32 %v1429_v50, %v1345_v52 }
  0x1d   :  { %553 = vmatpush.bf16.msrb.mxu2 %v1800_v39  ;;  %v1406_v57 = vld [vmem:[%s2265_s0 + $0x8] sm:$0xff]  ;;  %v1824_v60 = vor.u32 %v1430_v53, %v1353_v54  ;;  %v1327_v61 = vld [vmem:[#allocation5 + $0x60] sm:$0xf]  ;;  %v1427_v62 = vld [vmem:[#allocation5 + $0x6c] sm:$0xf0]  ;;  %v1827_v0 = vor.u32 %v1432_v56, %v1351_v55  ;;  %s1178_s22 = sshll.u32 %s2271_s6, 4  ;;  %s1179_s22 = int_to_ptr.hbm [resolvable:$true] %s1178_s22 }
  0x1e   :  { %528 = vmatpush.bf16.msrb.mxu0 %v1803_v45  ;;  %v1425_v63 = vld [vmem:[#allocation5 + $0x64] sm:$0xf]  ;;  %v1329_v1 = vld [vmem:[#allocation5 + $0x70] sm:$0xf0]  ;;  %v1426_v2 = vld [vmem:[#allocation5 + $0x6c] sm:$0xf]  ;;  %v1830_v6 = vor.u32 %v1427_v62, %v1327_v61 }
  0x1f   :  { %v1337_v3 = vld [vmem:[#allocation5 + $0x78] sm:$0xf0]  ;;  %v1335_v4 = vld [vmem:[#allocation5 + $0x68] sm:$0xf]  ;;  %v1428_v5 = vld [vmem:[#allocation5 + $0x74] sm:$0xf0]  ;;  %v1834_v7 = vor.u32 %v1425_v63, %v1329_v1 }
  0x20   :  { %541 = vmatpush.bf16.msrb.mxu1 %v1807_v46  ;;  %567 = vmatpush.bf16.msrb.mxu3 %v1809_v47  ;;  %v1836_v8 = vor.u32 %v1426_v2, %v1337_v3  ;;  %v1311_v9 = vld [vmem:[#allocation5 + $0x40] sm:$0xf]  ;;  %v1423_v10 = vld [vmem:[#allocation5 + $0x4c] sm:$0xf0]  ;;  %v1421_v11 = vld [vmem:[#allocation5 + $0x44] sm:$0xf]  ;;  %v1840_v12 = vor.u32 %v1428_v5, %v1335_v4 }
  0x21   :  { %554 = vmatpush.bf16.msrb.mxu2 %v1812_v51  ;;  %v1313_v13 = vld [vmem:[#allocation5 + $0x50] sm:$0xf0]  ;;  %v1422_v14 = vld [vmem:[#allocation5 + $0x4c] sm:$0xf]  ;;  %v1321_v15 = vld [vmem:[#allocation5 + $0x58] sm:$0xf0]  ;;  %v1846_v19 = vor.u32 %v1423_v10, %v1311_v9 }
  0x22   :  { %529 = vmatpush.bf16.msrb.mxu0 %v1818_v58  ;;  %v1319_v17 = vld [vmem:[#allocation5 + $0x48] sm:$0xf]  ;;  %v1424_v18 = vld [vmem:[#allocation5 + $0x54] sm:$0xf0]  ;;  %v1850_v22 = vor.u32 %v1421_v11, %v1313_v13  ;;  %v1852_v23 = vor.u32 %v1422_v14, %v1321_v15  ;;  %v1295_v24 = vld [vmem:[#allocation5 + $0x20] sm:$0xf] }
  0x23   :  { %v1419_v26 = vld [vmem:[#allocation5 + $0x2c] sm:$0xf0]  ;;  %v1417_v27 = vld [vmem:[#allocation5 + $0x24] sm:$0xf]  ;;  %v1855_v28 = vor.u32 %v1424_v18, %v1319_v17  ;;  %v1297_v29 = vld [vmem:[#allocation5 + $0x30] sm:$0xf0] }
  0x24   :  { %542 = vmatpush.bf16.msrb.mxu1 %v1822_v59  ;;  %568 = vmatpush.bf16.msrb.mxu3 %v1824_v60  ;;  %v1418_v30 = vld [vmem:[#allocation5 + $0x2c] sm:$0xf]  ;;  %v1305_v31 = vld [vmem:[#allocation5 + $0x38] sm:$0xf0]  ;;  %v1303_v33 = vld [vmem:[#allocation5 + $0x28] sm:$0xf]  ;;  %v1858_v37 = vor.u32 %v1419_v26, %v1295_v24  ;;  %v1862_v38 = vor.u32 %v1417_v27, %v1297_v29 }
  0x25   :  { %1262 = vmatmul.msk.bf16.gmra.mxu0 %vm166_vm0, %v1406_v57  ;;  %555 = vmatpush.bf16.msrb.mxu2 %v1827_v0  ;;  %v1420_v36 = vld [vmem:[#allocation5 + $0x34] sm:$0xf0]  ;;  %v1864_v40 = vor.u32 %v1418_v30, %v1305_v31  ;;  %v1279_v41 = vld [vmem:[#allocation5] sm:$0xf]  ;;  %v1415_v42 = vld [vmem:[#allocation5 + $0xc] sm:$0xf0] }
  0x26   :  { %1266 = vmatmul.msk.bf16.gmra.mxu1 %vm166_vm0, %v1406_v57  ;;  %530 = vmatpush.bf16.msrb.mxu0 %v1830_v6  ;;  %v1413_v43 = vld [vmem:[#allocation5 + $0x4] sm:$0xf]  ;;  %v1867_v44 = vor.u32 %v1420_v36, %v1303_v33  ;;  %v1281_v48 = vld [vmem:[#allocation5 + $0x10] sm:$0xf0]  ;;  %v1414_v49 = vld [vmem:[#allocation5 + $0xc] sm:$0xf]  ;;  %v1870_v54 = vor.u32 %v1415_v42, %v1279_v41 }
  0x27   :  { %1270 = vmatmul.msk.bf16.gmra.mxu2 %vm166_vm0, %v1406_v57  ;;  %1274 = vmatmul.msk.bf16.gmra.mxu3 %vm166_vm0, %v1406_v57  ;;  %v1289_v50 = vld [vmem:[#allocation5 + $0x18] sm:$0xf0]  ;;  %v1287_v52 = vld [vmem:[#allocation5 + $0x8] sm:$0xf]  ;;  %v1416_v53 = vld [vmem:[#allocation5 + $0x14] sm:$0xf0]  ;;  %v1874_v55 = vor.u32 %v1413_v43, %v1281_v48 }
  0x28   :  { %543 = vmatpush.bf16.msrb.mxu1 %v1834_v7  ;;  %569 = vmatpush.bf16.msrb.mxu3 %v1836_v8  ;;  %v1876_v56 = vor.u32 %v1414_v49, %v1289_v50  ;;  %v1407_v57 = vld [vmem:[%s2265_s0 + $0x10] sm:$0xff]  ;;  %v1882_v61 = vor.u32 %v1416_v53, %v1287_v52  ;;  %v1408_v62 = vld [vmem:[%s2265_s0 + $0x18] sm:$0xff]  ;;  %v100_v63 = vld [vmem:[%s2269_s4] sm:$0xff]  ;;  %s1692_s4 = smov [#allocation11]   ;;  %s1693_s23 = smov [#allocation12]  }
  0x29   :  { %556 = vmatpush.bf16.msrb.mxu2 %v1840_v12  ;;  %v365_v1 = vpack.c.bf16 %v100_v63, %v100_v63  ;;  %v116_v4 = vld [vmem:[#allocation8] sm:$0xf]  ;;  %s1176_s20 = sshll.u32 %s1692_s4, 4  ;;  %s1190_s24 = sshll.u32 %s1693_s23, 4  ;;  %s1177_s20 = int_to_ptr.vmem [resolvable:$true] %s1176_s20  ;;  %s1191_s24 = int_to_ptr.vmem [resolvable:$true] %s1190_s24 }
  0x2a   :  { %531 = vmatpush.bf16.msrb.mxu0 %v1846_v19  ;;  %v118_v5 = vperm.slane %v116_v4, 0  ;;  %v119_v10 = vperm.slane %v116_v4, 1  ;;  %v1974_v18 = vperm.slane %v116_v4, 2  ;;  %v1976_v24 = vperm.slane %v116_v4, 3  ;;  %s1192_s26 = sshll.u32 %s2272_s7, 4  ;;  %s1694_s27 = smov [#allocation14]   ;;  %s1193_s26 = int_to_ptr.hbm [resolvable:$true] %s1192_s26 }
  0x2b   :  { %s1201_s28 = sshll.u32 %s1694_s27, 4  ;;  %s1203_s9 = sshll.u32 %s2273_s8, 4  ;;  %s1202_s28 = int_to_ptr.vmem [resolvable:$true] %s1201_s28  ;;  %s1204_s9 = int_to_ptr.hbm [resolvable:$true] %s1203_s9 }
  0x2c   :  { %544 = vmatpush.bf16.msrb.mxu1 %v1850_v22  ;;  %570 = vmatpush.bf16.msrb.mxu3 %v1852_v23  ;;  %s1695_s6 = smov 128   ;;  %s1696_s10 = smov 8  }
  0x2d   :  { %557 = vmatpush.bf16.msrb.mxu2 %v1855_v28 }
  0x2e   :  { %532 = vmatpush.bf16.msrb.mxu0 %v1858_v37 }
  0x30   :  { %545 = vmatpush.bf16.msrb.mxu1 %v1862_v38  ;;  %571 = vmatpush.bf16.msrb.mxu3 %v1864_v40 }
  0x31   :  { %558 = vmatpush.bf16.msrb.mxu2 %v1867_v44 }
  0x32   :  { %533 = vmatpush.bf16.msrb.mxu0 %v1870_v54 }
  0x34   :  { %546 = vmatpush.bf16.msrb.mxu1 %v1874_v55  ;;  %572 = vmatpush.bf16.msrb.mxu3 %v1876_v56 }
  0x35   :  { %1263 = vmatmul.msk.bf16.gmra.mxu0 %vm166_vm0, %v1407_v57  ;;  %559 = vmatpush.bf16.msrb.mxu2 %v1882_v61 }
  0x36   :  { %1267 = vmatmul.msk.bf16.gmra.mxu1 %vm166_vm0, %v1407_v57  ;;  %606 = vmatpush.bf16.msra.mxu0 %v1778_v16 }
  0x37   :  { %1271 = vmatmul.msk.bf16.gmra.mxu2 %vm166_vm0, %v1407_v57  ;;  %1275 = vmatmul.msk.bf16.gmra.mxu3 %vm166_vm0, %v1407_v57 }
  0x38   :  { %619 = vmatpush.bf16.msra.mxu1 %v1780_v20  ;;  %645 = vmatpush.bf16.msra.mxu3 %v1782_v21 }
  0x39   :  { %632 = vmatpush.bf16.msra.mxu2 %v1785_v25 }
  0x3a   :  { %607 = vmatpush.bf16.msra.mxu0 %v1791_v32 }
  0x3c   :  { %620 = vmatpush.bf16.msra.mxu1 %v1795_v34  ;;  %646 = vmatpush.bf16.msra.mxu3 %v1797_v35 }
  0x3d   :  { %633 = vmatpush.bf16.msra.mxu2 %v1800_v39 }
  0x3e   :  { %608 = vmatpush.bf16.msra.mxu0 %v1803_v45 }
  0x40   :  { %621 = vmatpush.bf16.msra.mxu1 %v1807_v46  ;;  %647 = vmatpush.bf16.msra.mxu3 %v1809_v47 }
  0x41   :  { %634 = vmatpush.bf16.msra.mxu2 %v1812_v51 }
  0x42   :  { %609 = vmatpush.bf16.msra.mxu0 %v1818_v58 }
  0x44   :  { %622 = vmatpush.bf16.msra.mxu1 %v1822_v59  ;;  %648 = vmatpush.bf16.msra.mxu3 %v1824_v60 }
  0x45   :  { %635 = vmatpush.bf16.msra.mxu2 %v1827_v0  ;;  %1264 = vmatmul.msk.bf16.gmra.mxu0 %vm166_vm0, %v1408_v62 }
  0x46   :  { %1268 = vmatmul.msk.bf16.gmra.mxu1 %vm166_vm0, %v1408_v62  ;;  %610 = vmatpush.bf16.msra.mxu0 %v1830_v6 }
  0x47   :  { %1272 = vmatmul.msk.bf16.gmra.mxu2 %vm166_vm0, %v1408_v62  ;;  %1276 = vmatmul.msk.bf16.gmra.mxu3 %vm166_vm0, %v1408_v62 }
  0x48   :  { %623 = vmatpush.bf16.msra.mxu1 %v1834_v7  ;;  %649 = vmatpush.bf16.msra.mxu3 %v1836_v8 }
  0x49   :  { %636 = vmatpush.bf16.msra.mxu2 %v1840_v12 }
  0x4a   :  { %611 = vmatpush.bf16.msra.mxu0 %v1846_v19 }
  0x4c   :  { %624 = vmatpush.bf16.msra.mxu1 %v1850_v22  ;;  %650 = vmatpush.bf16.msra.mxu3 %v1852_v23 }
  0x4d   :  { %637 = vmatpush.bf16.msra.mxu2 %v1855_v28 }
  0x4e   :  { %612 = vmatpush.bf16.msra.mxu0 %v1858_v37 }
  0x50   :  { %625 = vmatpush.bf16.msra.mxu1 %v1862_v38  ;;  %651 = vmatpush.bf16.msra.mxu3 %v1864_v40 }
  0x51   :  { %638 = vmatpush.bf16.msra.mxu2 %v1867_v44 }
  0x52   :  { %613 = vmatpush.bf16.msra.mxu0 %v1870_v54 }
  0x54   :  { %626 = vmatpush.bf16.msra.mxu1 %v1874_v55  ;;  %652 = vmatpush.bf16.msra.mxu3 %v1876_v56 }
  0x55   :  { %639 = vmatpush.bf16.msra.mxu2 %v1882_v61  ;;  %534 = vmatmul.bf16.vlgmr.msrb.gmra.mxu0 %v365_v1 }
  0x56   :  { %547 = vmatmul.bf16.vlgmr.msrb.gmra.mxu1 %v365_v1  ;;  %686 = vmatpush.bf16.msrb.mxu0 %v1778_v16 }
  0x57   :  { %560 = vmatmul.bf16.vlgmr.msrb.gmra.mxu2 %v365_v1  ;;  %573 = vmatmul.bf16.vlgmr.msrb.gmra.mxu3 %v365_v1 }
  0x58   :  { %699 = vmatpush.bf16.msrb.mxu1 %v1780_v20  ;;  %725 = vmatpush.bf16.msrb.mxu3 %v1782_v21 }
  0x59   :  { %712 = vmatpush.bf16.msrb.mxu2 %v1785_v25 }
  0x5a   :  { %687 = vmatpush.bf16.msrb.mxu0 %v1791_v32 }
  0x5c   :  { %700 = vmatpush.bf16.msrb.mxu1 %v1795_v34  ;;  %726 = vmatpush.bf16.msrb.mxu3 %v1797_v35 }
  0x5d   :  { %713 = vmatpush.bf16.msrb.mxu2 %v1800_v39 }
  0x5e   :  { %688 = vmatpush.bf16.msrb.mxu0 %v1803_v45 }
  0x60   :  { %701 = vmatpush.bf16.msrb.mxu1 %v1807_v46  ;;  %727 = vmatpush.bf16.msrb.mxu3 %v1809_v47 }
  0x61   :  { %714 = vmatpush.bf16.msrb.mxu2 %v1812_v51 }
  0x62   :  { %689 = vmatpush.bf16.msrb.mxu0 %v1818_v58 }
  0x64   :  { %702 = vmatpush.bf16.msrb.mxu1 %v1822_v59  ;;  %728 = vmatpush.bf16.msrb.mxu3 %v1824_v60 }
  0x65   :  { %715 = vmatpush.bf16.msrb.mxu2 %v1827_v0 }
  0x66   :  { %690 = vmatpush.bf16.msrb.mxu0 %v1830_v6 }
  0x68   :  { %703 = vmatpush.bf16.msrb.mxu1 %v1834_v7  ;;  %729 = vmatpush.bf16.msrb.mxu3 %v1836_v8 }
  0x69   :  { %716 = vmatpush.bf16.msrb.mxu2 %v1840_v12 }
  0x6a   :  { %691 = vmatpush.bf16.msrb.mxu0 %v1846_v19 }
  0x6c   :  { %704 = vmatpush.bf16.msrb.mxu1 %v1850_v22  ;;  %730 = vmatpush.bf16.msrb.mxu3 %v1852_v23 }
  0x6d   :  { %717 = vmatpush.bf16.msrb.mxu2 %v1855_v28 }
  0x6e   :  { %692 = vmatpush.bf16.msrb.mxu0 %v1858_v37 }
  0x70   :  { %705 = vmatpush.bf16.msrb.mxu1 %v1862_v38  ;;  %731 = vmatpush.bf16.msrb.mxu3 %v1864_v40 }
  0x71   :  { %718 = vmatpush.bf16.msrb.mxu2 %v1867_v44 }
  0x72   :  { %693 = vmatpush.bf16.msrb.mxu0 %v1870_v54 }
  0x74   :  { %706 = vmatpush.bf16.msrb.mxu1 %v1874_v55  ;;  %732 = vmatpush.bf16.msrb.mxu3 %v1876_v56 }
  0x75   :  { %719 = vmatpush.bf16.msrb.mxu2 %v1882_v61 }
  0x92   :  { %v188_v2 = vpop.f32.mrf.mxu0 }
  0x93   :  { %v217_v3 = vpop.f32.mrf.mxu1 }
  0x9a   :  { %v1966_v9 = vpop.f32.mrf.mxu2  ;;  %v1968_v11 = vpop.f32.mrf.mxu3 }
  0x9b   :  { %v190_v13 = vpop.f32.mrf.mxu0  ;;  %v219_v15 = vpop.f32.mrf.mxu1 }
  0x9c   :  { %v1970_v14 = vadd.f32 %v190_v13, %v118_v5  ;;  %v1972_v17 = vadd.f32 %v219_v15, %v119_v10 }
  0xa2   :  { %v248_v26 = vpop.f32.mrf.mxu2  ;;  %v277_v29 = vpop.f32.mrf.mxu3 }
  0xa3   :  { %v1979_v27 = vadd.f32 %v248_v26, %v1974_v18  ;;  %v193_v30 = vpop.f32.mrf.mxu0  ;;  %v1982_v31 = vadd.f32 %v277_v29, %v1976_v24  ;;  %v222_v36 = vpop.f32.mrf.mxu1 }
  0xa4   :  { %v1984_v33 = vadd.f32 %v193_v30, %v118_v5  ;;  %v1986_v41 = vadd.f32 %v222_v36, %v119_v10 }
  0xaa   :  { %v251_v42 = vpop.f32.mrf.mxu2  ;;  %v280_v48 = vpop.f32.mrf.mxu3 }
  0xab   :  { %v1989_v43 = vadd.f32 %v251_v42, %v1974_v18  ;;  %v195_v49 = vpop.f32.mrf.mxu0  ;;  %v1992_v50 = vadd.f32 %v280_v48, %v1976_v24  ;;  %v224_v53 = vpop.f32.mrf.mxu1 }
  0xac   :  { %v1994_v52 = vadd.f32 %v195_v49, %v118_v5  ;;  %v1996_v57 = vadd.f32 %v224_v53, %v119_v10 }
  0xae   :  { %2274 = vst [vmem:[#allocation19_spill] sm:$0xff] %v1996_v57 }
  0xb2   :  { %v253_v62 = vpop.f32.mrf.mxu2  ;;  %v282_v1 = vpop.f32.mrf.mxu3 }
  0xb3   :  { %v1999_v63 = vadd.f32 %v253_v62, %v1974_v18  ;;  %v198_v4 = vpop.f32.mrf.mxu0  ;;  %v2002_v13 = vadd.f32 %v282_v1, %v1976_v24  ;;  %v227_v26 = vpop.f32.mrf.mxu1 }
  0xb4   :  { %v2004_v15 = vadd.f32 %v198_v4, %v118_v5  ;;  %v2006_v29 = vadd.f32 %v227_v26, %v119_v10 }
  0xb5   :  { %2275 = vst [vmem:[#allocation20_spill] sm:$0xff] %v1999_v63 }
  0xb6   :  { %2276 = vst [vmem:[#allocation21_spill] sm:$0xff] %v2002_v13 }
  0xb7   :  { %2277 = vst [vmem:[#allocation22_spill] sm:$0xff] %v2004_v15 }
  0xb8   :  { %2278 = vst [vmem:[#allocation23_spill] sm:$0xff] %v2006_v29 }
  0xba   :  { %v256_v30 = vpop.f32.mrf.mxu2  ;;  %v285_v42 = vpop.f32.mrf.mxu3 }
  0xbb   :  { %v2009_v36 = vadd.f32 %v256_v30, %v1974_v18  ;;  %v200_v48 = vpop.f32.mrf.mxu0  ;;  %v2012_v49 = vadd.f32 %v285_v42, %v1976_v24  ;;  %v229_v62 = vpop.f32.mrf.mxu1 }
  0xbc   :  { %v2014_v53 = vadd.f32 %v200_v48, %v118_v5  ;;  %v2016_v63 = vadd.f32 %v229_v62, %v119_v10 }
  0xbd   :  { %2279 = vst [vmem:[#allocation24_spill] sm:$0xff] %v2009_v36 }
  0xbe   :  { %2280 = vst [vmem:[#allocation25_spill] sm:$0xff] %v2012_v49 }
  0xbf   :  { %2281 = vst [vmem:[#allocation26_spill] sm:$0xff] %v2014_v53 }
  0xc0   :  { %2282 = vst [vmem:[#allocation27_spill] sm:$0xff] %v2016_v63 }
  0xc2   :  { %v258_v1 = vpop.f32.mrf.mxu2  ;;  %v287_v26 = vpop.f32.mrf.mxu3 }
  0xc3   :  { %v2019_v4 = vadd.f32 %v258_v1, %v1974_v18  ;;  %v203_v29 = vpop.f32.mrf.mxu0  ;;  %v2022_v15 = vadd.f32 %v287_v26, %v1976_v24  ;;  %v232_v36 = vpop.f32.mrf.mxu1  ;;  %v189_v26 = vadd.f32 %v188_v2, %v118_v5  ;;  %v276_v2 = vadd.f32 %v1968_v11, %v1976_v24 }
  0xc4   :  { %v2024_v30 = vadd.f32 %v203_v29, %v118_v5  ;;  %v2026_v13 = vadd.f32 %v232_v36, %v119_v10 }
  0xc5   :  { %2283 = vst [vmem:[#allocation28_spill] sm:$0xff] %v2019_v4 }
  0xc6   :  { %2284 = vst [vmem:[#allocation29_spill] sm:$0xff] %v2022_v15 }
  0xc7   :  { %2285 = vst [vmem:[#allocation30_spill] sm:$0xff] %v2024_v30  ;;  %v218_v30 = vadd.f32 %v217_v3, %v119_v10 }
  0xc8   :  { %2286 = vst [vmem:[#allocation31_spill] sm:$0xff] %v2026_v13 }
  0xca   :  { %v261_v42 = vpop.f32.mrf.mxu2  ;;  %v290_v62 = vpop.f32.mrf.mxu3 }
  0xcb   :  { %v2029_v48 = vadd.f32 %v261_v42, %v1974_v18  ;;  %v205_v63 = vpop.f32.mrf.mxu0  ;;  %v2032_v53 = vadd.f32 %v290_v62, %v1976_v24  ;;  %v234_v4 = vpop.f32.mrf.mxu1 }
  0xcc   :  { %v2034_v1 = vadd.f32 %v205_v63, %v118_v5  ;;  %v2036_v49 = vadd.f32 %v234_v4, %v119_v10  ;;  %v247_v4 = vadd.f32 %v1966_v9, %v1974_v18 }
  0xcd   :  { %2287 = vst [vmem:[#allocation32_spill] sm:$0xff] %v2029_v48 }
  0xce   :  { %2288 = vst [vmem:[#allocation33_spill] sm:$0xff] %v2032_v53 }
  0xd2   :  { %v263_v29 = vpop.f32.mrf.mxu2  ;;  %v292_v13 = vpop.f32.mrf.mxu3 }
  0xd3   :  { %v2039_v36 = vadd.f32 %v263_v29, %v1974_v18  ;;  %v535_v15 = vpop.f32.mrf.mxu0  ;;  %v2042_v42 = vadd.f32 %v292_v13, %v1976_v24  ;;  %v548_v57 = vpop.f32.mrf.mxu1 }
  0xd4   :  { %v578_v48 = vadd.f32 %v535_v15, %v189_v26  ;;  %v579_v62 = vadd.f32 %v548_v57, %v218_v30  ;;  %v102_v26 = vld [vmem:[#allocation10] sm:$0xff] }
  0xd5   :  { %2289 = vst [vmem:[#allocation34_spill] sm:$0xff] %v2039_v36 }
  0xd6   :  { %2290 = vst [vmem:[#allocation35_spill] sm:$0xff] %v2042_v42  ;;  %v582_v53 = vmul.f32 0.5, %v578_v48  ;;  %v583_v63 = vmul.f32 0.5, %v579_v62 }
  0xd8   :  { %1455 = vtanh.f32 %v582_v53 }
  0xd9   :  { %1457 = vtanh.f32 %v583_v63 }
  0xda   :  { %v561_v3 = vpop.f32.mrf.mxu2  ;;  %v574_v10 = vpop.f32.mrf.mxu3 }
  0xdb   :  { %v580_v5 = vadd.f32 %v561_v3, %v247_v4  ;;  %v537_v29 = vpop.f32.mrf.mxu0  ;;  %v581_v36 = vadd.f32 %v574_v10, %v276_v2  ;;  %v550_v13 = vpop.f32.mrf.mxu1 }
  0xdd   :  { %v584_v42 = vmul.f32 0.5, %v580_v5  ;;  %1459 = vtanh.f32 %v581_v36 }
  0xde   :  { %v1456_v15 = vpop.eup %1455 }
  0xdf   :  { %v1458_v57 = vpop.eup %1457  ;;  %v588_v30 = vmul.f32 0.5, %v1456_v15  ;;  %1461 = vtanh.f32 %v584_v42 }
  0xe0   :  { %v589_v48 = vmul.f32 0.5, %v1458_v57 }
  0xe1   :  { %v591_v53 = vadd.f32 0.5, %v588_v30 }
  0xe2   :  { %v592_v9 = vadd.f32 0.5, %v589_v48  ;;  %v563_v18 = vpop.f32.mrf.mxu2  ;;  %v576_v62 = vpop.f32.mrf.mxu3 }
  0xe3   :  { %v1460_v63 = vpop.eup %1459 }
  0xe4   :  { %v595_v11 = vmul.f32 %v592_v9, %v102_v26  ;;  %v596_v24 = vmul.f32 %v1460_v63, %v591_v53 }
  0xe5   :  { %v1462_v4 = vpop.eup %1461 }
  0xe6   :  { %v2048_v3 = vadd.f32 %v596_v24, %v595_v11  ;;  %v590_v2 = vmul.f32 0.5, %v1462_v4 }
  0xe8   :  { %1463 = vtanh.f32 %v2048_v3  ;;  %v593_v5 = vadd.f32 0.5, %v590_v2 }
  0xee   :  { %v1464_v36 = vpop.eup %1463 }
  0xef   :  { %v599_v10 = vmul.f32 %v1464_v36, %v593_v5 }
  0xf1   :  { %600 = vst [vmem:[#allocation11] sm:$0xff] %v599_v10  ;;  %v605_v29 = vpack.c.bf16 %v599_v10, %v599_v10 }
  0xf3   :  { %614 = vmatmul.bf16.vlgmr.msra.gmra.mxu0 %v605_v29  ;;  %627 = vmatmul.bf16.vlgmr.msra.gmra.mxu1 %v605_v29 }
  0xf4   :  { %640 = vmatmul.bf16.vlgmr.msra.gmra.mxu2 %v605_v29  ;;  %653 = vmatmul.bf16.vlgmr.msra.gmra.mxu3 %v605_v29 }
  0xf5   :  { %766 = vmatpush.bf16.msra.mxu0 %v1778_v16  ;;  %779 = vmatpush.bf16.msra.mxu1 %v1780_v20 }
  0xf6   :  { %792 = vmatpush.bf16.msra.mxu2 %v1785_v25  ;;  %805 = vmatpush.bf16.msra.mxu3 %v1782_v21 }
  0xf9   :  { %767 = vmatpush.bf16.msra.mxu0 %v1791_v32  ;;  %780 = vmatpush.bf16.msra.mxu1 %v1795_v34 }
  0xfa   :  { %793 = vmatpush.bf16.msra.mxu2 %v1800_v39  ;;  %806 = vmatpush.bf16.msra.mxu3 %v1797_v35 }
  0xfd   :  { %768 = vmatpush.bf16.msra.mxu0 %v1803_v45  ;;  %781 = vmatpush.bf16.msra.mxu1 %v1807_v46 }
  0xfe   :  { %794 = vmatpush.bf16.msra.mxu2 %v1812_v51  ;;  %807 = vmatpush.bf16.msra.mxu3 %v1809_v47 }
 0x101   :  { %769 = vmatpush.bf16.msra.mxu0 %v1818_v58  ;;  %782 = vmatpush.bf16.msra.mxu1 %v1822_v59 }
 0x102   :  { %795 = vmatpush.bf16.msra.mxu2 %v1827_v0  ;;  %808 = vmatpush.bf16.msra.mxu3 %v1824_v60 }
 0x105   :  { %770 = vmatpush.bf16.msra.mxu0 %v1830_v6  ;;  %783 = vmatpush.bf16.msra.mxu1 %v1834_v7 }
 0x106   :  { %796 = vmatpush.bf16.msra.mxu2 %v1840_v12  ;;  %809 = vmatpush.bf16.msra.mxu3 %v1836_v8 }
 0x109   :  { %771 = vmatpush.bf16.msra.mxu0 %v1846_v19  ;;  %784 = vmatpush.bf16.msra.mxu1 %v1850_v22 }
 0x10a   :  { %797 = vmatpush.bf16.msra.mxu2 %v1855_v28  ;;  %810 = vmatpush.bf16.msra.mxu3 %v1852_v23 }
 0x10d   :  { %772 = vmatpush.bf16.msra.mxu0 %v1858_v37  ;;  %785 = vmatpush.bf16.msra.mxu1 %v1862_v38 }
 0x10e   :  { %798 = vmatpush.bf16.msra.mxu2 %v1867_v44  ;;  %811 = vmatpush.bf16.msra.mxu3 %v1864_v40 }
 0x111   :  { %773 = vmatpush.bf16.msra.mxu0 %v1870_v54  ;;  %786 = vmatpush.bf16.msra.mxu1 %v1874_v55 }
 0x112   :  { %799 = vmatpush.bf16.msra.mxu2 %v1882_v61  ;;  %812 = vmatpush.bf16.msra.mxu3 %v1876_v56 }
 0x170   :  { %v615_v42 = vpop.f32.mrf.mxu0  ;;  %v628_v13 = vpop.f32.mrf.mxu1 }
 0x171   :  { %v658_v15 = vadd.f32 %v615_v42, %v1970_v14  ;;  %v659_v57 = vadd.f32 %v628_v13, %v1972_v17 }
 0x173   :  { %v662_v30 = vmul.f32 0.5, %v658_v15  ;;  %v663_v48 = vmul.f32 0.5, %v659_v57 }
 0x175   :  { %1465 = vtanh.f32 %v662_v30 }
 0x176   :  { %1467 = vtanh.f32 %v663_v48 }
 0x177   :  { %v641_v53 = vpop.f32.mrf.mxu2  ;;  %v654_v26 = vpop.f32.mrf.mxu3 }
 0x178   :  { %v660_v9 = vadd.f32 %v641_v53, %v1979_v27  ;;  %v661_v18 = vadd.f32 %v654_v26, %v1982_v31  ;;  %v617_v62 = vpop.f32.mrf.mxu0  ;;  %v630_v63 = vpop.f32.mrf.mxu1 }
 0x17a   :  { %v664_v11 = vmul.f32 0.5, %v660_v9  ;;  %1469 = vtanh.f32 %v661_v18 }
 0x17b   :  { %v1466_v24 = vpop.eup %1465 }
 0x17c   :  { %v1468_v4 = vpop.eup %1467  ;;  %v668_v2 = vmul.f32 0.5, %v1466_v24  ;;  %1471 = vtanh.f32 %v664_v11 }
 0x17d   :  { %v669_v14 = vmul.f32 0.5, %v1468_v4 }
 0x17e   :  { %v671_v17 = vadd.f32 0.5, %v668_v2 }
 0x17f   :  { %v672_v5 = vadd.f32 0.5, %v669_v14  ;;  %v643_v36 = vpop.f32.mrf.mxu2  ;;  %v656_v10 = vpop.f32.mrf.mxu3 }
 0x180   :  { %v1470_v29 = vpop.eup %1469 }
 0x181   :  { %v675_v42 = vmul.f32 %v672_v5, %v2048_v3  ;;  %v676_v13 = vmul.f32 %v1470_v29, %v671_v17 }
 0x182   :  { %v1472_v27 = vpop.eup %1471 }
 0x183   :  { %v2088_v15 = vadd.f32 %v676_v13, %v675_v42  ;;  %v670_v31 = vmul.f32 0.5, %v1472_v27 }
 0x185   :  { %1473 = vtanh.f32 %v2088_v15  ;;  %v673_v57 = vadd.f32 0.5, %v670_v31 }
 0x18b   :  { %v1474_v30 = vpop.eup %1473 }
 0x18c   :  { %v679_v48 = vmul.f32 %v1474_v30, %v673_v57 }
 0x18e   :  { %680 = vst [vmem:[#allocation11 + $0x8] sm:$0xff] %v679_v48  ;;  %v685_v53 = vpack.c.bf16 %v679_v48, %v679_v48 }
 0x190   :  { %694 = vmatmul.bf16.vlgmr.msrb.gmra.mxu0 %v685_v53  ;;  %707 = vmatmul.bf16.vlgmr.msrb.gmra.mxu1 %v685_v53 }
 0x191   :  { %720 = vmatmul.bf16.vlgmr.msrb.gmra.mxu2 %v685_v53  ;;  %733 = vmatmul.bf16.vlgmr.msrb.gmra.mxu3 %v685_v53 }
 0x192   :  { %846 = vmatpush.bf16.msrb.mxu0 %v1778_v16  ;;  %859 = vmatpush.bf16.msrb.mxu1 %v1780_v20 }
 0x193   :  { %872 = vmatpush.bf16.msrb.mxu2 %v1785_v25  ;;  %885 = vmatpush.bf16.msrb.mxu3 %v1782_v21 }
 0x196   :  { %847 = vmatpush.bf16.msrb.mxu0 %v1791_v32  ;;  %860 = vmatpush.bf16.msrb.mxu1 %v1795_v34 }
 0x197   :  { %873 = vmatpush.bf16.msrb.mxu2 %v1800_v39  ;;  %886 = vmatpush.bf16.msrb.mxu3 %v1797_v35 }
 0x19a   :  { %848 = vmatpush.bf16.msrb.mxu0 %v1803_v45  ;;  %861 = vmatpush.bf16.msrb.mxu1 %v1807_v46 }
 0x19b   :  { %874 = vmatpush.bf16.msrb.mxu2 %v1812_v51  ;;  %887 = vmatpush.bf16.msrb.mxu3 %v1809_v47 }
 0x19e   :  { %849 = vmatpush.bf16.msrb.mxu0 %v1818_v58  ;;  %862 = vmatpush.bf16.msrb.mxu1 %v1822_v59 }
 0x19f   :  { %875 = vmatpush.bf16.msrb.mxu2 %v1827_v0  ;;  %888 = vmatpush.bf16.msrb.mxu3 %v1824_v60 }
 0x1a2   :  { %850 = vmatpush.bf16.msrb.mxu0 %v1830_v6  ;;  %863 = vmatpush.bf16.msrb.mxu1 %v1834_v7 }
 0x1a3   :  { %876 = vmatpush.bf16.msrb.mxu2 %v1840_v12  ;;  %889 = vmatpush.bf16.msrb.mxu3 %v1836_v8 }
 0x1a6   :  { %851 = vmatpush.bf16.msrb.mxu0 %v1846_v19  ;;  %864 = vmatpush.bf16.msrb.mxu1 %v1850_v22 }
 0x1a7   :  { %877 = vmatpush.bf16.msrb.mxu2 %v1855_v28  ;;  %890 = vmatpush.bf16.msrb.mxu3 %v1852_v23 }
 0x1aa   :  { %852 = vmatpush.bf16.msrb.mxu0 %v1858_v37  ;;  %865 = vmatpush.bf16.msrb.mxu1 %v1862_v38 }
 0x1ab   :  { %878 = vmatpush.bf16.msrb.mxu2 %v1867_v44  ;;  %891 = vmatpush.bf16.msrb.mxu3 %v1864_v40 }
 0x1ae   :  { %853 = vmatpush.bf16.msrb.mxu0 %v1870_v54  ;;  %866 = vmatpush.bf16.msrb.mxu1 %v1874_v55 }
 0x1af   :  { %879 = vmatpush.bf16.msrb.mxu2 %v1882_v61  ;;  %892 = vmatpush.bf16.msrb.mxu3 %v1876_v56 }
 0x20d   :  { %v695_v3 = vpop.f32.mrf.mxu0  ;;  %v708_v26 = vpop.f32.mrf.mxu1 }
 0x20e   :  { %v738_v9 = vadd.f32 %v695_v3, %v1984_v33  ;;  %v739_v18 = vadd.f32 %v708_v26, %v1986_v41 }
 0x210   :  { %v742_v62 = vmul.f32 0.5, %v738_v9  ;;  %v743_v63 = vmul.f32 0.5, %v739_v18 }
 0x212   :  { %1475 = vtanh.f32 %v742_v62 }
 0x213   :  { %1477 = vtanh.f32 %v743_v63  ;;  %v2291_v63 = vld [vmem:[#allocation19_spill] sm:$0xff] }
 0x214   :  { %v721_v11 = vpop.f32.mrf.mxu2  ;;  %v734_v24 = vpop.f32.mrf.mxu3 }
 0x215   :  { %v740_v4 = vadd.f32 %v721_v11, %v1989_v43  ;;  %v741_v2 = vadd.f32 %v734_v24, %v1992_v50  ;;  %v697_v14 = vpop.f32.mrf.mxu0  ;;  %v710_v17 = vpop.f32.mrf.mxu1 }
 0x216   :  { %v2292_v17 = vld [vmem:[#allocation20_spill] sm:$0xff] }
 0x217   :  { %v744_v5 = vmul.f32 0.5, %v740_v4  ;;  %1479 = vtanh.f32 %v741_v2 }
 0x218   :  { %v1476_v36 = vpop.eup %1475 }
 0x219   :  { %v1478_v10 = vpop.eup %1477  ;;  %v748_v29 = vmul.f32 0.5, %v1476_v36  ;;  %1481 = vtanh.f32 %v744_v5  ;;  %v2293_v36 = vld [vmem:[#allocation21_spill] sm:$0xff] }
 0x21a   :  { %v749_v33 = vmul.f32 0.5, %v1478_v10 }
 0x21b   :  { %v751_v41 = vadd.f32 0.5, %v748_v29 }
 0x21c   :  { %v752_v42 = vadd.f32 0.5, %v749_v33  ;;  %v723_v13 = vpop.f32.mrf.mxu2  ;;  %v736_v27 = vpop.f32.mrf.mxu3 }
 0x21d   :  { %v1480_v31 = vpop.eup %1479 }
 0x21e   :  { %v755_v57 = vmul.f32 %v752_v42, %v2088_v15  ;;  %v756_v30 = vmul.f32 %v1480_v31, %v751_v41 }
 0x21f   :  { %v1482_v43 = vpop.eup %1481 }
 0x220   :  { %v2128_v48 = vadd.f32 %v756_v30, %v755_v57  ;;  %v750_v50 = vmul.f32 0.5, %v1482_v43 }
 0x222   :  { %1483 = vtanh.f32 %v2128_v48  ;;  %v753_v53 = vadd.f32 0.5, %v750_v50 }
 0x228   :  { %v1484_v3 = vpop.eup %1483 }
 0x229   :  { %v759_v26 = vmul.f32 %v1484_v3, %v753_v53 }
 0x22b   :  { %760 = vst [vmem:[#allocation11 + $0x10] sm:$0xff] %v759_v26  ;;  %v765_v9 = vpack.c.bf16 %v759_v26, %v759_v26 }
 0x22d   :  { %774 = vmatmul.bf16.vlgmr.msra.gmra.mxu0 %v765_v9  ;;  %787 = vmatmul.bf16.vlgmr.msra.gmra.mxu1 %v765_v9 }
 0x22e   :  { %800 = vmatmul.bf16.vlgmr.msra.gmra.mxu2 %v765_v9  ;;  %813 = vmatmul.bf16.vlgmr.msra.gmra.mxu3 %v765_v9 }
 0x22f   :  { %926 = vmatpush.bf16.msra.mxu0 %v1778_v16  ;;  %939 = vmatpush.bf16.msra.mxu1 %v1780_v20 }
 0x230   :  { %952 = vmatpush.bf16.msra.mxu2 %v1785_v25  ;;  %965 = vmatpush.bf16.msra.mxu3 %v1782_v21 }
 0x233   :  { %927 = vmatpush.bf16.msra.mxu0 %v1791_v32  ;;  %940 = vmatpush.bf16.msra.mxu1 %v1795_v34 }
 0x234   :  { %953 = vmatpush.bf16.msra.mxu2 %v1800_v39  ;;  %966 = vmatpush.bf16.msra.mxu3 %v1797_v35 }
 0x237   :  { %928 = vmatpush.bf16.msra.mxu0 %v1803_v45  ;;  %941 = vmatpush.bf16.msra.mxu1 %v1807_v46 }
 0x238   :  { %954 = vmatpush.bf16.msra.mxu2 %v1812_v51  ;;  %967 = vmatpush.bf16.msra.mxu3 %v1809_v47 }
 0x23b   :  { %929 = vmatpush.bf16.msra.mxu0 %v1818_v58  ;;  %942 = vmatpush.bf16.msra.mxu1 %v1822_v59 }
 0x23c   :  { %955 = vmatpush.bf16.msra.mxu2 %v1827_v0  ;;  %968 = vmatpush.bf16.msra.mxu3 %v1824_v60 }
 0x23f   :  { %930 = vmatpush.bf16.msra.mxu0 %v1830_v6  ;;  %943 = vmatpush.bf16.msra.mxu1 %v1834_v7 }
 0x240   :  { %956 = vmatpush.bf16.msra.mxu2 %v1840_v12  ;;  %969 = vmatpush.bf16.msra.mxu3 %v1836_v8 }
 0x243   :  { %931 = vmatpush.bf16.msra.mxu0 %v1846_v19  ;;  %944 = vmatpush.bf16.msra.mxu1 %v1850_v22 }
 0x244   :  { %957 = vmatpush.bf16.msra.mxu2 %v1855_v28  ;;  %970 = vmatpush.bf16.msra.mxu3 %v1852_v23 }
 0x247   :  { %932 = vmatpush.bf16.msra.mxu0 %v1858_v37  ;;  %945 = vmatpush.bf16.msra.mxu1 %v1862_v38 }
 0x248   :  { %958 = vmatpush.bf16.msra.mxu2 %v1867_v44  ;;  %971 = vmatpush.bf16.msra.mxu3 %v1864_v40 }
 0x24b   :  { %933 = vmatpush.bf16.msra.mxu0 %v1870_v54  ;;  %946 = vmatpush.bf16.msra.mxu1 %v1874_v55 }
 0x24c   :  { %959 = vmatpush.bf16.msra.mxu2 %v1882_v61  ;;  %972 = vmatpush.bf16.msra.mxu3 %v1876_v56 }
 0x2aa   :  { %v775_v15 = vpop.f32.mrf.mxu0  ;;  %v788_v18 = vpop.f32.mrf.mxu1 }
 0x2ab   :  { %v818_v62 = vadd.f32 %v775_v15, %v1994_v52  ;;  %v819_v11 = vadd.f32 %v788_v18, %v2291_v63 }
 0x2ad   :  { %v822_v24 = vmul.f32 0.5, %v818_v62  ;;  %v823_v4 = vmul.f32 0.5, %v819_v11 }
 0x2af   :  { %1485 = vtanh.f32 %v822_v24 }
 0x2b0   :  { %1487 = vtanh.f32 %v823_v4  ;;  %v2294_v4 = vld [vmem:[#allocation22_spill] sm:$0xff] }
 0x2b1   :  { %v801_v2 = vpop.f32.mrf.mxu2  ;;  %v814_v14 = vpop.f32.mrf.mxu3 }
 0x2b2   :  { %v820_v5 = vadd.f32 %v801_v2, %v2292_v17  ;;  %v821_v10 = vadd.f32 %v814_v14, %v2293_v36  ;;  %v777_v29 = vpop.f32.mrf.mxu0  ;;  %v790_v33 = vpop.f32.mrf.mxu1  ;;  %v2295_v14 = vld [vmem:[#allocation23_spill] sm:$0xff] }
 0x2b3   :  { %v2296_v33 = vld [vmem:[#allocation24_spill] sm:$0xff] }
 0x2b4   :  { %v824_v41 = vmul.f32 0.5, %v820_v5  ;;  %1489 = vtanh.f32 %v821_v10 }
 0x2b5   :  { %v1486_v42 = vpop.eup %1485 }
 0x2b6   :  { %v1488_v13 = vpop.eup %1487  ;;  %v828_v27 = vmul.f32 0.5, %v1486_v42  ;;  %1491 = vtanh.f32 %v824_v41  ;;  %v2297_v42 = vld [vmem:[#allocation25_spill] sm:$0xff] }
 0x2b7   :  { %v829_v52 = vmul.f32 0.5, %v1488_v13 }
 0x2b8   :  { %v831_v31 = vadd.f32 0.5, %v828_v27 }
 0x2b9   :  { %v832_v57 = vadd.f32 0.5, %v829_v52  ;;  %v803_v30 = vpop.f32.mrf.mxu2  ;;  %v816_v43 = vpop.f32.mrf.mxu3 }
 0x2ba   :  { %v1490_v50 = vpop.eup %1489 }
 0x2bb   :  { %v835_v53 = vmul.f32 %v832_v57, %v2128_v48  ;;  %v836_v3 = vmul.f32 %v1490_v50, %v831_v31 }
 0x2bc   :  { %v1492_v26 = vpop.eup %1491 }
 0x2bd   :  { %v2168_v9 = vadd.f32 %v836_v3, %v835_v53  ;;  %v830_v15 = vmul.f32 0.5, %v1492_v26 }
 0x2bf   :  { %1493 = vtanh.f32 %v2168_v9  ;;  %v833_v18 = vadd.f32 0.5, %v830_v15 }
 0x2c5   :  { %v1494_v62 = vpop.eup %1493 }
 0x2c6   :  { %v839_v63 = vmul.f32 %v1494_v62, %v833_v18 }
 0x2c8   :  { %840 = vst [vmem:[#allocation11 + $0x18] sm:$0xff] %v839_v63  ;;  %v845_v11 = vpack.c.bf16 %v839_v63, %v839_v63 }
 0x2ca   :  { %854 = vmatmul.bf16.vlgmr.msrb.gmra.mxu0 %v845_v11  ;;  %867 = vmatmul.bf16.vlgmr.msrb.gmra.mxu1 %v845_v11 }
 0x2cb   :  { %880 = vmatmul.bf16.vlgmr.msrb.gmra.mxu2 %v845_v11  ;;  %893 = vmatmul.bf16.vlgmr.msrb.gmra.mxu3 %v845_v11 }
 0x2cc   :  { %1006 = vmatpush.bf16.msrb.mxu0 %v1778_v16  ;;  %1019 = vmatpush.bf16.msrb.mxu1 %v1780_v20 }
 0x2cd   :  { %1032 = vmatpush.bf16.msrb.mxu2 %v1785_v25  ;;  %1045 = vmatpush.bf16.msrb.mxu3 %v1782_v21 }
 0x2d0   :  { %1007 = vmatpush.bf16.msrb.mxu0 %v1791_v32  ;;  %1020 = vmatpush.bf16.msrb.mxu1 %v1795_v34 }
 0x2d1   :  { %1033 = vmatpush.bf16.msrb.mxu2 %v1800_v39  ;;  %1046 = vmatpush.bf16.msrb.mxu3 %v1797_v35 }
 0x2d4   :  { %1008 = vmatpush.bf16.msrb.mxu0 %v1803_v45  ;;  %1021 = vmatpush.bf16.msrb.mxu1 %v1807_v46 }
 0x2d5   :  { %1034 = vmatpush.bf16.msrb.mxu2 %v1812_v51  ;;  %1047 = vmatpush.bf16.msrb.mxu3 %v1809_v47 }
 0x2d8   :  { %1009 = vmatpush.bf16.msrb.mxu0 %v1818_v58  ;;  %1022 = vmatpush.bf16.msrb.mxu1 %v1822_v59 }
 0x2d9   :  { %1035 = vmatpush.bf16.msrb.mxu2 %v1827_v0  ;;  %1048 = vmatpush.bf16.msrb.mxu3 %v1824_v60 }
 0x2dc   :  { %1010 = vmatpush.bf16.msrb.mxu0 %v1830_v6  ;;  %1023 = vmatpush.bf16.msrb.mxu1 %v1834_v7 }
 0x2dd   :  { %1036 = vmatpush.bf16.msrb.mxu2 %v1840_v12  ;;  %1049 = vmatpush.bf16.msrb.mxu3 %v1836_v8 }
 0x2e0   :  { %1011 = vmatpush.bf16.msrb.mxu0 %v1846_v19  ;;  %1024 = vmatpush.bf16.msrb.mxu1 %v1850_v22 }
 0x2e1   :  { %1037 = vmatpush.bf16.msrb.mxu2 %v1855_v28  ;;  %1050 = vmatpush.bf16.msrb.mxu3 %v1852_v23 }
 0x2e4   :  { %1012 = vmatpush.bf16.msrb.mxu0 %v1858_v37  ;;  %1025 = vmatpush.bf16.msrb.mxu1 %v1862_v38 }
 0x2e5   :  { %1038 = vmatpush.bf16.msrb.mxu2 %v1867_v44  ;;  %1051 = vmatpush.bf16.msrb.mxu3 %v1864_v40 }
 0x2e8   :  { %1013 = vmatpush.bf16.msrb.mxu0 %v1870_v54  ;;  %1026 = vmatpush.bf16.msrb.mxu1 %v1874_v55 }
 0x2e9   :  { %1039 = vmatpush.bf16.msrb.mxu2 %v1882_v61  ;;  %1052 = vmatpush.bf16.msrb.mxu3 %v1876_v56 }
 0x347   :  { %v855_v48 = vpop.f32.mrf.mxu0  ;;  %v868_v24 = vpop.f32.mrf.mxu1 }
 0x348   :  { %v898_v2 = vadd.f32 %v855_v48, %v2294_v4  ;;  %v899_v17 = vadd.f32 %v868_v24, %v2295_v14 }
 0x34a   :  { %v902_v5 = vmul.f32 0.5, %v898_v2  ;;  %v903_v36 = vmul.f32 0.5, %v899_v17 }
 0x34c   :  { %1495 = vtanh.f32 %v902_v5 }
 0x34d   :  { %1497 = vtanh.f32 %v903_v36 }
 0x34e   :  { %v881_v10 = vpop.f32.mrf.mxu2  ;;  %v894_v29 = vpop.f32.mrf.mxu3 }
 0x34f   :  { %v900_v41 = vadd.f32 %v881_v10, %v2296_v33  ;;  %v901_v13 = vadd.f32 %v894_v29, %v2297_v42  ;;  %v857_v27 = vpop.f32.mrf.mxu0  ;;  %v870_v52 = vpop.f32.mrf.mxu1  ;;  %v2302_v33 = vld [vmem:[#allocation30_spill] sm:$0xff]  ;;  %v2303_v42 = vld [vmem:[#allocation31_spill] sm:$0xff] }
 0x351   :  { %v904_v31 = vmul.f32 0.5, %v900_v41  ;;  %1499 = vtanh.f32 %v901_v13 }
 0x352   :  { %v1496_v57 = vpop.eup %1495 }
 0x353   :  { %v1498_v30 = vpop.eup %1497  ;;  %v908_v43 = vmul.f32 0.5, %v1496_v57  ;;  %1501 = vtanh.f32 %v904_v31 }
 0x354   :  { %v909_v50 = vmul.f32 0.5, %v1498_v30  ;;  %v2304_v30 = vld [vmem:[#allocation32_spill] sm:$0xff] }
 0x355   :  { %v911_v53 = vadd.f32 0.5, %v908_v43 }
 0x356   :  { %v912_v3 = vadd.f32 0.5, %v909_v50  ;;  %v883_v26 = vpop.f32.mrf.mxu2  ;;  %v896_v15 = vpop.f32.mrf.mxu3  ;;  %v2305_v50 = vld [vmem:[#allocation33_spill] sm:$0xff] }
 0x357   :  { %v1500_v18 = vpop.eup %1499 }
 0x358   :  { %v915_v62 = vmul.f32 %v912_v3, %v2168_v9  ;;  %v916_v63 = vmul.f32 %v1500_v18, %v911_v53 }
 0x359   :  { %v1502_v11 = vpop.eup %1501 }
 0x35a   :  { %v2208_v48 = vadd.f32 %v916_v63, %v915_v62  ;;  %v910_v24 = vmul.f32 0.5, %v1502_v11 }
 0x35c   :  { %1503 = vtanh.f32 %v2208_v48  ;;  %v913_v4 = vadd.f32 0.5, %v910_v24 }
 0x362   :  { %v1504_v2 = vpop.eup %1503 }
 0x363   :  { %v919_v14 = vmul.f32 %v1504_v2, %v913_v4 }
 0x365   :  { %920 = vst [vmem:[#allocation11 + $0x20] sm:$0xff] %v919_v14  ;;  %v925_v17 = vpack.c.bf16 %v919_v14, %v919_v14 }
 0x367   :  { %934 = vmatmul.bf16.vlgmr.msra.gmra.mxu0 %v925_v17  ;;  %947 = vmatmul.bf16.vlgmr.msra.gmra.mxu1 %v925_v17 }
 0x368   :  { %960 = vmatmul.bf16.vlgmr.msra.gmra.mxu2 %v925_v17  ;;  %973 = vmatmul.bf16.vlgmr.msra.gmra.mxu3 %v925_v17 }
 0x369   :  { %1086 = vmatpush.bf16.msra.mxu0 %v1778_v16  ;;  %1099 = vmatpush.bf16.msra.mxu1 %v1780_v20 }
 0x36a   :  { %1112 = vmatpush.bf16.msra.mxu2 %v1785_v25  ;;  %1125 = vmatpush.bf16.msra.mxu3 %v1782_v21  ;;  %v2298_v21 = vld [vmem:[#allocation26_spill] sm:$0xff] }
 0x36d   :  { %1087 = vmatpush.bf16.msra.mxu0 %v1791_v32  ;;  %1100 = vmatpush.bf16.msra.mxu1 %v1795_v34  ;;  %v2299_v32 = vld [vmem:[#allocation27_spill] sm:$0xff] }
 0x36e   :  { %1113 = vmatpush.bf16.msra.mxu2 %v1800_v39  ;;  %1126 = vmatpush.bf16.msra.mxu3 %v1797_v35 }
 0x371   :  { %1088 = vmatpush.bf16.msra.mxu0 %v1803_v45  ;;  %1101 = vmatpush.bf16.msra.mxu1 %v1807_v46 }
 0x372   :  { %1114 = vmatpush.bf16.msra.mxu2 %v1812_v51  ;;  %1127 = vmatpush.bf16.msra.mxu3 %v1809_v47  ;;  %v2300_v47 = vld [vmem:[#allocation28_spill] sm:$0xff] }
 0x375   :  { %1089 = vmatpush.bf16.msra.mxu0 %v1818_v58  ;;  %1102 = vmatpush.bf16.msra.mxu1 %v1822_v59  ;;  %v2301_v58 = vld [vmem:[#allocation29_spill] sm:$0xff] }
 0x376   :  { %1115 = vmatpush.bf16.msra.mxu2 %v1827_v0  ;;  %1128 = vmatpush.bf16.msra.mxu3 %v1824_v60 }
 0x379   :  { %1090 = vmatpush.bf16.msra.mxu0 %v1830_v6  ;;  %1103 = vmatpush.bf16.msra.mxu1 %v1834_v7 }
 0x37a   :  { %1116 = vmatpush.bf16.msra.mxu2 %v1840_v12  ;;  %1129 = vmatpush.bf16.msra.mxu3 %v1836_v8 }
 0x37d   :  { %1091 = vmatpush.bf16.msra.mxu0 %v1846_v19  ;;  %1104 = vmatpush.bf16.msra.mxu1 %v1850_v22 }
 0x37e   :  { %1117 = vmatpush.bf16.msra.mxu2 %v1855_v28  ;;  %1130 = vmatpush.bf16.msra.mxu3 %v1852_v23 }
 0x381   :  { %1092 = vmatpush.bf16.msra.mxu0 %v1858_v37  ;;  %1105 = vmatpush.bf16.msra.mxu1 %v1862_v38 }
 0x382   :  { %1118 = vmatpush.bf16.msra.mxu2 %v1867_v44  ;;  %1131 = vmatpush.bf16.msra.mxu3 %v1864_v40 }
 0x385   :  { %1093 = vmatpush.bf16.msra.mxu0 %v1870_v54  ;;  %1106 = vmatpush.bf16.msra.mxu1 %v1874_v55 }
 0x386   :  { %1119 = vmatpush.bf16.msra.mxu2 %v1882_v61  ;;  %1132 = vmatpush.bf16.msra.mxu3 %v1876_v56 }
 0x3e4   :  { %v935_v16 = vpop.f32.mrf.mxu0  ;;  %v948_v20 = vpop.f32.mrf.mxu1 }
 0x3e5   :  { %v978_v25 = vadd.f32 %v935_v16, %v2298_v21  ;;  %v979_v34 = vadd.f32 %v948_v20, %v2299_v32 }
 0x3e7   :  { %v982_v35 = vmul.f32 0.5, %v978_v25  ;;  %v983_v39 = vmul.f32 0.5, %v979_v34 }
 0x3e9   :  { %1505 = vtanh.f32 %v982_v35 }
 0x3ea   :  { %1507 = vtanh.f32 %v983_v39 }
 0x3eb   :  { %v961_v45 = vpop.f32.mrf.mxu2  ;;  %v974_v46 = vpop.f32.mrf.mxu3 }
 0x3ec   :  { %v980_v51 = vadd.f32 %v961_v45, %v2300_v47  ;;  %v981_v59 = vadd.f32 %v974_v46, %v2301_v58  ;;  %v937_v60 = vpop.f32.mrf.mxu0  ;;  %v950_v0 = vpop.f32.mrf.mxu1 }
 0x3ee   :  { %v984_v6 = vmul.f32 0.5, %v980_v51  ;;  %1509 = vtanh.f32 %v981_v59 }
 0x3ef   :  { %v1506_v7 = vpop.eup %1505 }
 0x3f0   :  { %v1508_v8 = vpop.eup %1507  ;;  %v988_v12 = vmul.f32 0.5, %v1506_v7  ;;  %1511 = vtanh.f32 %v984_v6  ;;  %v2306_v6 = vld [vmem:[#allocation34_spill] sm:$0xff] }
 0x3f1   :  { %v989_v19 = vmul.f32 0.5, %v1508_v8  ;;  %v2307_v8 = vld [vmem:[#allocation35_spill] sm:$0xff] }
 0x3f2   :  { %v991_v22 = vadd.f32 0.5, %v988_v12 }
 0x3f3   :  { %v992_v23 = vadd.f32 0.5, %v989_v19  ;;  %v963_v28 = vpop.f32.mrf.mxu2  ;;  %v976_v37 = vpop.f32.mrf.mxu3 }
 0x3f4   :  { %v1510_v38 = vpop.eup %1509 }
 0x3f5   :  { %v995_v40 = vmul.f32 %v992_v23, %v2208_v48  ;;  %v996_v44 = vmul.f32 %v1510_v38, %v991_v22 }
 0x3f6   :  { %v1512_v54 = vpop.eup %1511 }
 0x3f7   :  { %v997_v55 = vadd.f32 %v996_v44, %v995_v40  ;;  %v990_v56 = vmul.f32 0.5, %v1512_v54 }
 0x3f9   :  { %1513 = vtanh.f32 %v997_v55  ;;  %v993_v61 = vadd.f32 0.5, %v990_v56 }
 0x3ff   :  { %v1514_v9 = vpop.eup %1513 }
 0x400   :  { %v999_v5 = vmul.f32 %v1514_v9, %v993_v61 }
 0x402   :  { %1000 = vst [vmem:[#allocation11 + $0x28] sm:$0xff] %v999_v5  ;;  %v1005_v36 = vpack.c.bf16 %v999_v5, %v999_v5 }
 0x404   :  { %1014 = vmatmul.bf16.vlgmr.msrb.gmra.mxu0 %v1005_v36  ;;  %1027 = vmatmul.bf16.vlgmr.msrb.gmra.mxu1 %v1005_v36 }
 0x405   :  { %1040 = vmatmul.bf16.vlgmr.msrb.gmra.mxu2 %v1005_v36  ;;  %1053 = vmatmul.bf16.vlgmr.msrb.gmra.mxu3 %v1005_v36 }
 0x481   :  { %v1015_v10 = vpop.f32.mrf.mxu0  ;;  %v1028_v29 = vpop.f32.mrf.mxu1 }
 0x482   :  { %v1058_v41 = vadd.f32 %v1015_v10, %v2302_v33  ;;  %v1059_v13 = vadd.f32 %v1028_v29, %v2303_v42 }
 0x484   :  { %v1062_v27 = vmul.f32 0.5, %v1058_v41  ;;  %v1063_v52 = vmul.f32 0.5, %v1059_v13 }
 0x486   :  { %1515 = vtanh.f32 %v1062_v27 }
 0x487   :  { %1517 = vtanh.f32 %v1063_v52 }
 0x488   :  { %v1041_v31 = vpop.f32.mrf.mxu2  ;;  %v1054_v57 = vpop.f32.mrf.mxu3 }
 0x489   :  { %v1060_v43 = vadd.f32 %v1041_v31, %v2304_v30  ;;  %v1061_v53 = vadd.f32 %v1054_v57, %v2305_v50  ;;  %v1017_v3 = vpop.f32.mrf.mxu0  ;;  %v1030_v26 = vpop.f32.mrf.mxu1 }
 0x48b   :  { %v1064_v15 = vmul.f32 0.5, %v1060_v43  ;;  %1519 = vtanh.f32 %v1061_v53 }
 0x48c   :  { %v1516_v18 = vpop.eup %1515 }
 0x48d   :  { %v1518_v62 = vpop.eup %1517  ;;  %v1068_v63 = vmul.f32 0.5, %v1516_v18  ;;  %1521 = vtanh.f32 %v1064_v15 }
 0x48e   :  { %v1069_v11 = vmul.f32 0.5, %v1518_v62 }
 0x48f   :  { %v1071_v48 = vadd.f32 0.5, %v1068_v63 }
 0x490   :  { %v1072_v24 = vadd.f32 0.5, %v1069_v11  ;;  %v1043_v4 = vpop.f32.mrf.mxu2  ;;  %v1056_v2 = vpop.f32.mrf.mxu3 }
 0x491   :  { %v1520_v14 = vpop.eup %1519 }
 0x492   :  { %v1075_v17 = vmul.f32 %v1072_v24, %v997_v55  ;;  %v1076_v16 = vmul.f32 %v1520_v14, %v1071_v48 }
 0x493   :  { %v1522_v20 = vpop.eup %1521 }
 0x494   :  { %v1077_v21 = vadd.f32 %v1076_v16, %v1075_v17  ;;  %v1070_v25 = vmul.f32 0.5, %v1522_v20 }
 0x496   :  { %1523 = vtanh.f32 %v1077_v21  ;;  %v1073_v32 = vadd.f32 0.5, %v1070_v25 }
 0x49c   :  { %v1524_v34 = vpop.eup %1523 }
 0x49d   :  { %v1079_v35 = vmul.f32 %v1524_v34, %v1073_v32 }
 0x49f   :  { %1080 = vst [vmem:[#allocation11 + $0x30] sm:$0xff] %v1079_v35  ;;  %v1085_v39 = vpack.c.bf16 %v1079_v35, %v1079_v35 }
 0x4a1   :  { %1094 = vmatmul.bf16.vlgmr.msra.gmra.mxu0 %v1085_v39  ;;  %1107 = vmatmul.bf16.vlgmr.msra.gmra.mxu1 %v1085_v39 }
 0x4a2   :  { %1120 = vmatmul.bf16.vlgmr.msra.gmra.mxu2 %v1085_v39  ;;  %1133 = vmatmul.bf16.vlgmr.msra.gmra.mxu3 %v1085_v39 }
 0x51e   :  { %v1095_v45 = vpop.f32.mrf.mxu0  ;;  %v1108_v46 = vpop.f32.mrf.mxu1 }
 0x51f   :  { %v1138_v47 = vadd.f32 %v1095_v45, %v2034_v1  ;;  %v1139_v51 = vadd.f32 %v1108_v46, %v2036_v49 }
 0x521   :  { %v1142_v58 = vmul.f32 0.5, %v1138_v47  ;;  %v1143_v59 = vmul.f32 0.5, %v1139_v51 }
 0x523   :  { %1525 = vtanh.f32 %v1142_v58 }
 0x524   :  { %1527 = vtanh.f32 %v1143_v59 }
 0x525   :  { %v1121_v60 = vpop.f32.mrf.mxu2  ;;  %v1134_v0 = vpop.f32.mrf.mxu3 }
 0x526   :  { %v1140_v7 = vadd.f32 %v1121_v60, %v2306_v6  ;;  %v1141_v12 = vadd.f32 %v1134_v0, %v2307_v8  ;;  %v1097_v19 = vpop.f32.mrf.mxu0  ;;  %v1110_v22 = vpop.f32.mrf.mxu1 }
 0x528   :  { %v1144_v23 = vmul.f32 0.5, %v1140_v7  ;;  %1529 = vtanh.f32 %v1141_v12 }
 0x529   :  { %v1526_v28 = vpop.eup %1525 }
 0x52a   :  { %v1528_v37 = vpop.eup %1527  ;;  %v1148_v38 = vmul.f32 0.5, %v1526_v28  ;;  %1531 = vtanh.f32 %v1144_v23 }
 0x52b   :  { %v1149_v1 = vmul.f32 0.5, %v1528_v37 }
 0x52c   :  { %v1151_v49 = vadd.f32 0.5, %v1148_v38 }
 0x52d   :  { %v1152_v40 = vadd.f32 0.5, %v1149_v1  ;;  %v1123_v44 = vpop.f32.mrf.mxu2  ;;  %v1136_v54 = vpop.f32.mrf.mxu3 }
 0x52e   :  { %v1530_v55 = vpop.eup %1529 }
 0x52f   :  { %v1155_v56 = vmul.f32 %v1152_v40, %v1077_v21  ;;  %v1156_v61 = vmul.f32 %v1530_v55, %v1151_v49 }
 0x530   :  { %v1532_v9 = vpop.eup %1531 }
 0x531   :  { %v1157_v5 = vadd.f32 %v1156_v61, %v1155_v56  ;;  %v1150_v36 = vmul.f32 0.5, %v1532_v9 }
 0x533   :  { %1533 = vtanh.f32 %v1157_v5  ;;  %1165 = vst [vmem:[#allocation14] sm:$0xff] %v1157_v5  ;;  %v1153_v10 = vadd.f32 0.5, %v1150_v36 }
 0x539   :  { %v1534_v29 = vpop.eup %1533 }
 0x53a   :  { %v1159_v33 = vmul.f32 %v1534_v29, %v1153_v10 }
 0x53c   :  { %1160 = vst [vmem:[#allocation11 + $0x38] sm:$0xff] %v1159_v33 }
 0x53d   :  { %1164 = vst [vmem:[#allocation12] sm:$0xff] %v1159_v33  ;;  %1184 = dma.vmem_to_hbm [thread:$0]  %s1177_s20, 1024, %s1179_s22, [#allocation7], %s1695_s6, %s1695_s6, %s1696_s10  }
 0x53e   :  { %1195 = dma.vmem_to_hbm [thread:$0]  %s1191_s24, 128, %s1193_s26, [#allocation13]  }
 0x53f   :  { %1206 = dma.vmem_to_hbm [thread:$0]  %s1202_s28, 128, %s1204_s9, [#allocation13]  }
 0x540   :  { %1683 = dma.done.wait [#allocation7], 1024  }
 0x541   :  { %1684 = vsyncadd [#allocation7], 4294966272 }
 0x542   :  { %1685 = dma.done.wait [#allocation13], 256  }
 0x543   :  { %1686 = vsyncadd [#allocation13], 4294967040 }
 0x544   :  { %1219 = vsyncpa [#allocation6], 1 }
 0x545   :  { %1220 = vsyncpa [#allocation9], 1 }
 0x546   :  { %1221 = vsyncpa [#allocation7], 1 }
 0x547   :  { %1222 = vsyncpa [#allocation13], 1 }

// kernel: tpu_custom_call.1
= control target key start
LH: loop header
LB: loop body
LE: loop exit
PB: predicated region body
PF: predicated region fallthrough
CT: control target
= control target key end

     0   :  { %14 = vsyncpa [#allocation6], 0  ;;  %s2265_s0 = inlined_call_operand.vmem [shape: bf16[64,16], index: 0, kind: input, shape index: {}]   ;;  %s2266_s1 = inlined_call_operand.vmem [shape: bf16[16,512], index: 1, kind: input, shape index: {}]   ;;  %s2267_s2 = inlined_call_operand.hbm [shape: bf16[128,512], index: 2, kind: input, shape index: {}]   ;;  %s2268_s3 = inlined_call_operand.hbm [shape: f32[1,512], index: 3, kind: input, shape index: {}]   ;;  %s2269_s4 = inlined_call_operand.vmem [shape: f32[8,128], index: 4, kind: input, shape index: {}]   ;;  %s2270_s5 = inlined_call_operand.hbm [shape: f32[8,128], index: 5, kind: input, shape index: {}]   ;;  %s2271_s6 = inlined_call_operand.hbm [shape: f32[64,128], index: 6, kind: output, shape index: {0}]   ;;  %s2272_s7 = inlined_call_operand.hbm [shape: f32[8,128], index: 7, kind: output, shape index: {1}]   ;;  %s2273_s8 = inlined_call_operand.hbm [shape: f32[8,128], index: 8, kind: output, shape index: {2}]  }
   0x1   :  { %15 = vsyncpa [#allocation9], 0 }
   0x2   :  { %16 = vsyncpa [#allocation7], 0  ;;  %s48_s29 = sshll.u32 %s2268_s3, 4  ;;  %s49_s29 = int_to_ptr.hbm [resolvable:$true] %s48_s29 }
   0x3   :  { %17 = vsyncpa [#allocation13], 0  ;;  %s1687_s30 = smov [#allocation8]   ;;  %s34_s12 = sshll.u32 %s2267_s2, 4  ;;  %s35_s12 = int_to_ptr.hbm [resolvable:$true] %s34_s12 }
   0x4   :  { %s50_s9 = sshll.u32 %s1687_s30, 4  ;;  %s1688_s13 = smov [#allocation5]   ;;  %s51_s9 = int_to_ptr.vmem [resolvable:$true] %s50_s9 }
   0x5   :  { %53 = dma.hbm_to_vmem [thread:$0]  %s49_s29, 64, %s51_s9, [#allocation9]  }
   0x6   :  { %s36_s14 = sshll.u32 %s1688_s13, 4  ;;  %s1689_s15 = smov 256   ;;  %s37_s14 = int_to_ptr.vmem [resolvable:$true] %s36_s14 }
   0x7   :  { %s1690_s16 = smov 16   ;;  %s61_s3 = sshll.u32 %s2270_s5, 4  ;;  %s62_s3 = int_to_ptr.hbm [resolvable:$true] %s61_s3 }
   0x8   :  { %42 = dma.hbm_to_vmem [thread:$0]  %s35_s12, 4096, %s37_s14, [#allocation6], %s1689_s15, %s1689_s15, %s1690_s16  }
   0x9   :  { %s1691_s19 = smov [#allocation10]  }
   0xa   :  { %s63_s20 = sshll.u32 %s1691_s19, 4  ;;  %s64_s20 = int_to_ptr.vmem [resolvable:$true] %s63_s20 }
   0xb   :  { %66 = dma.hbm_to_vmem [thread:$0]  %s62_s3, 128, %s64_s20, [#allocation9]  }
   0xc   :  { %1679 = dma.done.wait [#allocation6], 4096  }
   0xd   :  { %1680 = vsyncadd [#allocation6], 4294963200 }
   0xe   :  { %1681 = dma.done.wait [#allocation9], 192  }
   0xf   :  { %1682 = vsyncadd [#allocation9], 4294967104  ;;  %v1247_v0 = vld [vmem:[%s2266_s1] sm:$0xf]  ;;  %v1411_v1 = vld [vmem:[%s2266_s1 + $0xc] sm:$0xf0] }
  0x10   :  { %v1409_v2 = vld [vmem:[%s2266_s1 + $0x4] sm:$0xf]  ;;  %v1248_v3 = vor.u32 %v1411_v1, %v1247_v0  ;;  %v1249_v4 = vld [vmem:[%s2266_s1 + $0x10] sm:$0xf0]  ;;  %v1255_v5 = vld [vmem:[%s2266_s1 + $0x8] sm:$0xf] }
  0x11   :  { %v1412_v6 = vld [vmem:[%s2266_s1 + $0x14] sm:$0xf0]  ;;  %v1252_v7 = vor.u32 %v1409_v2, %v1249_v4  ;;  %v1410_v9 = vld [vmem:[%s2266_s1 + $0xc] sm:$0xf]  ;;  %v1257_v10 = vld [vmem:[%s2266_s1 + $0x18] sm:$0xf0] }
  0x12   :  { %v1256_v8 = vor.u32 %v1412_v6, %v1255_v5  ;;  %v1405_v11 = vld [vmem:[%s2265_s0] sm:$0xff]  ;;  %vm166_vm0 = vcmask 130048   ;;  %186 = vmatpush.bf16.msra.mxu0 %v1248_v3  ;;  %v1260_v12 = vor.u32 %v1410_v9, %v1257_v10  ;;  %v1443_v14 = vld [vmem:[#allocation5 + $0xec] sm:$0xf0]  ;;  %v1393_v17 = vld [vmem:[#allocation5 + $0xf0] sm:$0xf0] }
  0x13   :  { %v1391_v13 = vld [vmem:[#allocation5 + $0xe0] sm:$0xf]  ;;  %v1441_v15 = vld [vmem:[#allocation5 + $0xe4] sm:$0xf]  ;;  %215 = vmatpush.bf16.msra.mxu1 %v1252_v7  ;;  %v1442_v18 = vld [vmem:[#allocation5 + $0xec] sm:$0xf] }
  0x14   :  { %244 = vmatpush.bf16.msra.mxu2 %v1256_v8  ;;  %v1778_v16 = vor.u32 %v1443_v14, %v1391_v13  ;;  %v1401_v19 = vld [vmem:[#allocation5 + $0xf8] sm:$0xf0]  ;;  %273 = vmatpush.bf16.msra.mxu3 %v1260_v12  ;;  %v1780_v20 = vor.u32 %v1441_v15, %v1393_v17  ;;  %v1399_v22 = vld [vmem:[#allocation5 + $0xe8] sm:$0xf]  ;;  %v1444_v23 = vld [vmem:[#allocation5 + $0xf4] sm:$0xf0] }
  0x15   :  { %v1782_v21 = vor.u32 %v1442_v18, %v1401_v19  ;;  %v1375_v24 = vld [vmem:[#allocation5 + $0xc0] sm:$0xf]  ;;  %1261 = vmatmul.msk.bf16.vlgmr.msra.gmra.mxu0 %vm166_vm0, %v1405_v11  ;;  %v1785_v25 = vor.u32 %v1444_v23, %v1399_v22  ;;  %v1439_v26 = vld [vmem:[#allocation5 + $0xcc] sm:$0xf0]  ;;  %v1437_v27 = vld [vmem:[#allocation5 + $0xc4] sm:$0xf] }
  0x16   :  { %v1377_v28 = vld [vmem:[#allocation5 + $0xd0] sm:$0xf0]  ;;  %1265 = vmatmul.msk.bf16.vlgmr.msra.gmra.mxu1 %vm166_vm0, %v1405_v11  ;;  %v1438_v29 = vld [vmem:[#allocation5 + $0xcc] sm:$0xf]  ;;  %v1385_v30 = vld [vmem:[#allocation5 + $0xd8] sm:$0xf0]  ;;  %526 = vmatpush.bf16.msrb.mxu0 %v1778_v16  ;;  %v1791_v32 = vor.u32 %v1439_v26, %v1375_v24 }
  0x17   :  { %1269 = vmatmul.msk.bf16.vlgmr.msra.gmra.mxu2 %vm166_vm0, %v1405_v11  ;;  %v1383_v31 = vld [vmem:[#allocation5 + $0xc8] sm:$0xf]  ;;  %1273 = vmatmul.msk.bf16.vlgmr.msra.gmra.mxu3 %vm166_vm0, %v1405_v11  ;;  %v1440_v33 = vld [vmem:[#allocation5 + $0xd4] sm:$0xf0]  ;;  %v1795_v34 = vor.u32 %v1437_v27, %v1377_v28  ;;  %v1797_v35 = vor.u32 %v1438_v29, %v1385_v30  ;;  %v1359_v36 = vld [vmem:[#allocation5 + $0xa0] sm:$0xf] }
  0x18   :  { %539 = vmatpush.bf16.msrb.mxu1 %v1780_v20  ;;  %565 = vmatpush.bf16.msrb.mxu3 %v1782_v21  ;;  %v1435_v37 = vld [vmem:[#allocation5 + $0xac] sm:$0xf0]  ;;  %v1433_v38 = vld [vmem:[#allocation5 + $0xa4] sm:$0xf]  ;;  %v1800_v39 = vor.u32 %v1440_v33, %v1383_v31  ;;  %v1361_v40 = vld [vmem:[#allocation5 + $0xb0] sm:$0xf0] }
  0x19   :  { %552 = vmatpush.bf16.msrb.mxu2 %v1785_v25  ;;  %v1434_v41 = vld [vmem:[#allocation5 + $0xac] sm:$0xf]  ;;  %v1369_v42 = vld [vmem:[#allocation5 + $0xb8] sm:$0xf0]  ;;  %v1367_v43 = vld [vmem:[#allocation5 + $0xa8] sm:$0xf]  ;;  %v1803_v45 = vor.u32 %v1435_v37, %v1359_v36  ;;  %v1807_v46 = vor.u32 %v1433_v38, %v1361_v40 }
  0x1a   :  { %v1436_v44 = vld [vmem:[#allocation5 + $0xb4] sm:$0xf0]  ;;  %527 = vmatpush.bf16.msrb.mxu0 %v1791_v32  ;;  %v1809_v47 = vor.u32 %v1434_v41, %v1369_v42  ;;  %v1343_v48 = vld [vmem:[#allocation5 + $0x80] sm:$0xf]  ;;  %v1431_v49 = vld [vmem:[#allocation5 + $0x8c] sm:$0xf0] }
  0x1b   :  { %v1429_v50 = vld [vmem:[#allocation5 + $0x84] sm:$0xf]  ;;  %v1812_v51 = vor.u32 %v1436_v44, %v1367_v43  ;;  %v1345_v52 = vld [vmem:[#allocation5 + $0x90] sm:$0xf0]  ;;  %v1430_v53 = vld [vmem:[#allocation5 + $0x8c] sm:$0xf]  ;;  %v1818_v58 = vor.u32 %v1431_v49, %v1343_v48 }
  0x1c   :  { %540 = vmatpush.bf16.msrb.mxu1 %v1795_v34  ;;  %566 = vmatpush.bf16.msrb.mxu3 %v1797_v35  ;;  %v1353_v54 = vld [vmem:[#allocation5 + $0x98] sm:$0xf0]  ;;  %v1351_v55 = vld [vmem:[#allocation5 + $0x88] sm:$0xf]  ;;  %v1432_v56 = vld [vmem:[#allocation5 + $0x94] sm:$0xf0]  ;;  %v1822_v59 = vor.u32 %v1429_v50, %v1345_v52 }
  0x1d   :  { %553 = vmatpush.bf16.msrb.mxu2 %v1800_v39  ;;  %v1406_v57 = vld [vmem:[%s2265_s0 + $0x8] sm:$0xff]  ;;  %v1824_v60 = vor.u32 %v1430_v53, %v1353_v54  ;;  %v1327_v61 = vld [vmem:[#allocation5 + $0x60] sm:$0xf]  ;;  %v1427_v62 = vld [vmem:[#allocation5 + $0x6c] sm:$0xf0]  ;;  %v1827_v0 = vor.u32 %v1432_v56, %v1351_v55  ;;  %s1178_s22 = sshll.u32 %s2271_s6, 4  ;;  %s1179_s22 = int_to_ptr.hbm [resolvable:$true] %s1178_s22 }
  0x1e   :  { %528 = vmatpush.bf16.msrb.mxu0 %v1803_v45  ;;  %v1425_v63 = vld [vmem:[#allocation5 + $0x64] sm:$0xf]  ;;  %v1329_v1 = vld [vmem:[#allocation5 + $0x70] sm:$0xf0]  ;;  %v1426_v2 = vld [vmem:[#allocation5 + $0x6c] sm:$0xf]  ;;  %v1830_v6 = vor.u32 %v1427_v62, %v1327_v61 }
  0x1f   :  { %v1337_v3 = vld [vmem:[#allocation5 + $0x78] sm:$0xf0]  ;;  %v1335_v4 = vld [vmem:[#allocation5 + $0x68] sm:$0xf]  ;;  %v1428_v5 = vld [vmem:[#allocation5 + $0x74] sm:$0xf0]  ;;  %v1834_v7 = vor.u32 %v1425_v63, %v1329_v1 }
  0x20   :  { %541 = vmatpush.bf16.msrb.mxu1 %v1807_v46  ;;  %567 = vmatpush.bf16.msrb.mxu3 %v1809_v47  ;;  %v1836_v8 = vor.u32 %v1426_v2, %v1337_v3  ;;  %v1311_v9 = vld [vmem:[#allocation5 + $0x40] sm:$0xf]  ;;  %v1423_v10 = vld [vmem:[#allocation5 + $0x4c] sm:$0xf0]  ;;  %v1421_v11 = vld [vmem:[#allocation5 + $0x44] sm:$0xf]  ;;  %v1840_v12 = vor.u32 %v1428_v5, %v1335_v4 }
  0x21   :  { %554 = vmatpush.bf16.msrb.mxu2 %v1812_v51  ;;  %v1313_v13 = vld [vmem:[#allocation5 + $0x50] sm:$0xf0]  ;;  %v1422_v14 = vld [vmem:[#allocation5 + $0x4c] sm:$0xf]  ;;  %v1321_v15 = vld [vmem:[#allocation5 + $0x58] sm:$0xf0]  ;;  %v1846_v19 = vor.u32 %v1423_v10, %v1311_v9 }
  0x22   :  { %529 = vmatpush.bf16.msrb.mxu0 %v1818_v58  ;;  %v1319_v17 = vld [vmem:[#allocation5 + $0x48] sm:$0xf]  ;;  %v1424_v18 = vld [vmem:[#allocation5 + $0x54] sm:$0xf0]  ;;  %v1850_v22 = vor.u32 %v1421_v11, %v1313_v13  ;;  %v1852_v23 = vor.u32 %v1422_v14, %v1321_v15  ;;  %v1295_v24 = vld [vmem:[#allocation5 + $0x20] sm:$0xf] }
  0x23   :  { %v1419_v26 = vld [vmem:[#allocation5 + $0x2c] sm:$0xf0]  ;;  %v1417_v27 = vld [vmem:[#allocation5 + $0x24] sm:$0xf]  ;;  %v1855_v28 = vor.u32 %v1424_v18, %v1319_v17  ;;  %v1297_v29 = vld [vmem:[#allocation5 + $0x30] sm:$0xf0] }
  0x24   :  { %542 = vmatpush.bf16.msrb.mxu1 %v1822_v59  ;;  %568 = vmatpush.bf16.msrb.mxu3 %v1824_v60  ;;  %v1418_v30 = vld [vmem:[#allocation5 + $0x2c] sm:$0xf]  ;;  %v1305_v31 = vld [vmem:[#allocation5 + $0x38] sm:$0xf0]  ;;  %v1303_v33 = vld [vmem:[#allocation5 + $0x28] sm:$0xf]  ;;  %v1858_v37 = vor.u32 %v1419_v26, %v1295_v24  ;;  %v1862_v38 = vor.u32 %v1417_v27, %v1297_v29 }
  0x25   :  { %1262 = vmatmul.msk.bf16.gmra.mxu0 %vm166_vm0, %v1406_v57  ;;  %555 = vmatpush.bf16.msrb.mxu2 %v1827_v0  ;;  %v1420_v36 = vld [vmem:[#allocation5 + $0x34] sm:$0xf0]  ;;  %v1864_v40 = vor.u32 %v1418_v30, %v1305_v31  ;;  %v1279_v41 = vld [vmem:[#allocation5] sm:$0xf]  ;;  %v1415_v42 = vld [vmem:[#allocation5 + $0xc] sm:$0xf0] }
  0x26   :  { %1266 = vmatmul.msk.bf16.gmra.mxu1 %vm166_vm0, %v1406_v57  ;;  %530 = vmatpush.bf16.msrb.mxu0 %v1830_v6  ;;  %v1413_v43 = vld [vmem:[#allocation5 + $0x4] sm:$0xf]  ;;  %v1867_v44 = vor.u32 %v1420_v36, %v1303_v33  ;;  %v1281_v48 = vld [vmem:[#allocation5 + $0x10] sm:$0xf0]  ;;  %v1414_v49 = vld [vmem:[#allocation5 + $0xc] sm:$0xf]  ;;  %v1870_v54 = vor.u32 %v1415_v42, %v1279_v41 }
  0x27   :  { %1270 = vmatmul.msk.bf16.gmra.mxu2 %vm166_vm0, %v1406_v57  ;;  %1274 = vmatmul.msk.bf16.gmra.mxu3 %vm166_vm0, %v1406_v57  ;;  %v1289_v50 = vld [vmem:[#allocation5 + $0x18] sm:$0xf0]  ;;  %v1287_v52 = vld [vmem:[#allocation5 + $0x8] sm:$0xf]  ;;  %v1416_v53 = vld [vmem:[#allocation5 + $0x14] sm:$0xf0]  ;;  %v1874_v55 = vor.u32 %v1413_v43, %v1281_v48 }
  0x28   :  { %543 = vmatpush.bf16.msrb.mxu1 %v1834_v7  ;;  %569 = vmatpush.bf16.msrb.mxu3 %v1836_v8  ;;  %v1876_v56 = vor.u32 %v1414_v49, %v1289_v50  ;;  %v1407_v57 = vld [vmem:[%s2265_s0 + $0x10] sm:$0xff]  ;;  %v1882_v61 = vor.u32 %v1416_v53, %v1287_v52  ;;  %v1408_v62 = vld [vmem:[%s2265_s0 + $0x18] sm:$0xff]  ;;  %v100_v63 = vld [vmem:[%s2269_s4] sm:$0xff]  ;;  %s1692_s4 = smov [#allocation11]   ;;  %s1693_s23 = smov [#allocation12]  }
  0x29   :  { %556 = vmatpush.bf16.msrb.mxu2 %v1840_v12  ;;  %v365_v1 = vpack.c.bf16 %v100_v63, %v100_v63  ;;  %v116_v4 = vld [vmem:[#allocation8] sm:$0xf]  ;;  %s1176_s20 = sshll.u32 %s1692_s4, 4  ;;  %s1190_s24 = sshll.u32 %s1693_s23, 4  ;;  %s1177_s20 = int_to_ptr.vmem [resolvable:$true] %s1176_s20  ;;  %s1191_s24 = int_to_ptr.vmem [resolvable:$true] %s1190_s24 }
  0x2a   :  { %531 = vmatpush.bf16.msrb.mxu0 %v1846_v19  ;;  %v118_v5 = vperm.slane %v116_v4, 0  ;;  %v119_v10 = vperm.slane %v116_v4, 1  ;;  %v1974_v18 = vperm.slane %v116_v4, 2  ;;  %v1976_v24 = vperm.slane %v116_v4, 3  ;;  %s1192_s26 = sshll.u32 %s2272_s7, 4  ;;  %s1694_s27 = smov [#allocation14]   ;;  %s1193_s26 = int_to_ptr.hbm [resolvable:$true] %s1192_s26 }
  0x2b   :  { %s1201_s28 = sshll.u32 %s1694_s27, 4  ;;  %s1203_s9 = sshll.u32 %s2273_s8, 4  ;;  %s1202_s28 = int_to_ptr.vmem [resolvable:$true] %s1201_s28  ;;  %s1204_s9 = int_to_ptr.hbm [resolvable:$true] %s1203_s9 }
  0x2c   :  { %544 = vmatpush.bf16.msrb.mxu1 %v1850_v22  ;;  %570 = vmatpush.bf16.msrb.mxu3 %v1852_v23  ;;  %s1695_s6 = smov 128   ;;  %s1696_s10 = smov 8  }
  0x2d   :  { %557 = vmatpush.bf16.msrb.mxu2 %v1855_v28 }
  0x2e   :  { %532 = vmatpush.bf16.msrb.mxu0 %v1858_v37 }
  0x30   :  { %545 = vmatpush.bf16.msrb.mxu1 %v1862_v38  ;;  %571 = vmatpush.bf16.msrb.mxu3 %v1864_v40 }
  0x31   :  { %558 = vmatpush.bf16.msrb.mxu2 %v1867_v44 }
  0x32   :  { %533 = vmatpush.bf16.msrb.mxu0 %v1870_v54 }
  0x34   :  { %546 = vmatpush.bf16.msrb.mxu1 %v1874_v55  ;;  %572 = vmatpush.bf16.msrb.mxu3 %v1876_v56 }
  0x35   :  { %1263 = vmatmul.msk.bf16.gmra.mxu0 %vm166_vm0, %v1407_v57  ;;  %559 = vmatpush.bf16.msrb.mxu2 %v1882_v61 }
  0x36   :  { %1267 = vmatmul.msk.bf16.gmra.mxu1 %vm166_vm0, %v1407_v57  ;;  %606 = vmatpush.bf16.msra.mxu0 %v1778_v16 }
  0x37   :  { %1271 = vmatmul.msk.bf16.gmra.mxu2 %vm166_vm0, %v1407_v57  ;;  %1275 = vmatmul.msk.bf16.gmra.mxu3 %vm166_vm0, %v1407_v57 }
  0x38   :  { %619 = vmatpush.bf16.msra.mxu1 %v1780_v20  ;;  %645 = vmatpush.bf16.msra.mxu3 %v1782_v21 }
  0x39   :  { %632 = vmatpush.bf16.msra.mxu2 %v1785_v25 }
  0x3a   :  { %607 = vmatpush.bf16.msra.mxu0 %v1791_v32 }
  0x3c   :  { %620 = vmatpush.bf16.msra.mxu1 %v1795_v34  ;;  %646 = vmatpush.bf16.msra.mxu3 %v1797_v35 }
  0x3d   :  { %633 = vmatpush.bf16.msra.mxu2 %v1800_v39 }
  0x3e   :  { %608 = vmatpush.bf16.msra.mxu0 %v1803_v45 }
  0x40   :  { %621 = vmatpush.bf16.msra.mxu1 %v1807_v46  ;;  %647 = vmatpush.bf16.msra.mxu3 %v1809_v47 }
  0x41   :  { %634 = vmatpush.bf16.msra.mxu2 %v1812_v51 }
  0x42   :  { %609 = vmatpush.bf16.msra.mxu0 %v1818_v58 }
  0x44   :  { %622 = vmatpush.bf16.msra.mxu1 %v1822_v59  ;;  %648 = vmatpush.bf16.msra.mxu3 %v1824_v60 }
  0x45   :  { %635 = vmatpush.bf16.msra.mxu2 %v1827_v0  ;;  %1264 = vmatmul.msk.bf16.gmra.mxu0 %vm166_vm0, %v1408_v62 }
  0x46   :  { %1268 = vmatmul.msk.bf16.gmra.mxu1 %vm166_vm0, %v1408_v62  ;;  %610 = vmatpush.bf16.msra.mxu0 %v1830_v6 }
  0x47   :  { %1272 = vmatmul.msk.bf16.gmra.mxu2 %vm166_vm0, %v1408_v62  ;;  %1276 = vmatmul.msk.bf16.gmra.mxu3 %vm166_vm0, %v1408_v62 }
  0x48   :  { %623 = vmatpush.bf16.msra.mxu1 %v1834_v7  ;;  %649 = vmatpush.bf16.msra.mxu3 %v1836_v8 }
  0x49   :  { %636 = vmatpush.bf16.msra.mxu2 %v1840_v12 }
  0x4a   :  { %611 = vmatpush.bf16.msra.mxu0 %v1846_v19 }
  0x4c   :  { %624 = vmatpush.bf16.msra.mxu1 %v1850_v22  ;;  %650 = vmatpush.bf16.msra.mxu3 %v1852_v23 }
  0x4d   :  { %637 = vmatpush.bf16.msra.mxu2 %v1855_v28 }
  0x4e   :  { %612 = vmatpush.bf16.msra.mxu0 %v1858_v37 }
  0x50   :  { %625 = vmatpush.bf16.msra.mxu1 %v1862_v38  ;;  %651 = vmatpush.bf16.msra.mxu3 %v1864_v40 }
  0x51   :  { %638 = vmatpush.bf16.msra.mxu2 %v1867_v44 }
  0x52   :  { %613 = vmatpush.bf16.msra.mxu0 %v1870_v54 }
  0x54   :  { %626 = vmatpush.bf16.msra.mxu1 %v1874_v55  ;;  %652 = vmatpush.bf16.msra.mxu3 %v1876_v56 }
  0x55   :  { %639 = vmatpush.bf16.msra.mxu2 %v1882_v61  ;;  %534 = vmatmul.bf16.vlgmr.msrb.gmra.mxu0 %v365_v1 }
  0x56   :  { %547 = vmatmul.bf16.vlgmr.msrb.gmra.mxu1 %v365_v1  ;;  %686 = vmatpush.bf16.msrb.mxu0 %v1778_v16 }
  0x57   :  { %560 = vmatmul.bf16.vlgmr.msrb.gmra.mxu2 %v365_v1  ;;  %573 = vmatmul.bf16.vlgmr.msrb.gmra.mxu3 %v365_v1 }
  0x58   :  { %699 = vmatpush.bf16.msrb.mxu1 %v1780_v20  ;;  %725 = vmatpush.bf16.msrb.mxu3 %v1782_v21 }
  0x59   :  { %712 = vmatpush.bf16.msrb.mxu2 %v1785_v25 }
  0x5a   :  { %687 = vmatpush.bf16.msrb.mxu0 %v1791_v32 }
  0x5c   :  { %700 = vmatpush.bf16.msrb.mxu1 %v1795_v34  ;;  %726 = vmatpush.bf16.msrb.mxu3 %v1797_v35 }
  0x5d   :  { %713 = vmatpush.bf16.msrb.mxu2 %v1800_v39 }
  0x5e   :  { %688 = vmatpush.bf16.msrb.mxu0 %v1803_v45 }
  0x60   :  { %701 = vmatpush.bf16.msrb.mxu1 %v1807_v46  ;;  %727 = vmatpush.bf16.msrb.mxu3 %v1809_v47 }
  0x61   :  { %714 = vmatpush.bf16.msrb.mxu2 %v1812_v51 }
  0x62   :  { %689 = vmatpush.bf16.msrb.mxu0 %v1818_v58 }
  0x64   :  { %702 = vmatpush.bf16.msrb.mxu1 %v1822_v59  ;;  %728 = vmatpush.bf16.msrb.mxu3 %v1824_v60 }
  0x65   :  { %715 = vmatpush.bf16.msrb.mxu2 %v1827_v0 }
  0x66   :  { %690 = vmatpush.bf16.msrb.mxu0 %v1830_v6 }
  0x68   :  { %703 = vmatpush.bf16.msrb.mxu1 %v1834_v7  ;;  %729 = vmatpush.bf16.msrb.mxu3 %v1836_v8 }
  0x69   :  { %716 = vmatpush.bf16.msrb.mxu2 %v1840_v12 }
  0x6a   :  { %691 = vmatpush.bf16.msrb.mxu0 %v1846_v19 }
  0x6c   :  { %704 = vmatpush.bf16.msrb.mxu1 %v1850_v22  ;;  %730 = vmatpush.bf16.msrb.mxu3 %v1852_v23 }
  0x6d   :  { %717 = vmatpush.bf16.msrb.mxu2 %v1855_v28 }
  0x6e   :  { %692 = vmatpush.bf16.msrb.mxu0 %v1858_v37 }
  0x70   :  { %705 = vmatpush.bf16.msrb.mxu1 %v1862_v38  ;;  %731 = vmatpush.bf16.msrb.mxu3 %v1864_v40 }
  0x71   :  { %718 = vmatpush.bf16.msrb.mxu2 %v1867_v44 }
  0x72   :  { %693 = vmatpush.bf16.msrb.mxu0 %v1870_v54 }
  0x74   :  { %706 = vmatpush.bf16.msrb.mxu1 %v1874_v55  ;;  %732 = vmatpush.bf16.msrb.mxu3 %v1876_v56 }
  0x75   :  { %719 = vmatpush.bf16.msrb.mxu2 %v1882_v61 }
  0x92   :  { %v188_v2 = vpop.f32.mrf.mxu0 }
  0x93   :  { %v217_v3 = vpop.f32.mrf.mxu1 }
  0x9a   :  { %v1966_v9 = vpop.f32.mrf.mxu2  ;;  %v1968_v11 = vpop.f32.mrf.mxu3 }
  0x9b   :  { %v190_v13 = vpop.f32.mrf.mxu0  ;;  %v219_v15 = vpop.f32.mrf.mxu1 }
  0x9c   :  { %v1970_v14 = vadd.f32 %v190_v13, %v118_v5  ;;  %v1972_v17 = vadd.f32 %v219_v15, %v119_v10 }
  0xa2   :  { %v248_v26 = vpop.f32.mrf.mxu2  ;;  %v277_v29 = vpop.f32.mrf.mxu3 }
  0xa3   :  { %v1979_v27 = vadd.f32 %v248_v26, %v1974_v18  ;;  %v193_v30 = vpop.f32.mrf.mxu0  ;;  %v1982_v31 = vadd.f32 %v277_v29, %v1976_v24  ;;  %v222_v36 = vpop.f32.mrf.mxu1 }
  0xa4   :  { %v1984_v33 = vadd.f32 %v193_v30, %v118_v5  ;;  %v1986_v41 = vadd.f32 %v222_v36, %v119_v10 }
  0xaa   :  { %v251_v42 = vpop.f32.mrf.mxu2  ;;  %v280_v48 = vpop.f32.mrf.mxu3 }
  0xab   :  { %v1989_v43 = vadd.f32 %v251_v42, %v1974_v18  ;;  %v195_v49 = vpop.f32.mrf.mxu0  ;;  %v1992_v50 = vadd.f32 %v280_v48, %v1976_v24  ;;  %v224_v53 = vpop.f32.mrf.mxu1 }
  0xac   :  { %v1994_v52 = vadd.f32 %v195_v49, %v118_v5  ;;  %v1996_v57 = vadd.f32 %v224_v53, %v119_v10 }
  0xae   :  { %2274 = vst [vmem:[#allocation19_spill] sm:$0xff] %v1996_v57 }
  0xb2   :  { %v253_v62 = vpop.f32.mrf.mxu2  ;;  %v282_v1 = vpop.f32.mrf.mxu3 }
  0xb3   :  { %v1999_v63 = vadd.f32 %v253_v62, %v1974_v18  ;;  %v198_v4 = vpop.f32.mrf.mxu0  ;;  %v2002_v13 = vadd.f32 %v282_v1, %v1976_v24  ;;  %v227_v26 = vpop.f32.mrf.mxu1 }
  0xb4   :  { %v2004_v15 = vadd.f32 %v198_v4, %v118_v5  ;;  %v2006_v29 = vadd.f32 %v227_v26, %v119_v10 }
  0xb5   :  { %2275 = vst [vmem:[#allocation20_spill] sm:$0xff] %v1999_v63 }
  0xb6   :  { %2276 = vst [vmem:[#allocation21_spill] sm:$0xff] %v2002_v13 }
  0xb7   :  { %2277 = vst [vmem:[#allocation22_spill] sm:$0xff] %v2004_v15 }
  0xb8   :  { %2278 = vst [vmem:[#allocation23_spill] sm:$0xff] %v2006_v29 }
  0xba   :  { %v256_v30 = vpop.f32.mrf.mxu2  ;;  %v285_v42 = vpop.f32.mrf.mxu3 }
  0xbb   :  { %v2009_v36 = vadd.f32 %v256_v30, %v1974_v18  ;;  %v200_v48 = vpop.f32.mrf.mxu0  ;;  %v2012_v49 = vadd.f32 %v285_v42, %v1976_v24  ;;  %v229_v62 = vpop.f32.mrf.mxu1 }
  0xbc   :  { %v2014_v53 = vadd.f32 %v200_v48, %v118_v5  ;;  %v2016_v63 = vadd.f32 %v229_v62, %v119_v10 }
  0xbd   :  { %2279 = vst [vmem:[#allocation24_spill] sm:$0xff] %v2009_v36 }
  0xbe   :  { %2280 = vst [vmem:[#allocation25_spill] sm:$0xff] %v2012_v49 }
  0xbf   :  { %2281 = vst [vmem:[#allocation26_spill] sm:$0xff] %v2014_v53 }
  0xc0   :  { %2282 = vst [vmem:[#allocation27_spill] sm:$0xff] %v2016_v63 }
  0xc2   :  { %v258_v1 = vpop.f32.mrf.mxu2  ;;  %v287_v26 = vpop.f32.mrf.mxu3 }
  0xc3   :  { %v2019_v4 = vadd.f32 %v258_v1, %v1974_v18  ;;  %v203_v29 = vpop.f32.mrf.mxu0  ;;  %v2022_v15 = vadd.f32 %v287_v26, %v1976_v24  ;;  %v232_v36 = vpop.f32.mrf.mxu1  ;;  %v189_v26 = vadd.f32 %v188_v2, %v118_v5  ;;  %v276_v2 = vadd.f32 %v1968_v11, %v1976_v24 }
  0xc4   :  { %v2024_v30 = vadd.f32 %v203_v29, %v118_v5  ;;  %v2026_v13 = vadd.f32 %v232_v36, %v119_v10 }
  0xc5   :  { %2283 = vst [vmem:[#allocation28_spill] sm:$0xff] %v2019_v4 }
  0xc6   :  { %2284 = vst [vmem:[#allocation29_spill] sm:$0xff] %v2022_v15 }
  0xc7   :  { %2285 = vst [vmem:[#allocation30_spill] sm:$0xff] %v2024_v30  ;;  %v218_v30 = vadd.f32 %v217_v3, %v119_v10 }
  0xc8   :  { %2286 = vst [vmem:[#allocation31_spill] sm:$0xff] %v2026_v13 }
  0xca   :  { %v261_v42 = vpop.f32.mrf.mxu2  ;;  %v290_v62 = vpop.f32.mrf.mxu3 }
  0xcb   :  { %v2029_v48 = vadd.f32 %v261_v42, %v1974_v18  ;;  %v205_v63 = vpop.f32.mrf.mxu0  ;;  %v2032_v53 = vadd.f32 %v290_v62, %v1976_v24  ;;  %v234_v4 = vpop.f32.mrf.mxu1 }
  0xcc   :  { %v2034_v1 = vadd.f32 %v205_v63, %v118_v5  ;;  %v2036_v49 = vadd.f32 %v234_v4, %v119_v10  ;;  %v247_v4 = vadd.f32 %v1966_v9, %v1974_v18 }
  0xcd   :  { %2287 = vst [vmem:[#allocation32_spill] sm:$0xff] %v2029_v48 }
  0xce   :  { %2288 = vst [vmem:[#allocation33_spill] sm:$0xff] %v2032_v53 }
  0xd2   :  { %v263_v29 = vpop.f32.mrf.mxu2  ;;  %v292_v13 = vpop.f32.mrf.mxu3 }
  0xd3   :  { %v2039_v36 = vadd.f32 %v263_v29, %v1974_v18  ;;  %v535_v15 = vpop.f32.mrf.mxu0  ;;  %v2042_v42 = vadd.f32 %v292_v13, %v1976_v24  ;;  %v548_v57 = vpop.f32.mrf.mxu1 }
  0xd4   :  { %v578_v48 = vadd.f32 %v535_v15, %v189_v26  ;;  %v579_v62 = vadd.f32 %v548_v57, %v218_v30  ;;  %v102_v26 = vld [vmem:[#allocation10] sm:$0xff] }
  0xd5   :  { %2289 = vst [vmem:[#allocation34_spill] sm:$0xff] %v2039_v36 }
  0xd6   :  { %2290 = vst [vmem:[#allocation35_spill] sm:$0xff] %v2042_v42  ;;  %v582_v53 = vmul.f32 0.5, %v578_v48  ;;  %v583_v63 = vmul.f32 0.5, %v579_v62 }
  0xd8   :  { %1455 = vtanh.f32 %v582_v53 }
  0xd9   :  { %1457 = vtanh.f32 %v583_v63 }
  0xda   :  { %v561_v3 = vpop.f32.mrf.mxu2  ;;  %v574_v10 = vpop.f32.mrf.mxu3 }
  0xdb   :  { %v580_v5 = vadd.f32 %v561_v3, %v247_v4  ;;  %v537_v29 = vpop.f32.mrf.mxu0  ;;  %v581_v36 = vadd.f32 %v574_v10, %v276_v2  ;;  %v550_v13 = vpop.f32.mrf.mxu1 }
  0xdd   :  { %v584_v42 = vmul.f32 0.5, %v580_v5  ;;  %1459 = vtanh.f32 %v581_v36 }
  0xde   :  { %v1456_v15 = vpop.eup %1455 }
  0xdf   :  { %v1458_v57 = vpop.eup %1457  ;;  %v588_v30 = vmul.f32 0.5, %v1456_v15  ;;  %1461 = vtanh.f32 %v584_v42 }
  0xe0   :  { %v589_v48 = vmul.f32 0.5, %v1458_v57 }
  0xe1   :  { %v591_v53 = vadd.f32 0.5, %v588_v30 }
  0xe2   :  { %v592_v9 = vadd.f32 0.5, %v589_v48  ;;  %v563_v18 = vpop.f32.mrf.mxu2  ;;  %v576_v62 = vpop.f32.mrf.mxu3 }
  0xe3   :  { %v1460_v63 = vpop.eup %1459 }
  0xe4   :  { %v595_v11 = vmul.f32 %v592_v9, %v102_v26  ;;  %v596_v24 = vmul.f32 %v1460_v63, %v591_v53 }
  0xe5   :  { %v1462_v4 = vpop.eup %1461 }
  0xe6   :  { %v2048_v3 = vadd.f32 %v596_v24, %v595_v11  ;;  %v590_v2 = vmul.f32 0.5, %v1462_v4 }
  0xe8   :  { %1463 = vtanh.f32 %v2048_v3  ;;  %v593_v5 = vadd.f32 0.5, %v590_v2 }
  0xee   :  { %v1464_v36 = vpop.eup %1463 }
  0xef   :  { %v599_v10 = vmul.f32 %v1464_v36, %v593_v5 }
  0xf1   :  { %600 = vst [vmem:[#allocation11] sm:$0xff] %v599_v10  ;;  %v605_v29 = vpack.c.bf16 %v599_v10, %v599_v10 }
  0xf3   :  { %614 = vmatmul.bf16.vlgmr.msra.gmra.mxu0 %v605_v29  ;;  %627 = vmatmul.bf16.vlgmr.msra.gmra.mxu1 %v605_v29 }
  0xf4   :  { %640 = vmatmul.bf16.vlgmr.msra.gmra.mxu2 %v605_v29  ;;  %653 = vmatmul.bf16.vlgmr.msra.gmra.mxu3 %v605_v29 }
  0xf5   :  { %766 = vmatpush.bf16.msra.mxu0 %v1778_v16  ;;  %779 = vmatpush.bf16.msra.mxu1 %v1780_v20 }
  0xf6   :  { %792 = vmatpush.bf16.msra.mxu2 %v1785_v25  ;;  %805 = vmatpush.bf16.msra.mxu3 %v1782_v21 }
  0xf9   :  { %767 = vmatpush.bf16.msra.mxu0 %v1791_v32  ;;  %780 = vmatpush.bf16.msra.mxu1 %v1795_v34 }
  0xfa   :  { %793 = vmatpush.bf16.msra.mxu2 %v1800_v39  ;;  %806 = vmatpush.bf16.msra.mxu3 %v1797_v35 }
  0xfd   :  { %768 = vmatpush.bf16.msra.mxu0 %v1803_v45  ;;  %781 = vmatpush.bf16.msra.mxu1 %v1807_v46 }
  0xfe   :  { %794 = vmatpush.bf16.msra.mxu2 %v1812_v51  ;;  %807 = vmatpush.bf16.msra.mxu3 %v1809_v47 }
 0x101   :  { %769 = vmatpush.bf16.msra.mxu0 %v1818_v58  ;;  %782 = vmatpush.bf16.msra.mxu1 %v1822_v59 }
 0x102   :  { %795 = vmatpush.bf16.msra.mxu2 %v1827_v0  ;;  %808 = vmatpush.bf16.msra.mxu3 %v1824_v60 }
 0x105   :  { %770 = vmatpush.bf16.msra.mxu0 %v1830_v6  ;;  %783 = vmatpush.bf16.msra.mxu1 %v1834_v7 }
 0x106   :  { %796 = vmatpush.bf16.msra.mxu2 %v1840_v12  ;;  %809 = vmatpush.bf16.msra.mxu3 %v1836_v8 }
 0x109   :  { %771 = vmatpush.bf16.msra.mxu0 %v1846_v19  ;;  %784 = vmatpush.bf16.msra.mxu1 %v1850_v22 }
 0x10a   :  { %797 = vmatpush.bf16.msra.mxu2 %v1855_v28  ;;  %810 = vmatpush.bf16.msra.mxu3 %v1852_v23 }
 0x10d   :  { %772 = vmatpush.bf16.msra.mxu0 %v1858_v37  ;;  %785 = vmatpush.bf16.msra.mxu1 %v1862_v38 }
 0x10e   :  { %798 = vmatpush.bf16.msra.mxu2 %v1867_v44  ;;  %811 = vmatpush.bf16.msra.mxu3 %v1864_v40 }
 0x111   :  { %773 = vmatpush.bf16.msra.mxu0 %v1870_v54  ;;  %786 = vmatpush.bf16.msra.mxu1 %v1874_v55 }
 0x112   :  { %799 = vmatpush.bf16.msra.mxu2 %v1882_v61  ;;  %812 = vmatpush.bf16.msra.mxu3 %v1876_v56 }
 0x170   :  { %v615_v42 = vpop.f32.mrf.mxu0  ;;  %v628_v13 = vpop.f32.mrf.mxu1 }
 0x171   :  { %v658_v15 = vadd.f32 %v615_v42, %v1970_v14  ;;  %v659_v57 = vadd.f32 %v628_v13, %v1972_v17 }
 0x173   :  { %v662_v30 = vmul.f32 0.5, %v658_v15  ;;  %v663_v48 = vmul.f32 0.5, %v659_v57 }
 0x175   :  { %1465 = vtanh.f32 %v662_v30 }
 0x176   :  { %1467 = vtanh.f32 %v663_v48 }
 0x177   :  { %v641_v53 = vpop.f32.mrf.mxu2  ;;  %v654_v26 = vpop.f32.mrf.mxu3 }
 0x178   :  { %v660_v9 = vadd.f32 %v641_v53, %v1979_v27  ;;  %v661_v18 = vadd.f32 %v654_v26, %v1982_v31  ;;  %v617_v62 = vpop.f32.mrf.mxu0  ;;  %v630_v63 = vpop.f32.mrf.mxu1 }
 0x17a   :  { %v664_v11 = vmul.f32 0.5, %v660_v9  ;;  %1469 = vtanh.f32 %v661_v18 }
 0x17b   :  { %v1466_v24 = vpop.eup %1465 }
 0x17c   :  { %v1468_v4 = vpop.eup %1467  ;;  %v668_v2 = vmul.f32 0.5, %v1466_v24  ;;  %1471 = vtanh.f32 %v664_v11 }
 0x17d   :  { %v669_v14 = vmul.f32 0.5, %v1468_v4 }
 0x17e   :  { %v671_v17 = vadd.f32 0.5, %v668_v2 }
 0x17f   :  { %v672_v5 = vadd.f32 0.5, %v669_v14  ;;  %v643_v36 = vpop.f32.mrf.mxu2  ;;  %v656_v10 = vpop.f32.mrf.mxu3 }
 0x180   :  { %v1470_v29 = vpop.eup %1469 }
 0x181   :  { %v675_v42 = vmul.f32 %v672_v5, %v2048_v3  ;;  %v676_v13 = vmul.f32 %v1470_v29, %v671_v17 }
 0x182   :  { %v1472_v27 = vpop.eup %1471 }
 0x183   :  { %v2088_v15 = vadd.f32 %v676_v13, %v675_v42  ;;  %v670_v31 = vmul.f32 0.5, %v1472_v27 }
 0x185   :  { %1473 = vtanh.f32 %v2088_v15  ;;  %v673_v57 = vadd.f32 0.5, %v670_v31 }
 0x18b   :  { %v1474_v30 = vpop.eup %1473 }
 0x18c   :  { %v679_v48 = vmul.f32 %v1474_v30, %v673_v57 }
 0x18e   :  { %680 = vst [vmem:[#allocation11 + $0x8] sm:$0xff] %v679_v48  ;;  %v685_v53 = vpack.c.bf16 %v679_v48, %v679_v48 }
 0x190   :  { %694 = vmatmul.bf16.vlgmr.msrb.gmra.mxu0 %v685_v53  ;;  %707 = vmatmul.bf16.vlgmr.msrb.gmra.mxu1 %v685_v53 }
 0x191   :  { %720 = vmatmul.bf16.vlgmr.msrb.gmra.mxu2 %v685_v53  ;;  %733 = vmatmul.bf16.vlgmr.msrb.gmra.mxu3 %v685_v53 }
 0x192   :  { %846 = vmatpush.bf16.msrb.mxu0 %v1778_v16  ;;  %859 = vmatpush.bf16.msrb.mxu1 %v1780_v20 }
 0x193   :  { %872 = vmatpush.bf16.msrb.mxu2 %v1785_v25  ;;  %885 = vmatpush.bf16.msrb.mxu3 %v1782_v21 }
 0x196   :  { %847 = vmatpush.bf16.msrb.mxu0 %v1791_v32  ;;  %860 = vmatpush.bf16.msrb.mxu1 %v1795_v34 }
 0x197   :  { %873 = vmatpush.bf16.msrb.mxu2 %v1800_v39  ;;  %886 = vmatpush.bf16.msrb.mxu3 %v1797_v35 }
 0x19a   :  { %848 = vmatpush.bf16.msrb.mxu0 %v1803_v45  ;;  %861 = vmatpush.bf16.msrb.mxu1 %v1807_v46 }
 0x19b   :  { %874 = vmatpush.bf16.msrb.mxu2 %v1812_v51  ;;  %887 = vmatpush.bf16.msrb.mxu3 %v1809_v47 }
 0x19e   :  { %849 = vmatpush.bf16.msrb.mxu0 %v1818_v58  ;;  %862 = vmatpush.bf16.msrb.mxu1 %v1822_v59 }
 0x19f   :  { %875 = vmatpush.bf16.msrb.mxu2 %v1827_v0  ;;  %888 = vmatpush.bf16.msrb.mxu3 %v1824_v60 }
 0x1a2   :  { %850 = vmatpush.bf16.msrb.mxu0 %v1830_v6  ;;  %863 = vmatpush.bf16.msrb.mxu1 %v1834_v7 }
 0x1a3   :  { %876 = vmatpush.bf16.msrb.mxu2 %v1840_v12  ;;  %889 = vmatpush.bf16.msrb.mxu3 %v1836_v8 }
 0x1a6   :  { %851 = vmatpush.bf16.msrb.mxu0 %v1846_v19  ;;  %864 = vmatpush.bf16.msrb.mxu1 %v1850_v22 }
 0x1a7   :  { %877 = vmatpush.bf16.msrb.mxu2 %v1855_v28  ;;  %890 = vmatpush.bf16.msrb.mxu3 %v1852_v23 }
 0x1aa   :  { %852 = vmatpush.bf16.msrb.mxu0 %v1858_v37  ;;  %865 = vmatpush.bf16.msrb.mxu1 %v1862_v38 }
 0x1ab   :  { %878 = vmatpush.bf16.msrb.mxu2 %v1867_v44  ;;  %891 = vmatpush.bf16.msrb.mxu3 %v1864_v40 }
 0x1ae   :  { %853 = vmatpush.bf16.msrb.mxu0 %v1870_v54  ;;  %866 = vmatpush.bf16.msrb.mxu1 %v1874_v55 }
 0x1af   :  { %879 = vmatpush.bf16.msrb.mxu2 %v1882_v61  ;;  %892 = vmatpush.bf16.msrb.mxu3 %v1876_v56 }
 0x20d   :  { %v695_v3 = vpop.f32.mrf.mxu0  ;;  %v708_v26 = vpop.f32.mrf.mxu1 }
 0x20e   :  { %v738_v9 = vadd.f32 %v695_v3, %v1984_v33  ;;  %v739_v18 = vadd.f32 %v708_v26, %v1986_v41 }
 0x210   :  { %v742_v62 = vmul.f32 0.5, %v738_v9  ;;  %v743_v63 = vmul.f32 0.5, %v739_v18 }
 0x212   :  { %1475 = vtanh.f32 %v742_v62 }
 0x213   :  { %1477 = vtanh.f32 %v743_v63  ;;  %v2291_v63 = vld [vmem:[#allocation19_spill] sm:$0xff] }
 0x214   :  { %v721_v11 = vpop.f32.mrf.mxu2  ;;  %v734_v24 = vpop.f32.mrf.mxu3 }
 0x215   :  { %v740_v4 = vadd.f32 %v721_v11, %v1989_v43  ;;  %v741_v2 = vadd.f32 %v734_v24, %v1992_v50  ;;  %v697_v14 = vpop.f32.mrf.mxu0  ;;  %v710_v17 = vpop.f32.mrf.mxu1 }
 0x216   :  { %v2292_v17 = vld [vmem:[#allocation20_spill] sm:$0xff] }
 0x217   :  { %v744_v5 = vmul.f32 0.5, %v740_v4  ;;  %1479 = vtanh.f32 %v741_v2 }
 0x218   :  { %v1476_v36 = vpop.eup %1475 }
 0x219   :  { %v1478_v10 = vpop.eup %1477  ;;  %v748_v29 = vmul.f32 0.5, %v1476_v36  ;;  %1481 = vtanh.f32 %v744_v5  ;;  %v2293_v36 = vld [vmem:[#allocation21_spill] sm:$0xff] }
 0x21a   :  { %v749_v33 = vmul.f32 0.5, %v1478_v10 }
 0x21b   :  { %v751_v41 = vadd.f32 0.5, %v748_v29 }
 0x21c   :  { %v752_v42 = vadd.f32 0.5, %v749_v33  ;;  %v723_v13 = vpop.f32.mrf.mxu2  ;;  %v736_v27 = vpop.f32.mrf.mxu3 }
 0x21d   :  { %v1480_v31 = vpop.eup %1479 }
 0x21e   :  { %v755_v57 = vmul.f32 %v752_v42, %v2088_v15  ;;  %v756_v30 = vmul.f32 %v1480_v31, %v751_v41 }
 0x21f   :  { %v1482_v43 = vpop.eup %1481 }
 0x220   :  { %v2128_v48 = vadd.f32 %v756_v30, %v755_v57  ;;  %v750_v50 = vmul.f32 0.5, %v1482_v43 }
 0x222   :  { %1483 = vtanh.f32 %v2128_v48  ;;  %v753_v53 = vadd.f32 0.5, %v750_v50 }
 0x228   :  { %v1484_v3 = vpop.eup %1483 }
 0x229   :  { %v759_v26 = vmul.f32 %v1484_v3, %v753_v53 }
 0x22b   :  { %760 = vst [vmem:[#allocation11 + $0x10] sm:$0xff] %v759_v26  ;;  %v765_v9 = vpack.c.bf16 %v759_v26, %v759_v26 }
 0x22d   :  { %774 = vmatmul.bf16.vlgmr.msra.gmra.mxu0 %v765_v9  ;;  %787 = vmatmul.bf16.vlgmr.msra.gmra.mxu1 %v765_v9 }
 0x22e   :  { %800 = vmatmul.bf16.vlgmr.msra.gmra.mxu2 %v765_v9  ;;  %813 = vmatmul.bf16.vlgmr.msra.gmra.mxu3 %v765_v9 }
 0x22f   :  { %926 = vmatpush.bf16.msra.mxu0 %v1778_v16  ;;  %939 = vmatpush.bf16.msra.mxu1 %v1780_v20 }
 0x230   :  { %952 = vmatpush.bf16.msra.mxu2 %v1785_v25  ;;  %965 = vmatpush.bf16.msra.mxu3 %v1782_v21 }
 0x233   :  { %927 = vmatpush.bf16.msra.mxu0 %v1791_v32  ;;  %940 = vmatpush.bf16.msra.mxu1 %v1795_v34 }
 0x234   :  { %953 = vmatpush.bf16.msra.mxu2 %v1800_v39  ;;  %966 = vmatpush.bf16.msra.mxu3 %v1797_v35 }
 0x237   :  { %928 = vmatpush.bf16.msra.mxu0 %v1803_v45  ;;  %941 = vmatpush.bf16.msra.mxu1 %v1807_v46 }
 0x238   :  { %954 = vmatpush.bf16.msra.mxu2 %v1812_v51  ;;  %967 = vmatpush.bf16.msra.mxu3 %v1809_v47 }
 0x23b   :  { %929 = vmatpush.bf16.msra.mxu0 %v1818_v58  ;;  %942 = vmatpush.bf16.msra.mxu1 %v1822_v59 }
 0x23c   :  { %955 = vmatpush.bf16.msra.mxu2 %v1827_v0  ;;  %968 = vmatpush.bf16.msra.mxu3 %v1824_v60 }
 0x23f   :  { %930 = vmatpush.bf16.msra.mxu0 %v1830_v6  ;;  %943 = vmatpush.bf16.msra.mxu1 %v1834_v7 }
 0x240   :  { %956 = vmatpush.bf16.msra.mxu2 %v1840_v12  ;;  %969 = vmatpush.bf16.msra.mxu3 %v1836_v8 }
 0x243   :  { %931 = vmatpush.bf16.msra.mxu0 %v1846_v19  ;;  %944 = vmatpush.bf16.msra.mxu1 %v1850_v22 }
 0x244   :  { %957 = vmatpush.bf16.msra.mxu2 %v1855_v28  ;;  %970 = vmatpush.bf16.msra.mxu3 %v1852_v23 }
 0x247   :  { %932 = vmatpush.bf16.msra.mxu0 %v1858_v37  ;;  %945 = vmatpush.bf16.msra.mxu1 %v1862_v38 }
 0x248   :  { %958 = vmatpush.bf16.msra.mxu2 %v1867_v44  ;;  %971 = vmatpush.bf16.msra.mxu3 %v1864_v40 }
 0x24b   :  { %933 = vmatpush.bf16.msra.mxu0 %v1870_v54  ;;  %946 = vmatpush.bf16.msra.mxu1 %v1874_v55 }
 0x24c   :  { %959 = vmatpush.bf16.msra.mxu2 %v1882_v61  ;;  %972 = vmatpush.bf16.msra.mxu3 %v1876_v56 }
 0x2aa   :  { %v775_v15 = vpop.f32.mrf.mxu0  ;;  %v788_v18 = vpop.f32.mrf.mxu1 }
 0x2ab   :  { %v818_v62 = vadd.f32 %v775_v15, %v1994_v52  ;;  %v819_v11 = vadd.f32 %v788_v18, %v2291_v63 }
 0x2ad   :  { %v822_v24 = vmul.f32 0.5, %v818_v62  ;;  %v823_v4 = vmul.f32 0.5, %v819_v11 }
 0x2af   :  { %1485 = vtanh.f32 %v822_v24 }
 0x2b0   :  { %1487 = vtanh.f32 %v823_v4  ;;  %v2294_v4 = vld [vmem:[#allocation22_spill] sm:$0xff] }
 0x2b1   :  { %v801_v2 = vpop.f32.mrf.mxu2  ;;  %v814_v14 = vpop.f32.mrf.mxu3 }
 0x2b2   :  { %v820_v5 = vadd.f32 %v801_v2, %v2292_v17  ;;  %v821_v10 = vadd.f32 %v814_v14, %v2293_v36  ;;  %v777_v29 = vpop.f32.mrf.mxu0  ;;  %v790_v33 = vpop.f32.mrf.mxu1  ;;  %v2295_v14 = vld [vmem:[#allocation23_spill] sm:$0xff] }
 0x2b3   :  { %v2296_v33 = vld [vmem:[#allocation24_spill] sm:$0xff] }
 0x2b4   :  { %v824_v41 = vmul.f32 0.5, %v820_v5  ;;  %1489 = vtanh.f32 %v821_v10 }
 0x2b5   :  { %v1486_v42 = vpop.eup %1485 }
 0x2b6   :  { %v1488_v13 = vpop.eup %1487  ;;  %v828_v27 = vmul.f32 0.5, %v1486_v42  ;;  %1491 = vtanh.f32 %v824_v41  ;;  %v2297_v42 = vld [vmem:[#allocation25_spill] sm:$0xff] }
 0x2b7   :  { %v829_v52 = vmul.f32 0.5, %v1488_v13 }
 0x2b8   :  { %v831_v31 = vadd.f32 0.5, %v828_v27 }
 0x2b9   :  { %v832_v57 = vadd.f32 0.5, %v829_v52  ;;  %v803_v30 = vpop.f32.mrf.mxu2  ;;  %v816_v43 = vpop.f32.mrf.mxu3 }
 0x2ba   :  { %v1490_v50 = vpop.eup %1489 }
 0x2bb   :  { %v835_v53 = vmul.f32 %v832_v57, %v2128_v48  ;;  %v836_v3 = vmul.f32 %v1490_v50, %v831_v31 }
 0x2bc   :  { %v1492_v26 = vpop.eup %1491 }
 0x2bd   :  { %v2168_v9 = vadd.f32 %v836_v3, %v835_v53  ;;  %v830_v15 = vmul.f32 0.5, %v1492_v26 }
 0x2bf   :  { %1493 = vtanh.f32 %v2168_v9  ;;  %v833_v18 = vadd.f32 0.5, %v830_v15 }
 0x2c5   :  { %v1494_v62 = vpop.eup %1493 }
 0x2c6   :  { %v839_v63 = vmul.f32 %v1494_v62, %v833_v18 }
 0x2c8   :  { %840 = vst [vmem:[#allocation11 + $0x18] sm:$0xff] %v839_v63  ;;  %v845_v11 = vpack.c.bf16 %v839_v63, %v839_v63 }
 0x2ca   :  { %854 = vmatmul.bf16.vlgmr.msrb.gmra.mxu0 %v845_v11  ;;  %867 = vmatmul.bf16.vlgmr.msrb.gmra.mxu1 %v845_v11 }
 0x2cb   :  { %880 = vmatmul.bf16.vlgmr.msrb.gmra.mxu2 %v845_v11  ;;  %893 = vmatmul.bf16.vlgmr.msrb.gmra.mxu3 %v845_v11 }
 0x2cc   :  { %1006 = vmatpush.bf16.msrb.mxu0 %v1778_v16  ;;  %1019 = vmatpush.bf16.msrb.mxu1 %v1780_v20 }
 0x2cd   :  { %1032 = vmatpush.bf16.msrb.mxu2 %v1785_v25  ;;  %1045 = vmatpush.bf16.msrb.mxu3 %v1782_v21 }
 0x2d0   :  { %1007 = vmatpush.bf16.msrb.mxu0 %v1791_v32  ;;  %1020 = vmatpush.bf16.msrb.mxu1 %v1795_v34 }
 0x2d1   :  { %1033 = vmatpush.bf16.msrb.mxu2 %v1800_v39  ;;  %1046 = vmatpush.bf16.msrb.mxu3 %v1797_v35 }
 0x2d4   :  { %1008 = vmatpush.bf16.msrb.mxu0 %v1803_v45  ;;  %1021 = vmatpush.bf16.msrb.mxu1 %v1807_v46 }
 0x2d5   :  { %1034 = vmatpush.bf16.msrb.mxu2 %v1812_v51  ;;  %1047 = vmatpush.bf16.msrb.mxu3 %v1809_v47 }
 0x2d8   :  { %1009 = vmatpush.bf16.msrb.mxu0 %v1818_v58  ;;  %1022 = vmatpush.bf16.msrb.mxu1 %v1822_v59 }
 0x2d9   :  { %1035 = vmatpush.bf16.msrb.mxu2 %v1827_v0  ;;  %1048 = vmatpush.bf16.msrb.mxu3 %v1824_v60 }
 0x2dc   :  { %1010 = vmatpush.bf16.msrb.mxu0 %v1830_v6  ;;  %1023 = vmatpush.bf16.msrb.mxu1 %v1834_v7 }
 0x2dd   :  { %1036 = vmatpush.bf16.msrb.mxu2 %v1840_v12  ;;  %1049 = vmatpush.bf16.msrb.mxu3 %v1836_v8 }
 0x2e0   :  { %1011 = vmatpush.bf16.msrb.mxu0 %v1846_v19  ;;  %1024 = vmatpush.bf16.msrb.mxu1 %v1850_v22 }
 0x2e1   :  { %1037 = vmatpush.bf16.msrb.mxu2 %v1855_v28  ;;  %1050 = vmatpush.bf16.msrb.mxu3 %v1852_v23 }
 0x2e4   :  { %1012 = vmatpush.bf16.msrb.mxu0 %v1858_v37  ;;  %1025 = vmatpush.bf16.msrb.mxu1 %v1862_v38 }
 0x2e5   :  { %1038 = vmatpush.bf16.msrb.mxu2 %v1867_v44  ;;  %1051 = vmatpush.bf16.msrb.mxu3 %v1864_v40 }
 0x2e8   :  { %1013 = vmatpush.bf16.msrb.mxu0 %v1870_v54  ;;  %1026 = vmatpush.bf16.msrb.mxu1 %v1874_v55 }
 0x2e9   :  { %1039 = vmatpush.bf16.msrb.mxu2 %v1882_v61  ;;  %1052 = vmatpush.bf16.msrb.mxu3 %v1876_v56 }
 0x347   :  { %v855_v48 = vpop.f32.mrf.mxu0  ;;  %v868_v24 = vpop.f32.mrf.mxu1 }
 0x348   :  { %v898_v2 = vadd.f32 %v855_v48, %v2294_v4  ;;  %v899_v17 = vadd.f32 %v868_v24, %v2295_v14 }
 0x34a   :  { %v902_v5 = vmul.f32 0.5, %v898_v2  ;;  %v903_v36 = vmul.f32 0.5, %v899_v17 }
 0x34c   :  { %1495 = vtanh.f32 %v902_v5 }
 0x34d   :  { %1497 = vtanh.f32 %v903_v36 }
 0x34e   :  { %v881_v10 = vpop.f32.mrf.mxu2  ;;  %v894_v29 = vpop.f32.mrf.mxu3 }
 0x34f   :  { %v900_v41 = vadd.f32 %v881_v10, %v2296_v33  ;;  %v901_v13 = vadd.f32 %v894_v29, %v2297_v42  ;;  %v857_v27 = vpop.f32.mrf.mxu0  ;;  %v870_v52 = vpop.f32.mrf.mxu1  ;;  %v2302_v33 = vld [vmem:[#allocation30_spill] sm:$0xff]  ;;  %v2303_v42 = vld [vmem:[#allocation31_spill] sm:$0xff] }
 0x351   :  { %v904_v31 = vmul.f32 0.5, %v900_v41  ;;  %1499 = vtanh.f32 %v901_v13 }
 0x352   :  { %v1496_v57 = vpop.eup %1495 }
 0x353   :  { %v1498_v30 = vpop.eup %1497  ;;  %v908_v43 = vmul.f32 0.5, %v1496_v57  ;;  %1501 = vtanh.f32 %v904_v31 }
 0x354   :  { %v909_v50 = vmul.f32 0.5, %v1498_v30  ;;  %v2304_v30 = vld [vmem:[#allocation32_spill] sm:$0xff] }
 0x355   :  { %v911_v53 = vadd.f32 0.5, %v908_v43 }
 0x356   :  { %v912_v3 = vadd.f32 0.5, %v909_v50  ;;  %v883_v26 = vpop.f32.mrf.mxu2  ;;  %v896_v15 = vpop.f32.mrf.mxu3  ;;  %v2305_v50 = vld [vmem:[#allocation33_spill] sm:$0xff] }
 0x357   :  { %v1500_v18 = vpop.eup %1499 }
 0x358   :  { %v915_v62 = vmul.f32 %v912_v3, %v2168_v9  ;;  %v916_v63 = vmul.f32 %v1500_v18, %v911_v53 }
 0x359   :  { %v1502_v11 = vpop.eup %1501 }
 0x35a   :  { %v2208_v48 = vadd.f32 %v916_v63, %v915_v62  ;;  %v910_v24 = vmul.f32 0.5, %v1502_v11 }
 0x35c   :  { %1503 = vtanh.f32 %v2208_v48  ;;  %v913_v4 = vadd.f32 0.5, %v910_v24 }
 0x362   :  { %v1504_v2 = vpop.eup %1503 }
 0x363   :  { %v919_v14 = vmul.f32 %v1504_v2, %v913_v4 }
 0x365   :  { %920 = vst [vmem:[#allocation11 + $0x20] sm:$0xff] %v919_v14  ;;  %v925_v17 = vpack.c.bf16 %v919_v14, %v919_v14 }
 0x367   :  { %934 = vmatmul.bf16.vlgmr.msra.gmra.mxu0 %v925_v17  ;;  %947 = vmatmul.bf16.vlgmr.msra.gmra.mxu1 %v925_v17 }
 0x368   :  { %960 = vmatmul.bf16.vlgmr.msra.gmra.mxu2 %v925_v17  ;;  %973 = vmatmul.bf16.vlgmr.msra.gmra.mxu3 %v925_v17 }
 0x369   :  { %1086 = vmatpush.bf16.msra.mxu0 %v1778_v16  ;;  %1099 = vmatpush.bf16.msra.mxu1 %v1780_v20 }
 0x36a   :  { %1112 = vmatpush.bf16.msra.mxu2 %v1785_v25  ;;  %1125 = vmatpush.bf16.msra.mxu3 %v1782_v21  ;;  %v2298_v21 = vld [vmem:[#allocation26_spill] sm:$0xff] }
 0x36d   :  { %1087 = vmatpush.bf16.msra.mxu0 %v1791_v32  ;;  %1100 = vmatpush.bf16.msra.mxu1 %v1795_v34  ;;  %v2299_v32 = vld [vmem:[#allocation27_spill] sm:$0xff] }
 0x36e   :  { %1113 = vmatpush.bf16.msra.mxu2 %v1800_v39  ;;  %1126 = vmatpush.bf16.msra.mxu3 %v1797_v35 }
 0x371   :  { %1088 = vmatpush.bf16.msra.mxu0 %v1803_v45  ;;  %1101 = vmatpush.bf16.msra.mxu1 %v1807_v46 }
 0x372   :  { %1114 = vmatpush.bf16.msra.mxu2 %v1812_v51  ;;  %1127 = vmatpush.bf16.msra.mxu3 %v1809_v47  ;;  %v2300_v47 = vld [vmem:[#allocation28_spill] sm:$0xff] }
 0x375   :  { %1089 = vmatpush.bf16.msra.mxu0 %v1818_v58  ;;  %1102 = vmatpush.bf16.msra.mxu1 %v1822_v59  ;;  %v2301_v58 = vld [vmem:[#allocation29_spill] sm:$0xff] }
 0x376   :  { %1115 = vmatpush.bf16.msra.mxu2 %v1827_v0  ;;  %1128 = vmatpush.bf16.msra.mxu3 %v1824_v60 }
 0x379   :  { %1090 = vmatpush.bf16.msra.mxu0 %v1830_v6  ;;  %1103 = vmatpush.bf16.msra.mxu1 %v1834_v7 }
 0x37a   :  { %1116 = vmatpush.bf16.msra.mxu2 %v1840_v12  ;;  %1129 = vmatpush.bf16.msra.mxu3 %v1836_v8 }
 0x37d   :  { %1091 = vmatpush.bf16.msra.mxu0 %v1846_v19  ;;  %1104 = vmatpush.bf16.msra.mxu1 %v1850_v22 }
 0x37e   :  { %1117 = vmatpush.bf16.msra.mxu2 %v1855_v28  ;;  %1130 = vmatpush.bf16.msra.mxu3 %v1852_v23 }
 0x381   :  { %1092 = vmatpush.bf16.msra.mxu0 %v1858_v37  ;;  %1105 = vmatpush.bf16.msra.mxu1 %v1862_v38 }
 0x382   :  { %1118 = vmatpush.bf16.msra.mxu2 %v1867_v44  ;;  %1131 = vmatpush.bf16.msra.mxu3 %v1864_v40 }
 0x385   :  { %1093 = vmatpush.bf16.msra.mxu0 %v1870_v54  ;;  %1106 = vmatpush.bf16.msra.mxu1 %v1874_v55 }
 0x386   :  { %1119 = vmatpush.bf16.msra.mxu2 %v1882_v61  ;;  %1132 = vmatpush.bf16.msra.mxu3 %v1876_v56 }
 0x3e4   :  { %v935_v16 = vpop.f32.mrf.mxu0  ;;  %v948_v20 = vpop.f32.mrf.mxu1 }
 0x3e5   :  { %v978_v25 = vadd.f32 %v935_v16, %v2298_v21  ;;  %v979_v34 = vadd.f32 %v948_v20, %v2299_v32 }
 0x3e7   :  { %v982_v35 = vmul.f32 0.5, %v978_v25  ;;  %v983_v39 = vmul.f32 0.5, %v979_v34 }
 0x3e9   :  { %1505 = vtanh.f32 %v982_v35 }
 0x3ea   :  { %1507 = vtanh.f32 %v983_v39 }
 0x3eb   :  { %v961_v45 = vpop.f32.mrf.mxu2  ;;  %v974_v46 = vpop.f32.mrf.mxu3 }
 0x3ec   :  { %v980_v51 = vadd.f32 %v961_v45, %v2300_v47  ;;  %v981_v59 = vadd.f32 %v974_v46, %v2301_v58  ;;  %v937_v60 = vpop.f32.mrf.mxu0  ;;  %v950_v0 = vpop.f32.mrf.mxu1 }
 0x3ee   :  { %v984_v6 = vmul.f32 0.5, %v980_v51  ;;  %1509 = vtanh.f32 %v981_v59 }
 0x3ef   :  { %v1506_v7 = vpop.eup %1505 }
 0x3f0   :  { %v1508_v8 = vpop.eup %1507  ;;  %v988_v12 = vmul.f32 0.5, %v1506_v7  ;;  %1511 = vtanh.f32 %v984_v6  ;;  %v2306_v6 = vld [vmem:[#allocation34_spill] sm:$0xff] }
 0x3f1   :  { %v989_v19 = vmul.f32 0.5, %v1508_v8  ;;  %v2307_v8 = vld [vmem:[#allocation35_spill] sm:$0xff] }
 0x3f2   :  { %v991_v22 = vadd.f32 0.5, %v988_v12 }
 0x3f3   :  { %v992_v23 = vadd.f32 0.5, %v989_v19  ;;  %v963_v28 = vpop.f32.mrf.mxu2  ;;  %v976_v37 = vpop.f32.mrf.mxu3 }
 0x3f4   :  { %v1510_v38 = vpop.eup %1509 }
 0x3f5   :  { %v995_v40 = vmul.f32 %v992_v23, %v2208_v48  ;;  %v996_v44 = vmul.f32 %v1510_v38, %v991_v22 }
 0x3f6   :  { %v1512_v54 = vpop.eup %1511 }
 0x3f7   :  { %v997_v55 = vadd.f32 %v996_v44, %v995_v40  ;;  %v990_v56 = vmul.f32 0.5, %v1512_v54 }
 0x3f9   :  { %1513 = vtanh.f32 %v997_v55  ;;  %v993_v61 = vadd.f32 0.5, %v990_v56 }
 0x3ff   :  { %v1514_v9 = vpop.eup %1513 }
 0x400   :  { %v999_v5 = vmul.f32 %v1514_v9, %v993_v61 }
 0x402   :  { %1000 = vst [vmem:[#allocation11 + $0x28] sm:$0xff] %v999_v5  ;;  %v1005_v36 = vpack.c.bf16 %v999_v5, %v999_v5 }
 0x404   :  { %1014 = vmatmul.bf16.vlgmr.msrb.gmra.mxu0 %v1005_v36  ;;  %1027 = vmatmul.bf16.vlgmr.msrb.gmra.mxu1 %v1005_v36 }
 0x405   :  { %1040 = vmatmul.bf16.vlgmr.msrb.gmra.mxu2 %v1005_v36  ;;  %1053 = vmatmul.bf16.vlgmr.msrb.gmra.mxu3 %v1005_v36 }
 0x481   :  { %v1015_v10 = vpop.f32.mrf.mxu0  ;;  %v1028_v29 = vpop.f32.mrf.mxu1 }
 0x482   :  { %v1058_v41 = vadd.f32 %v1015_v10, %v2302_v33  ;;  %v1059_v13 = vadd.f32 %v1028_v29, %v2303_v42 }
 0x484   :  { %v1062_v27 = vmul.f32 0.5, %v1058_v41  ;;  %v1063_v52 = vmul.f32 0.5, %v1059_v13 }
 0x486   :  { %1515 = vtanh.f32 %v1062_v27 }
 0x487   :  { %1517 = vtanh.f32 %v1063_v52 }
 0x488   :  { %v1041_v31 = vpop.f32.mrf.mxu2  ;;  %v1054_v57 = vpop.f32.mrf.mxu3 }
 0x489   :  { %v1060_v43 = vadd.f32 %v1041_v31, %v2304_v30  ;;  %v1061_v53 = vadd.f32 %v1054_v57, %v2305_v50  ;;  %v1017_v3 = vpop.f32.mrf.mxu0  ;;  %v1030_v26 = vpop.f32.mrf.mxu1 }
 0x48b   :  { %v1064_v15 = vmul.f32 0.5, %v1060_v43  ;;  %1519 = vtanh.f32 %v1061_v53 }
 0x48c   :  { %v1516_v18 = vpop.eup %1515 }
 0x48d   :  { %v1518_v62 = vpop.eup %1517  ;;  %v1068_v63 = vmul.f32 0.5, %v1516_v18  ;;  %1521 = vtanh.f32 %v1064_v15 }
 0x48e   :  { %v1069_v11 = vmul.f32 0.5, %v1518_v62 }
 0x48f   :  { %v1071_v48 = vadd.f32 0.5, %v1068_v63 }
 0x490   :  { %v1072_v24 = vadd.f32 0.5, %v1069_v11  ;;  %v1043_v4 = vpop.f32.mrf.mxu2  ;;  %v1056_v2 = vpop.f32.mrf.mxu3 }
 0x491   :  { %v1520_v14 = vpop.eup %1519 }
 0x492   :  { %v1075_v17 = vmul.f32 %v1072_v24, %v997_v55  ;;  %v1076_v16 = vmul.f32 %v1520_v14, %v1071_v48 }
 0x493   :  { %v1522_v20 = vpop.eup %1521 }
 0x494   :  { %v1077_v21 = vadd.f32 %v1076_v16, %v1075_v17  ;;  %v1070_v25 = vmul.f32 0.5, %v1522_v20 }
 0x496   :  { %1523 = vtanh.f32 %v1077_v21  ;;  %v1073_v32 = vadd.f32 0.5, %v1070_v25 }
 0x49c   :  { %v1524_v34 = vpop.eup %1523 }
 0x49d   :  { %v1079_v35 = vmul.f32 %v1524_v34, %v1073_v32 }
 0x49f   :  { %1080 = vst [vmem:[#allocation11 + $0x30] sm:$0xff] %v1079_v35  ;;  %v1085_v39 = vpack.c.bf16 %v1079_v35, %v1079_v35 }
 0x4a1   :  { %1094 = vmatmul.bf16.vlgmr.msra.gmra.mxu0 %v1085_v39  ;;  %1107 = vmatmul.bf16.vlgmr.msra.gmra.mxu1 %v1085_v39 }
 0x4a2   :  { %1120 = vmatmul.bf16.vlgmr.msra.gmra.mxu2 %v1085_v39  ;;  %1133 = vmatmul.bf16.vlgmr.msra.gmra.mxu3 %v1085_v39 }
 0x51e   :  { %v1095_v45 = vpop.f32.mrf.mxu0  ;;  %v1108_v46 = vpop.f32.mrf.mxu1 }
 0x51f   :  { %v1138_v47 = vadd.f32 %v1095_v45, %v2034_v1  ;;  %v1139_v51 = vadd.f32 %v1108_v46, %v2036_v49 }
 0x521   :  { %v1142_v58 = vmul.f32 0.5, %v1138_v47  ;;  %v1143_v59 = vmul.f32 0.5, %v1139_v51 }
 0x523   :  { %1525 = vtanh.f32 %v1142_v58 }
 0x524   :  { %1527 = vtanh.f32 %v1143_v59 }
 0x525   :  { %v1121_v60 = vpop.f32.mrf.mxu2  ;;  %v1134_v0 = vpop.f32.mrf.mxu3 }
 0x526   :  { %v1140_v7 = vadd.f32 %v1121_v60, %v2306_v6  ;;  %v1141_v12 = vadd.f32 %v1134_v0, %v2307_v8  ;;  %v1097_v19 = vpop.f32.mrf.mxu0  ;;  %v1110_v22 = vpop.f32.mrf.mxu1 }
 0x528   :  { %v1144_v23 = vmul.f32 0.5, %v1140_v7  ;;  %1529 = vtanh.f32 %v1141_v12 }
 0x529   :  { %v1526_v28 = vpop.eup %1525 }
 0x52a   :  { %v1528_v37 = vpop.eup %1527  ;;  %v1148_v38 = vmul.f32 0.5, %v1526_v28  ;;  %1531 = vtanh.f32 %v1144_v23 }
 0x52b   :  { %v1149_v1 = vmul.f32 0.5, %v1528_v37 }
 0x52c   :  { %v1151_v49 = vadd.f32 0.5, %v1148_v38 }
 0x52d   :  { %v1152_v40 = vadd.f32 0.5, %v1149_v1  ;;  %v1123_v44 = vpop.f32.mrf.mxu2  ;;  %v1136_v54 = vpop.f32.mrf.mxu3 }
 0x52e   :  { %v1530_v55 = vpop.eup %1529 }
 0x52f   :  { %v1155_v56 = vmul.f32 %v1152_v40, %v1077_v21  ;;  %v1156_v61 = vmul.f32 %v1530_v55, %v1151_v49 }
 0x530   :  { %v1532_v9 = vpop.eup %1531 }
 0x531   :  { %v1157_v5 = vadd.f32 %v1156_v61, %v1155_v56  ;;  %v1150_v36 = vmul.f32 0.5, %v1532_v9 }
 0x533   :  { %1533 = vtanh.f32 %v1157_v5  ;;  %1165 = vst [vmem:[#allocation14] sm:$0xff] %v1157_v5  ;;  %v1153_v10 = vadd.f32 0.5, %v1150_v36 }
 0x539   :  { %v1534_v29 = vpop.eup %1533 }
 0x53a   :  { %v1159_v33 = vmul.f32 %v1534_v29, %v1153_v10 }
 0x53c   :  { %1160 = vst [vmem:[#allocation11 + $0x38] sm:$0xff] %v1159_v33 }
 0x53d   :  { %1164 = vst [vmem:[#allocation12] sm:$0xff] %v1159_v33  ;;  %1184 = dma.vmem_to_hbm [thread:$0]  %s1177_s20, 1024, %s1179_s22, [#allocation7], %s1695_s6, %s1695_s6, %s1696_s10  }
 0x53e   :  { %1195 = dma.vmem_to_hbm [thread:$0]  %s1191_s24, 128, %s1193_s26, [#allocation13]  }
 0x53f   :  { %1206 = dma.vmem_to_hbm [thread:$0]  %s1202_s28, 128, %s1204_s9, [#allocation13]  }
 0x540   :  { %1683 = dma.done.wait [#allocation7], 1024  }
 0x541   :  { %1684 = vsyncadd [#allocation7], 4294966272 }
 0x542   :  { %1685 = dma.done.wait [#allocation13], 256  }
 0x543   :  { %1686 = vsyncadd [#allocation13], 4294967040 }
 0x544   :  { %1219 = vsyncpa [#allocation6], 1 }
 0x545   :  { %1220 = vsyncpa [#allocation9], 1 }
 0x546   :  { %1221 = vsyncpa [#allocation7], 1 }
 0x547   :  { %1222 = vsyncpa [#allocation13], 1 }

</bundles_post_ra>
